<compile_context>
chip_gen: v7x
topology: tpu7x:2x2x1
jax: 0.10.0
libtpu: 0.0.40
codegen_flags: <defaults>
</compile_context>

<pallas_src>
import functools

import jax
import jax.numpy as jnp
from jax import lax
from jax.experimental import pallas as pl
from jax.experimental.pallas import tpu as pltpu

HIDDEN = 200          # matches the PyTorch module
_LANE = 128


def _round_up(x, m):
    return (x + m - 1) // m * m


def _swish(z):
    return z * jax.nn.sigmoid(z)


def _default_eup_dtype():
    """bf16 EUP path on v6e/v7x; f32 elsewhere (v5e has no bf16 EUP)."""
    try:
        kind = jax.devices()[0].device_kind.lower()
    except Exception:
        return jnp.float32
    if any(tag in kind for tag in ("v6", "v7", "7x", "6e")):
        return jnp.bfloat16
    return jnp.float32


# ------------------------------------------------------------------ kernel
def ensemble_kernel(x_ref,
                    w1_ref, b1_ref, w2_ref, b2_ref, w3_ref, b3_ref,
                    w4_ref, b4_ref, w5_ref, b5_ref,
                    maxlv_ref, expmax_ref, expmin_ref,
                    mean_ref, var_ref, *, half, eup_dtype):
    E = mean_ref.shape[0]
    wdt = w1_ref.dtype                       # MXU input dtype (bf16)

    # Hoisted, member-independent values (JAX does not CSE broadcasts).
    max_lv = maxlv_ref[...]                  # (1, half) f32
    exp_max = expmax_ref[...]                # (1, half) f32 = exp(max_logvar)
    exp_min = expmin_ref[...]                # (1, half) f32 = exp(min_logvar)

    def fc_swish(h, w, b):
        z = jnp.dot(h, w, preferred_element_type=jnp.float32) + b   # f32 accumulate + bias
        # swish(z) = z*sigmoid(z) = 0.5*z*(1 + tanh(z/2)): 1 EUP push instead of exp+recip.
        t = jnp.tanh((0.5 * z).astype(eup_dtype)).astype(jnp.float32)
        return (0.5 * z * (1.0 + t)).astype(wdt)

    # Static unroll over the (small) ensemble: one invocation handles all members.
    # TODO(synk): switch to lax.fori_loop(..., unroll=True) if bundle dumps show vreg
    # spills at larger batch tiles (>=1024); neutral at tb<=512.
    for e in range(E):
        h = x_ref[e]                                                  # (tb, Din) bf16
        h = fc_swish(h, w1_ref[e], b1_ref[e])
        h = fc_swish(h, w2_ref[e], b2_ref[e])
        h = fc_swish(h, w3_ref[e], b3_ref[e])
        h = fc_swish(h, w4_ref[e], b4_ref[e])
        ret = jnp.dot(h, w5_ref[e], preferred_element_type=jnp.float32) + b5_ref[e]

        mean_ref[e] = ret[:, :half]                                   # compact f32 store
        # Exact identity for max/min double-softplus clamp followed by exp:
        #   var = exp(min_lv) + exp(max_lv) * sigmoid(ret_lv - max_lv)
        lv = ret[:, half:2 * half]
        sig = 0.5 * (1.0 + jnp.tanh(0.5 * (lv - max_lv)))             # f32, 12 lanes only
        var_ref[e] = exp_min + exp_max * sig


# ------------------------------------------------------------------ packing (one-time)
def pack_params(params, max_logvar, min_logvar, weight_dtype=jnp.bfloat16):
    """Zero-pad to MXU/lane friendly shapes, cast weights to bf16, precompute exp bounds."""
    (w1, b1), (w2, b2), (w3, b3), (w4, b4), (w5, b5) = params
    E, din, hid = w1.shape
    dout = w5.shape[-1]
    hpad = _round_up(hid, _LANE)        # 200 -> 256
    dpad = _round_up(dout, _LANE)       # 24  -> 128

    def pad_to(a, shape):
        return jnp.pad(a, [(0, t - s) for s, t in zip(a.shape, shape)])

    ws = (pad_to(w1, (E, din, hpad)).astype(weight_dtype),
          pad_to(w2, (E, hpad, hpad)).astype(weight_dtype),
          pad_to(w3, (E, hpad, hpad)).astype(weight_dtype),
          pad_to(w4, (E, hpad, hpad)).astype(weight_dtype),
          pad_to(w5, (E, hpad, dpad)).astype(weight_dtype))
    bs = (pad_to(b1, (E, 1, hpad)).astype(jnp.float32),
          pad_to(b2, (E, 1, hpad)).astype(jnp.float32),
          pad_to(b3, (E, 1, hpad)).astype(jnp.float32),
          pad_to(b4, (E, 1, hpad)).astype(jnp.float32),
          pad_to(b5, (E, 1, dpad)).astype(jnp.float32))
    return dict(w=ws, b=bs,
                max_logvar=max_logvar.astype(jnp.float32),            # (1, half)
                exp_max=jnp.exp(max_logvar).astype(jnp.float32),      # (1, half)
                exp_min=jnp.exp(min_logvar).astype(jnp.float32))      # (1, half)


# ------------------------------------------------------------------ wrapper
def ensemble_forward(x, packed, *, half, tb=None, eup_dtype=None):
    """x: (E, B, Din) f32 -> (mean (E,B,half), var (E,B,half)), both f32."""
    E, B, Din = x.shape
    w1, w2, w3, w4, w5 = packed["w"]
    b1, b2, b3, b4, b5 = packed["b"]
    max_lv = packed["max_logvar"]
    exp_max = packed["exp_max"]
    exp_min = packed["exp_min"]
    hpad = w2.shape[-1]
    dpad = w5.shape[-1]
    assert 2 * half <= dpad

    if eup_dtype is None:
        eup_dtype = _default_eup_dtype()

    if tb is None:
        # >=2 grid steps for B>=32 so v7x megacore shards the batch axis; multiple of 16
        # (bf16 sublane packing); capped at 512 (VMEM-safe on v5e/v7x with 32 MiB limit).
        tb = min(512, max(16, _round_up(-(-B // 2), 16)))
    bpad = _round_up(B, tb)
    nbt = bpad // tb

    xk = x.astype(jnp.bfloat16)                  # pre-cast: half the input DMA bytes
    if bpad != B:
        xk = jnp.pad(xk, ((0, 0), (0, bpad - B), (0, 0)))

    def resident(shape):
        n = len(shape)
        return pl.BlockSpec(shape, lambda j, _n=n: (0,) * _n)   # DMA'd once, resident

    grid_spec = pltpu.PrefetchScalarGridSpec(
        num_scalar_prefetch=0,
        grid=(nbt,),
        in_specs=[
            pl.BlockSpec((E, tb, Din), lambda j: (0, j, 0)),
            resident(w1.shape), resident(b1.shape),
            resident(w2.shape), resident(b2.shape),
            resident(w3.shape), resident(b3.shape),
            resident(w4.shape), resident(b4.shape),
            resident(w5.shape), resident(b5.shape),
            resident(max_lv.shape), resident(exp_max.shape), resident(exp_min.shape),
        ],
        out_specs=(
            pl.BlockSpec((E, tb, half), lambda j: (0, j, 0)),   # mean (compact)
            pl.BlockSpec((E, tb, half), lambda j: (0, j, 0)),   # var  (compact)
        ),
    )

    wb_bytes = sum(int(a.size) * a.dtype.itemsize
                   for a in (w1, b1, w2, b2, w3, b3, w4, b4, w5, b5))
    cost = pl.CostEstimate(
        flops=2 * E * bpad * (Din * hpad + 3 * hpad * hpad + hpad * dpad),
        transcendentals=E * bpad * (4 * hpad + half),
        bytes_accessed=wb_bytes + E * bpad * Din * 2 + 2 * E * bpad * half * 4,
    )

    mean_p, var_p = pl.pallas_call(
        functools.partial(ensemble_kernel, half=half, eup_dtype=eup_dtype),
        out_shape=(jax.ShapeDtypeStruct((E, bpad, half), jnp.float32),
                   jax.ShapeDtypeStruct((E, bpad, half), jnp.float32)),
        grid_spec=grid_spec,
        cost_estimate=cost,
        compiler_params=pltpu.CompilerParams(
            dimension_semantics=("parallel",),
            vmem_limit_bytes=32 * 1024 * 1024),
    )(xk, w1, b1, w2, b2, w3, b3, w4, b4, w5, b5, max_lv, exp_max, exp_min)

    if bpad != B:
        return mean_p[:, :B], var_p[:, :B]
    return mean_p, var_p


# ------------------------------------------------------------------ init + reference
def init_params(key, state_dim, action_dim, ensemble_size):
    """Deterministic truncated-normal init mirroring EnsembleModel.init_weights."""
    in_dim = state_dim + action_dim
    out_dim = (state_dim + 1) * 2
    dims = [(in_dim, HIDDEN), (HIDDEN, HIDDEN), (HIDDEN, HIDDEN),
            (HIDDEN, HIDDEN), (HIDDEN, out_dim)]
    params = []
    for (din, dout) in dims:
        key, sub = jax.random.split(key)
        std = 1.0 / (2.0 * jnp.sqrt(jnp.float32(din)))
        w = std * jax.random.truncated_normal(
            sub, -2.0, 2.0, (ensemble_size, din, dout), dtype=jnp.float32)
        b = jnp.zeros((ensemble_size, 1, dout), dtype=jnp.float32)
        params.append((w, b))
    max_logvar = jnp.ones((1, out_dim // 2), jnp.float32) * 0.5
    min_logvar = -jnp.ones((1, out_dim // 2), jnp.float32) * 10.0
    return params, max_logvar, min_logvar


def reference_forward(x, params, max_logvar, min_logvar):
    """Pure-JAX f32 reference mirroring the PyTorch forward."""
    h = x
    for i, (w, b) in enumerate(params):
        h = jnp.einsum('ebi,eio->ebo', h, w) + b
        if i < 4:
            h = _swish(h)
    half = h.shape[-1] // 2
    mean = h[:, :, :half]
    logvar = max_logvar - jax.nn.softplus(max_logvar - h[:, :, half:])
    logvar = min_logvar + jax.nn.softplus(logvar - min_logvar)
    return mean, jnp.exp(logvar)


if __name__ == "__main__":
    state_dim, action_dim = 11, 3
    ensemble_size, batch = 5, 20          # 20 -> exercises 2 grid steps + row padding

    key = jax.random.PRNGKey(0)
    key, kx = jax.random.split(key)
    params, max_lv, min_lv = init_params(key, state_dim, action_dim, ensemble_size)
    x = jax.random.normal(kx, (ensemble_size, batch, state_dim + action_dim),
                          dtype=jnp.float32)

    half = state_dim + 1
    packed = pack_params(params, max_lv, min_lv)            # one-time pad + bf16 cast

    fwd = jax.jit(functools.partial(ensemble_forward, half=half))
    mean, var = jax.block_until_ready(fwd(x, packed))

    mean_ref, var_ref = reference_forward(x, params, max_lv, min_lv)
    assert mean.shape == mean_ref.shape and var.shape == var_ref.shape
    # bf16 weights/activations (and bf16 EUP on v6e/v7x) vs pure-f32 reference.
    assert jnp.allclose(mean, mean_ref, atol=3e-2, rtol=3e-2), "mean mismatch"
    assert jnp.allclose(var, var_ref, atol=3e-2, rtol=3e-2), "var mismatch"

    print("KERNEL_OK")
</pallas_src>

<mosaic_0001>
module attributes {stable_mosaic.version = 11 : i64} {
  func.func @ensemble_kernel(%arg0: i32, %arg1: memref<5x16x14xbf16, #tpu.memory_space<vmem>>, %arg2: memref<5x14x256xbf16, #tpu.memory_space<vmem>>, %arg3: memref<5x1x256xf32, #tpu.memory_space<vmem>>, %arg4: memref<5x256x256xbf16, #tpu.memory_space<vmem>>, %arg5: memref<5x1x256xf32, #tpu.memory_space<vmem>>, %arg6: memref<5x256x256xbf16, #tpu.memory_space<vmem>>, %arg7: memref<5x1x256xf32, #tpu.memory_space<vmem>>, %arg8: memref<5x256x256xbf16, #tpu.memory_space<vmem>>, %arg9: memref<5x1x256xf32, #tpu.memory_space<vmem>>, %arg10: memref<5x256x128xbf16, #tpu.memory_space<vmem>>, %arg11: memref<5x1x128xf32, #tpu.memory_space<vmem>>, %arg12: memref<1x12xf32, #tpu.memory_space<vmem>>, %arg13: memref<1x12xf32, #tpu.memory_space<vmem>>, %arg14: memref<1x12xf32, #tpu.memory_space<vmem>>, %arg15: memref<5x16x12xf32, #tpu.memory_space<vmem>>, %arg16: memref<5x16x12xf32, #tpu.memory_space<vmem>>) attributes {dimension_semantics = [#tpu.dimension_semantics<parallel>], iteration_bounds = array<i64: 2>, scalar_prefetch = 0 : i64, scratch_operands = 0 : i64, tpu.core_type = #tpu.core_type<tc>, window_params = [{transform_indices = @transform_0, window_bounds = array<i64: 5, 16, 14>}, {pipeline_mode = #tpu.pipeline_mode<synchronous>, transform_indices = @transform_1, window_bounds = array<i64: 5, 14, 256>}, {pipeline_mode = #tpu.pipeline_mode<synchronous>, transform_indices = @transform_2, window_bounds = array<i64: 5, 1, 256>}, {pipeline_mode = #tpu.pipeline_mode<synchronous>, transform_indices = @transform_3, window_bounds = array<i64: 5, 256, 256>}, {pipeline_mode = #tpu.pipeline_mode<synchronous>, transform_indices = @transform_4, window_bounds = array<i64: 5, 1, 256>}, {pipeline_mode = #tpu.pipeline_mode<synchronous>, transform_indices = @transform_5, window_bounds = array<i64: 5, 256, 256>}, {pipeline_mode = #tpu.pipeline_mode<synchronous>, transform_indices = @transform_6, window_bounds = array<i64: 5, 1, 256>}, {pipeline_mode = #tpu.pipeline_mode<synchronous>, transform_indices = @transform_7, window_bounds = array<i64: 5, 256, 256>}, {pipeline_mode = #tpu.pipeline_mode<synchronous>, transform_indices = @transform_8, window_bounds = array<i64: 5, 1, 256>}, {pipeline_mode = #tpu.pipeline_mode<synchronous>, transform_indices = @transform_9, window_bounds = array<i64: 5, 256, 128>}, {pipeline_mode = #tpu.pipeline_mode<synchronous>, transform_indices = @transform_10, window_bounds = array<i64: 5, 1, 128>}, {pipeline_mode = #tpu.pipeline_mode<synchronous>, transform_indices = @transform_11, window_bounds = array<i64: 1, 12>}, {pipeline_mode = #tpu.pipeline_mode<synchronous>, transform_indices = @transform_12, window_bounds = array<i64: 1, 12>}, {pipeline_mode = #tpu.pipeline_mode<synchronous>, transform_indices = @transform_13, window_bounds = array<i64: 1, 12>}, {transform_indices = @transform_14, window_bounds = array<i64: 5, 16, 12>}, {transform_indices = @transform_15, window_bounds = array<i64: 5, 16, 12>}]} {
    %c0 = arith.constant 0 : index
    %c0_0 = arith.constant 0 : index
    %0 = vector.load %arg12[%c0, %c0_0] : memref<1x12xf32, #tpu.memory_space<vmem>>, vector<1x12xf32>
    %c0_1 = arith.constant 0 : index
    %c0_2 = arith.constant 0 : index
    %1 = vector.load %arg13[%c0_1, %c0_2] : memref<1x12xf32, #tpu.memory_space<vmem>>, vector<1x12xf32>
    %c0_3 = arith.constant 0 : index
    %c0_4 = arith.constant 0 : index
    %2 = vector.load %arg14[%c0_3, %c0_4] : memref<1x12xf32, #tpu.memory_space<vmem>>, vector<1x12xf32>
    %c0_5 = arith.constant 0 : index
    %c0_6 = arith.constant 0 : index
    %c0_7 = arith.constant 0 : index
    %3 = vector.load %arg1[%c0_5, %c0_6, %c0_7] : memref<5x16x14xbf16, #tpu.memory_space<vmem>>, vector<1x16x14xbf16>
    %4 = vector.shape_cast %3 : vector<1x16x14xbf16> to vector<16x14xbf16>
    %c0_8 = arith.constant 0 : index
    %c0_9 = arith.constant 0 : index
    %c0_10 = arith.constant 0 : index
    %5 = vector.load %arg2[%c0_8, %c0_9, %c0_10] : memref<5x14x256xbf16, #tpu.memory_space<vmem>>, vector<1x14x256xbf16>
    %6 = vector.shape_cast %5 : vector<1x14x256xbf16> to vector<14x256xbf16>
    %c0_11 = arith.constant 0 : index
    %c0_12 = arith.constant 0 : index
    %c0_13 = arith.constant 0 : index
    %7 = vector.load %arg3[%c0_11, %c0_12, %c0_13] : memref<5x1x256xf32, #tpu.memory_space<vmem>>, vector<1x1x256xf32>
    %8 = vector.shape_cast %7 : vector<1x1x256xf32> to vector<1x256xf32>
    %cst = arith.constant dense<0.000000e+00> : vector<16x256xf32>
    %9 = tpu.matmul %4, %6, %cst {dimension_numbers = #tpu.dot_dimension_numbers<[1], [0], [0], [1], [0, 0, 1, 1], [], []>} : vector<16x14xbf16>, vector<14x256xbf16>, vector<16x256xf32> -> vector<16x256xf32>
    %10 = vector.broadcast %8 : vector<1x256xf32> to vector<16x256xf32>
    %11 = arith.addf %9, %10 : vector<16x256xf32>
    %cst_14 = arith.constant 5.000000e-01 : f32
    %12 = vector.broadcast %cst_14 : f32 to vector<16x256xf32>
    %13 = arith.mulf %12, %11 : vector<16x256xf32>
    %14 = math.tanh %13 : vector<16x256xf32>
    %cst_15 = arith.constant 5.000000e-01 : f32
    %15 = vector.broadcast %cst_15 : f32 to vector<16x256xf32>
    %16 = arith.mulf %15, %11 : vector<16x256xf32>
    %cst_16 = arith.constant 1.000000e+00 : f32
    %17 = vector.broadcast %cst_16 : f32 to vector<16x256xf32>
    %18 = arith.addf %17, %14 : vector<16x256xf32>
    %19 = arith.mulf %16, %18 : vector<16x256xf32>
    %20 = arith.truncf %19 : vector<16x256xf32> to vector<16x256xbf16>
    %c0_17 = arith.constant 0 : index
    %c0_18 = arith.constant 0 : index
    %c0_19 = arith.constant 0 : index
    %21 = vector.load %arg4[%c0_17, %c0_18, %c0_19] : memref<5x256x256xbf16, #tpu.memory_space<vmem>>, vector<1x256x256xbf16>
    %22 = vector.shape_cast %21 : vector<1x256x256xbf16> to vector<256x256xbf16>
    %c0_20 = arith.constant 0 : index
    %c0_21 = arith.constant 0 : index
    %c0_22 = arith.constant 0 : index
    %23 = vector.load %arg5[%c0_20, %c0_21, %c0_22] : memref<5x1x256xf32, #tpu.memory_space<vmem>>, vector<1x1x256xf32>
    %24 = vector.shape_cast %23 : vector<1x1x256xf32> to vector<1x256xf32>
    %cst_23 = arith.constant dense<0.000000e+00> : vector<16x256xf32>
    %25 = tpu.matmul %20, %22, %cst_23 {dimension_numbers = #tpu.dot_dimension_numbers<[1], [0], [0], [1], [0, 0, 1, 1], [], []>} : vector<16x256xbf16>, vector<256x256xbf16>, vector<16x256xf32> -> vector<16x256xf32>
    %26 = vector.broadcast %24 : vector<1x256xf32> to vector<16x256xf32>
    %27 = arith.addf %25, %26 : vector<16x256xf32>
    %cst_24 = arith.constant 5.000000e-01 : f32
    %28 = vector.broadcast %cst_24 : f32 to vector<16x256xf32>
    %29 = arith.mulf %28, %27 : vector<16x256xf32>
    %30 = math.tanh %29 : vector<16x256xf32>
    %cst_25 = arith.constant 5.000000e-01 : f32
    %31 = vector.broadcast %cst_25 : f32 to vector<16x256xf32>
    %32 = arith.mulf %31, %27 : vector<16x256xf32>
    %cst_26 = arith.constant 1.000000e+00 : f32
    %33 = vector.broadcast %cst_26 : f32 to vector<16x256xf32>
    %34 = arith.addf %33, %30 : vector<16x256xf32>
    %35 = arith.mulf %32, %34 : vector<16x256xf32>
    %36 = arith.truncf %35 : vector<16x256xf32> to vector<16x256xbf16>
    %c0_27 = arith.constant 0 : index
    %c0_28 = arith.constant 0 : index
    %c0_29 = arith.constant 0 : index
    %37 = vector.load %arg6[%c0_27, %c0_28, %c0_29] : memref<5x256x256xbf16, #tpu.memory_space<vmem>>, vector<1x256x256xbf16>
    %38 = vector.shape_cast %37 : vector<1x256x256xbf16> to vector<256x256xbf16>
    %c0_30 = arith.constant 0 : index
    %c0_31 = arith.constant 0 : index
    %c0_32 = arith.constant 0 : index
    %39 = vector.load %arg7[%c0_30, %c0_31, %c0_32] : memref<5x1x256xf32, #tpu.memory_space<vmem>>, vector<1x1x256xf32>
    %40 = vector.shape_cast %39 : vector<1x1x256xf32> to vector<1x256xf32>
    %cst_33 = arith.constant dense<0.000000e+00> : vector<16x256xf32>
    %41 = tpu.matmul %36, %38, %cst_33 {dimension_numbers = #tpu.dot_dimension_numbers<[1], [0], [0], [1], [0, 0, 1, 1], [], []>} : vector<16x256xbf16>, vector<256x256xbf16>, vector<16x256xf32> -> vector<16x256xf32>
    %42 = vector.broadcast %40 : vector<1x256xf32> to vector<16x256xf32>
    %43 = arith.addf %41, %42 : vector<16x256xf32>
    %cst_34 = arith.constant 5.000000e-01 : f32
    %44 = vector.broadcast %cst_34 : f32 to vector<16x256xf32>
    %45 = arith.mulf %44, %43 : vector<16x256xf32>
    %46 = math.tanh %45 : vector<16x256xf32>
    %cst_35 = arith.constant 5.000000e-01 : f32
    %47 = vector.broadcast %cst_35 : f32 to vector<16x256xf32>
    %48 = arith.mulf %47, %43 : vector<16x256xf32>
    %cst_36 = arith.constant 1.000000e+00 : f32
    %49 = vector.broadcast %cst_36 : f32 to vector<16x256xf32>
    %50 = arith.addf %49, %46 : vector<16x256xf32>
    %51 = arith.mulf %48, %50 : vector<16x256xf32>
    %52 = arith.truncf %51 : vector<16x256xf32> to vector<16x256xbf16>
    %c0_37 = arith.constant 0 : index
    %c0_38 = arith.constant 0 : index
    %c0_39 = arith.constant 0 : index
    %53 = vector.load %arg8[%c0_37, %c0_38, %c0_39] : memref<5x256x256xbf16, #tpu.memory_space<vmem>>, vector<1x256x256xbf16>
    %54 = vector.shape_cast %53 : vector<1x256x256xbf16> to vector<256x256xbf16>
    %c0_40 = arith.constant 0 : index
    %c0_41 = arith.constant 0 : index
    %c0_42 = arith.constant 0 : index
    %55 = vector.load %arg9[%c0_40, %c0_41, %c0_42] : memref<5x1x256xf32, #tpu.memory_space<vmem>>, vector<1x1x256xf32>
    %56 = vector.shape_cast %55 : vector<1x1x256xf32> to vector<1x256xf32>
    %cst_43 = arith.constant dense<0.000000e+00> : vector<16x256xf32>
    %57 = tpu.matmul %52, %54, %cst_43 {dimension_numbers = #tpu.dot_dimension_numbers<[1], [0], [0], [1], [0, 0, 1, 1], [], []>} : vector<16x256xbf16>, vector<256x256xbf16>, vector<16x256xf32> -> vector<16x256xf32>
    %58 = vector.broadcast %56 : vector<1x256xf32> to vector<16x256xf32>
    %59 = arith.addf %57, %58 : vector<16x256xf32>
    %cst_44 = arith.constant 5.000000e-01 : f32
    %60 = vector.broadcast %cst_44 : f32 to vector<16x256xf32>
    %61 = arith.mulf %60, %59 : vector<16x256xf32>
    %62 = math.tanh %61 : vector<16x256xf32>
    %cst_45 = arith.constant 5.000000e-01 : f32
    %63 = vector.broadcast %cst_45 : f32 to vector<16x256xf32>
    %64 = arith.mulf %63, %59 : vector<16x256xf32>
    %cst_46 = arith.constant 1.000000e+00 : f32
    %65 = vector.broadcast %cst_46 : f32 to vector<16x256xf32>
    %66 = arith.addf %65, %62 : vector<16x256xf32>
    %67 = arith.mulf %64, %66 : vector<16x256xf32>
    %68 = arith.truncf %67 : vector<16x256xf32> to vector<16x256xbf16>
    %c0_47 = arith.constant 0 : index
    %c0_48 = arith.constant 0 : index
    %c0_49 = arith.constant 0 : index
    %69 = vector.load %arg10[%c0_47, %c0_48, %c0_49] : memref<5x256x128xbf16, #tpu.memory_space<vmem>>, vector<1x256x128xbf16>
    %70 = vector.shape_cast %69 : vector<1x256x128xbf16> to vector<256x128xbf16>
    %cst_50 = arith.constant dense<0.000000e+00> : vector<16x128xf32>
    %71 = tpu.matmul %68, %70, %cst_50 {dimension_numbers = #tpu.dot_dimension_numbers<[1], [0], [0], [1], [0, 0, 1, 1], [], []>} : vector<16x256xbf16>, vector<256x128xbf16>, vector<16x128xf32> -> vector<16x128xf32>
    %c0_51 = arith.constant 0 : index
    %c0_52 = arith.constant 0 : index
    %c0_53 = arith.constant 0 : index
    %72 = vector.load %arg11[%c0_51, %c0_52, %c0_53] : memref<5x1x128xf32, #tpu.memory_space<vmem>>, vector<1x1x128xf32>
    %73 = vector.shape_cast %72 : vector<1x1x128xf32> to vector<1x128xf32>
    %74 = vector.broadcast %73 : vector<1x128xf32> to vector<16x128xf32>
    %75 = arith.addf %71, %74 : vector<16x128xf32>
    %76 = vector.extract_strided_slice %75 {offsets = [0, 0], sizes = [16, 12], strides = [1, 1]} : vector<16x128xf32> to vector<16x12xf32>
    %c0_54 = arith.constant 0 : index
    %c0_55 = arith.constant 0 : index
    %c0_56 = arith.constant 0 : index
    %77 = vector.load %arg15[%c0_54, %c0_55, %c0_56] : memref<5x16x12xf32, #tpu.memory_space<vmem>>, vector<1x16x12xf32>
    %78 = vector.shape_cast %77 : vector<1x16x12xf32> to vector<16x12xf32>
    %79 = vector.shape_cast %76 : vector<16x12xf32> to vector<1x16x12xf32>
    tpu.vector_store %arg15[%c0_54, %c0_55, %c0_56], %79 {strides = array<i32>} : memref<5x16x12xf32, #tpu.memory_space<vmem>>, vector<1x16x12xf32>,
    %80 = vector.extract_strided_slice %75 {offsets = [0, 12], sizes = [16, 12], strides = [1, 1]} : vector<16x128xf32> to vector<16x12xf32>
    %81 = vector.broadcast %0 : vector<1x12xf32> to vector<16x12xf32>
    %82 = arith.subf %80, %81 : vector<16x12xf32>
    %cst_57 = arith.constant 5.000000e-01 : f32
    %83 = vector.broadcast %cst_57 : f32 to vector<16x12xf32>
    %84 = arith.mulf %83, %82 : vector<16x12xf32>
    %85 = math.tanh %84 : vector<16x12xf32>
    %cst_58 = arith.constant 1.000000e+00 : f32
    %86 = vector.broadcast %cst_58 : f32 to vector<16x12xf32>
    %87 = arith.addf %86, %85 : vector<16x12xf32>
    %cst_59 = arith.constant 5.000000e-01 : f32
    %88 = vector.broadcast %cst_59 : f32 to vector<16x12xf32>
    %89 = arith.mulf %88, %87 : vector<16x12xf32>
    %90 = vector.broadcast %1 : vector<1x12xf32> to vector<16x12xf32>
    %91 = arith.mulf %90, %89 : vector<16x12xf32>
    %92 = vector.broadcast %2 : vector<1x12xf32> to vector<16x12xf32>
    %93 = arith.addf %92, %91 : vector<16x12xf32>
    %c0_60 = arith.constant 0 : index
    %c0_61 = arith.constant 0 : index
    %c0_62 = arith.constant 0 : index
    %94 = vector.load %arg16[%c0_60, %c0_61, %c0_62] : memref<5x16x12xf32, #tpu.memory_space<vmem>>, vector<1x16x12xf32>
    %95 = vector.shape_cast %94 : vector<1x16x12xf32> to vector<16x12xf32>
    %96 = vector.shape_cast %93 : vector<16x12xf32> to vector<1x16x12xf32>
    tpu.vector_store %arg16[%c0_60, %c0_61, %c0_62], %96 {strides = array<i32>} : memref<5x16x12xf32, #tpu.memory_space<vmem>>, vector<1x16x12xf32>,
    %c1 = arith.constant 1 : index
    %c0_63 = arith.constant 0 : index
    %c0_64 = arith.constant 0 : index
    %97 = vector.load %arg1[%c1, %c0_63, %c0_64] : memref<5x16x14xbf16, #tpu.memory_space<vmem>>, vector<1x16x14xbf16>
    %98 = vector.shape_cast %97 : vector<1x16x14xbf16> to vector<16x14xbf16>
    %c1_65 = arith.constant 1 : index
    %c0_66 = arith.constant 0 : index
    %c0_67 = arith.constant 0 : index
    %99 = vector.load %arg2[%c1_65, %c0_66, %c0_67] : memref<5x14x256xbf16, #tpu.memory_space<vmem>>, vector<1x14x256xbf16>
    %100 = vector.shape_cast %99 : vector<1x14x256xbf16> to vector<14x256xbf16>
    %c1_68 = arith.constant 1 : index
    %c0_69 = arith.constant 0 : index
    %c0_70 = arith.constant 0 : index
    %101 = vector.load %arg3[%c1_68, %c0_69, %c0_70] : memref<5x1x256xf32, #tpu.memory_space<vmem>>, vector<1x1x256xf32>
    %102 = vector.shape_cast %101 : vector<1x1x256xf32> to vector<1x256xf32>
    %cst_71 = arith.constant dense<0.000000e+00> : vector<16x256xf32>
    %103 = tpu.matmul %98, %100, %cst_71 {dimension_numbers = #tpu.dot_dimension_numbers<[1], [0], [0], [1], [0, 0, 1, 1], [], []>} : vector<16x14xbf16>, vector<14x256xbf16>, vector<16x256xf32> -> vector<16x256xf32>
    %104 = vector.broadcast %102 : vector<1x256xf32> to vector<16x256xf32>
    %105 = arith.addf %103, %104 : vector<16x256xf32>
    %cst_72 = arith.constant 5.000000e-01 : f32
    %106 = vector.broadcast %cst_72 : f32 to vector<16x256xf32>
    %107 = arith.mulf %106, %105 : vector<16x256xf32>
    %108 = math.tanh %107 : vector<16x256xf32>
    %cst_73 = arith.constant 5.000000e-01 : f32
    %109 = vector.broadcast %cst_73 : f32 to vector<16x256xf32>
    %110 = arith.mulf %109, %105 : vector<16x256xf32>
    %cst_74 = arith.constant 1.000000e+00 : f32
    %111 = vector.broadcast %cst_74 : f32 to vector<16x256xf32>
    %112 = arith.addf %111, %108 : vector<16x256xf32>
    %113 = arith.mulf %110, %112 : vector<16x256xf32>
    %114 = arith.truncf %113 : vector<16x256xf32> to vector<16x256xbf16>
    %c1_75 = arith.constant 1 : index
    %c0_76 = arith.constant 0 : index
    %c0_77 = arith.constant 0 : index
    %115 = vector.load %arg4[%c1_75, %c0_76, %c0_77] : memref<5x256x256xbf16, #tpu.memory_space<vmem>>, vector<1x256x256xbf16>
    %116 = vector.shape_cast %115 : vector<1x256x256xbf16> to vector<256x256xbf16>
    %c1_78 = arith.constant 1 : index
    %c0_79 = arith.constant 0 : index
    %c0_80 = arith.constant 0 : index
    %117 = vector.load %arg5[%c1_78, %c0_79, %c0_80] : memref<5x1x256xf32, #tpu.memory_space<vmem>>, vector<1x1x256xf32>
    %118 = vector.shape_cast %117 : vector<1x1x256xf32> to vector<1x256xf32>
    %cst_81 = arith.constant dense<0.000000e+00> : vector<16x256xf32>
    %119 = tpu.matmul %114, %116, %cst_81 {dimension_numbers = #tpu.dot_dimension_numbers<[1], [0], [0], [1], [0, 0, 1, 1], [], []>} : vector<16x256xbf16>, vector<256x256xbf16>, vector<16x256xf32> -> vector<16x256xf32>
    %120 = vector.broadcast %118 : vector<1x256xf32> to vector<16x256xf32>
    %121 = arith.addf %119, %120 : vector<16x256xf32>
    %cst_82 = arith.constant 5.000000e-01 : f32
    %122 = vector.broadcast %cst_82 : f32 to vector<16x256xf32>
    %123 = arith.mulf %122, %121 : vector<16x256xf32>
    %124 = math.tanh %123 : vector<16x256xf32>
    %cst_83 = arith.constant 5.000000e-01 : f32
    %125 = vector.broadcast %cst_83 : f32 to vector<16x256xf32>
    %126 = arith.mulf %125, %121 : vector<16x256xf32>
    %cst_84 = arith.constant 1.000000e+00 : f32
    %127 = vector.broadcast %cst_84 : f32 to vector<16x256xf32>
    %128 = arith.addf %127, %124 : vector<16x256xf32>
    %129 = arith.mulf %126, %128 : vector<16x256xf32>
    %130 = arith.truncf %129 : vector<16x256xf32> to vector<16x256xbf16>
    %c1_85 = arith.constant 1 : index
    %c0_86 = arith.constant 0 : index
    %c0_87 = arith.constant 0 : index
    %131 = vector.load %arg6[%c1_85, %c0_86, %c0_87] : memref<5x256x256xbf16, #tpu.memory_space<vmem>>, vector<1x256x256xbf16>
    %132 = vector.shape_cast %131 : vector<1x256x256xbf16> to vector<256x256xbf16>
    %c1_88 = arith.constant 1 : index
    %c0_89 = arith.constant 0 : index
    %c0_90 = arith.constant 0 : index
    %133 = vector.load %arg7[%c1_88, %c0_89, %c0_90] : memref<5x1x256xf32, #tpu.memory_space<vmem>>, vector<1x1x256xf32>
    %134 = vector.shape_cast %133 : vector<1x1x256xf32> to vector<1x256xf32>
    %cst_91 = arith.constant dense<0.000000e+00> : vector<16x256xf32>
    %135 = tpu.matmul %130, %132, %cst_91 {dimension_numbers = #tpu.dot_dimension_numbers<[1], [0], [0], [1], [0, 0, 1, 1], [], []>} : vector<16x256xbf16>, vector<256x256xbf16>, vector<16x256xf32> -> vector<16x256xf32>
    %136 = vector.broadcast %134 : vector<1x256xf32> to vector<16x256xf32>
    %137 = arith.addf %135, %136 : vector<16x256xf32>
    %cst_92 = arith.constant 5.000000e-01 : f32
    %138 = vector.broadcast %cst_92 : f32 to vector<16x256xf32>
    %139 = arith.mulf %138, %137 : vector<16x256xf32>
    %140 = math.tanh %139 : vector<16x256xf32>
    %cst_93 = arith.constant 5.000000e-01 : f32
    %141 = vector.broadcast %cst_93 : f32 to vector<16x256xf32>
    %142 = arith.mulf %141, %137 : vector<16x256xf32>
    %cst_94 = arith.constant 1.000000e+00 : f32
    %143 = vector.broadcast %cst_94 : f32 to vector<16x256xf32>
    %144 = arith.addf %143, %140 : vector<16x256xf32>
    %145 = arith.mulf %142, %144 : vector<16x256xf32>
    %146 = arith.truncf %145 : vector<16x256xf32> to vector<16x256xbf16>
    %c1_95 = arith.constant 1 : index
    %c0_96 = arith.constant 0 : index
    %c0_97 = arith.constant 0 : index
    %147 = vector.load %arg8[%c1_95, %c0_96, %c0_97] : memref<5x256x256xbf16, #tpu.memory_space<vmem>>, vector<1x256x256xbf16>
    %148 = vector.shape_cast %147 : vector<1x256x256xbf16> to vector<256x256xbf16>
    %c1_98 = arith.constant 1 : index
    %c0_99 = arith.constant 0 : index
    %c0_100 = arith.constant 0 : index
    %149 = vector.load %arg9[%c1_98, %c0_99, %c0_100] : memref<5x1x256xf32, #tpu.memory_space<vmem>>, vector<1x1x256xf32>
    %150 = vector.shape_cast %149 : vector<1x1x256xf32> to vector<1x256xf32>
    %cst_101 = arith.constant dense<0.000000e+00> : vector<16x256xf32>
    %151 = tpu.matmul %146, %148, %cst_101 {dimension_numbers = #tpu.dot_dimension_numbers<[1], [0], [0], [1], [0, 0, 1, 1], [], []>} : vector<16x256xbf16>, vector<256x256xbf16>, vector<16x256xf32> -> vector<16x256xf32>
    %152 = vector.broadcast %150 : vector<1x256xf32> to vector<16x256xf32>
    %153 = arith.addf %151, %152 : vector<16x256xf32>
    %cst_102 = arith.constant 5.000000e-01 : f32
    %154 = vector.broadcast %cst_102 : f32 to vector<16x256xf32>
    %155 = arith.mulf %154, %153 : vector<16x256xf32>
    %156 = math.tanh %155 : vector<16x256xf32>
    %cst_103 = arith.constant 5.000000e-01 : f32
    %157 = vector.broadcast %cst_103 : f32 to vector<16x256xf32>
    %158 = arith.mulf %157, %153 : vector<16x256xf32>
    %cst_104 = arith.constant 1.000000e+00 : f32
    %159 = vector.broadcast %cst_104 : f32 to vector<16x256xf32>
    %160 = arith.addf %159, %156 : vector<16x256xf32>
    %161 = arith.mulf %158, %160 : vector<16x256xf32>
    %162 = arith.truncf %161 : vector<16x256xf32> to vector<16x256xbf16>
    %c1_105 = arith.constant 1 : index
    %c0_106 = arith.constant 0 : index
    %c0_107 = arith.constant 0 : index
    %163 = vector.load %arg10[%c1_105, %c0_106, %c0_107] : memref<5x256x128xbf16, #tpu.memory_space<vmem>>, vector<1x256x128xbf16>
    %164 = vector.shape_cast %163 : vector<1x256x128xbf16> to vector<256x128xbf16>
    %cst_108 = arith.constant dense<0.000000e+00> : vector<16x128xf32>
    %165 = tpu.matmul %162, %164, %cst_108 {dimension_numbers = #tpu.dot_dimension_numbers<[1], [0], [0], [1], [0, 0, 1, 1], [], []>} : vector<16x256xbf16>, vector<256x128xbf16>, vector<16x128xf32> -> vector<16x128xf32>
    %c1_109 = arith.constant 1 : index
    %c0_110 = arith.constant 0 : index
    %c0_111 = arith.constant 0 : index
    %166 = vector.load %arg11[%c1_109, %c0_110, %c0_111] : memref<5x1x128xf32, #tpu.memory_space<vmem>>, vector<1x1x128xf32>
    %167 = vector.shape_cast %166 : vector<1x1x128xf32> to vector<1x128xf32>
    %168 = vector.broadcast %167 : vector<1x128xf32> to vector<16x128xf32>
    %169 = arith.addf %165, %168 : vector<16x128xf32>
    %170 = vector.extract_strided_slice %169 {offsets = [0, 0], sizes = [16, 12], strides = [1, 1]} : vector<16x128xf32> to vector<16x12xf32>
    %c1_112 = arith.constant 1 : index
    %c0_113 = arith.constant 0 : index
    %c0_114 = arith.constant 0 : index
    %171 = vector.load %arg15[%c1_112, %c0_113, %c0_114] : memref<5x16x12xf32, #tpu.memory_space<vmem>>, vector<1x16x12xf32>
    %172 = vector.shape_cast %171 : vector<1x16x12xf32> to vector<16x12xf32>
    %173 = vector.shape_cast %170 : vector<16x12xf32> to vector<1x16x12xf32>
    tpu.vector_store %arg15[%c1_112, %c0_113, %c0_114], %173 {strides = array<i32>} : memref<5x16x12xf32, #tpu.memory_space<vmem>>, vector<1x16x12xf32>,
    %174 = vector.extract_strided_slice %169 {offsets = [0, 12], sizes = [16, 12], strides = [1, 1]} : vector<16x128xf32> to vector<16x12xf32>
    %175 = vector.broadcast %0 : vector<1x12xf32> to vector<16x12xf32>
    %176 = arith.subf %174, %175 : vector<16x12xf32>
    %cst_115 = arith.constant 5.000000e-01 : f32
    %177 = vector.broadcast %cst_115 : f32 to vector<16x12xf32>
    %178 = arith.mulf %177, %176 : vector<16x12xf32>
    %179 = math.tanh %178 : vector<16x12xf32>
    %cst_116 = arith.constant 1.000000e+00 : f32
    %180 = vector.broadcast %cst_116 : f32 to vector<16x12xf32>
    %181 = arith.addf %180, %179 : vector<16x12xf32>
    %cst_117 = arith.constant 5.000000e-01 : f32
    %182 = vector.broadcast %cst_117 : f32 to vector<16x12xf32>
    %183 = arith.mulf %182, %181 : vector<16x12xf32>
    %184 = vector.broadcast %1 : vector<1x12xf32> to vector<16x12xf32>
    %185 = arith.mulf %184, %183 : vector<16x12xf32>
    %186 = vector.broadcast %2 : vector<1x12xf32> to vector<16x12xf32>
    %187 = arith.addf %186, %185 : vector<16x12xf32>
    %c1_118 = arith.constant 1 : index
    %c0_119 = arith.constant 0 : index
    %c0_120 = arith.constant 0 : index
    %188 = vector.load %arg16[%c1_118, %c0_119, %c0_120] : memref<5x16x12xf32, #tpu.memory_space<vmem>>, vector<1x16x12xf32>
    %189 = vector.shape_cast %188 : vector<1x16x12xf32> to vector<16x12xf32>
    %190 = vector.shape_cast %187 : vector<16x12xf32> to vector<1x16x12xf32>
    tpu.vector_store %arg16[%c1_118, %c0_119, %c0_120], %190 {strides = array<i32>} : memref<5x16x12xf32, #tpu.memory_space<vmem>>, vector<1x16x12xf32>,
    %c2 = arith.constant 2 : index
    %c0_121 = arith.constant 0 : index
    %c0_122 = arith.constant 0 : index
    %191 = vector.load %arg1[%c2, %c0_121, %c0_122] : memref<5x16x14xbf16, #tpu.memory_space<vmem>>, vector<1x16x14xbf16>
    %192 = vector.shape_cast %191 : vector<1x16x14xbf16> to vector<16x14xbf16>
    %c2_123 = arith.constant 2 : index
    %c0_124 = arith.constant 0 : index
    %c0_125 = arith.constant 0 : index
    %193 = vector.load %arg2[%c2_123, %c0_124, %c0_125] : memref<5x14x256xbf16, #tpu.memory_space<vmem>>, vector<1x14x256xbf16>
    %194 = vector.shape_cast %193 : vector<1x14x256xbf16> to vector<14x256xbf16>
    %c2_126 = arith.constant 2 : index
    %c0_127 = arith.constant 0 : index
    %c0_128 = arith.constant 0 : index
    %195 = vector.load %arg3[%c2_126, %c0_127, %c0_128] : memref<5x1x256xf32, #tpu.memory_space<vmem>>, vector<1x1x256xf32>
    %196 = vector.shape_cast %195 : vector<1x1x256xf32> to vector<1x256xf32>
    %cst_129 = arith.constant dense<0.000000e+00> : vector<16x256xf32>
    %197 = tpu.matmul %192, %194, %cst_129 {dimension_numbers = #tpu.dot_dimension_numbers<[1], [0], [0], [1], [0, 0, 1, 1], [], []>} : vector<16x14xbf16>, vector<14x256xbf16>, vector<16x256xf32> -> vector<16x256xf32>
    %198 = vector.broadcast %196 : vector<1x256xf32> to vector<16x256xf32>
    %199 = arith.addf %197, %198 : vector<16x256xf32>
    %cst_130 = arith.constant 5.000000e-01 : f32
    %200 = vector.broadcast %cst_130 : f32 to vector<16x256xf32>
    %201 = arith.mulf %200, %199 : vector<16x256xf32>
    %202 = math.tanh %201 : vector<16x256xf32>
    %cst_131 = arith.constant 5.000000e-01 : f32
    %203 = vector.broadcast %cst_131 : f32 to vector<16x256xf32>
    %204 = arith.mulf %203, %199 : vector<16x256xf32>
    %cst_132 = arith.constant 1.000000e+00 : f32
    %205 = vector.broadcast %cst_132 : f32 to vector<16x256xf32>
    %206 = arith.addf %205, %202 : vector<16x256xf32>
    %207 = arith.mulf %204, %206 : vector<16x256xf32>
    %208 = arith.truncf %207 : vector<16x256xf32> to vector<16x256xbf16>
    %c2_133 = arith.constant 2 : index
    %c0_134 = arith.constant 0 : index
    %c0_135 = arith.constant 0 : index
    %209 = vector.load %arg4[%c2_133, %c0_134, %c0_135] : memref<5x256x256xbf16, #tpu.memory_space<vmem>>, vector<1x256x256xbf16>
    %210 = vector.shape_cast %209 : vector<1x256x256xbf16> to vector<256x256xbf16>
    %c2_136 = arith.constant 2 : index
    %c0_137 = arith.constant 0 : index
    %c0_138 = arith.constant 0 : index
    %211 = vector.load %arg5[%c2_136, %c0_137, %c0_138] : memref<5x1x256xf32, #tpu.memory_space<vmem>>, vector<1x1x256xf32>
    %212 = vector.shape_cast %211 : vector<1x1x256xf32> to vector<1x256xf32>
    %cst_139 = arith.constant dense<0.000000e+00> : vector<16x256xf32>
    %213 = tpu.matmul %208, %210, %cst_139 {dimension_numbers = #tpu.dot_dimension_numbers<[1], [0], [0], [1], [0, 0, 1, 1], [], []>} : vector<16x256xbf16>, vector<256x256xbf16>, vector<16x256xf32> -> vector<16x256xf32>
    %214 = vector.broadcast %212 : vector<1x256xf32> to vector<16x256xf32>
    %215 = arith.addf %213, %214 : vector<16x256xf32>
    %cst_140 = arith.constant 5.000000e-01 : f32
    %216 = vector.broadcast %cst_140 : f32 to vector<16x256xf32>
    %217 = arith.mulf %216, %215 : vector<16x256xf32>
    %218 = math.tanh %217 : vector<16x256xf32>
    %cst_141 = arith.constant 5.000000e-01 : f32
    %219 = vector.broadcast %cst_141 : f32 to vector<16x256xf32>
    %220 = arith.mulf %219, %215 : vector<16x256xf32>
    %cst_142 = arith.constant 1.000000e+00 : f32
    %221 = vector.broadcast %cst_142 : f32 to vector<16x256xf32>
    %222 = arith.addf %221, %218 : vector<16x256xf32>
    %223 = arith.mulf %220, %222 : vector<16x256xf32>
    %224 = arith.truncf %223 : vector<16x256xf32> to vector<16x256xbf16>
    %c2_143 = arith.constant 2 : index
    %c0_144 = arith.constant 0 : index
    %c0_145 = arith.constant 0 : index
    %225 = vector.load %arg6[%c2_143, %c0_144, %c0_145] : memref<5x256x256xbf16, #tpu.memory_space<vmem>>, vector<1x256x256xbf16>
    %226 = vector.shape_cast %225 : vector<1x256x256xbf16> to vector<256x256xbf16>
    %c2_146 = arith.constant 2 : index
    %c0_147 = arith.constant 0 : index
    %c0_148 = arith.constant 0 : index
    %227 = vector.load %arg7[%c2_146, %c0_147, %c0_148] : memref<5x1x256xf32, #tpu.memory_space<vmem>>, vector<1x1x256xf32>
    %228 = vector.shape_cast %227 : vector<1x1x256xf32> to vector<1x256xf32>
    %cst_149 = arith.constant dense<0.000000e+00> : vector<16x256xf32>
    %229 = tpu.matmul %224, %226, %cst_149 {dimension_numbers = #tpu.dot_dimension_numbers<[1], [0], [0], [1], [0, 0, 1, 1], [], []>} : vector<16x256xbf16>, vector<256x256xbf16>, vector<16x256xf32> -> vector<16x256xf32>
    %230 = vector.broadcast %228 : vector<1x256xf32> to vector<16x256xf32>
    %231 = arith.addf %229, %230 : vector<16x256xf32>
    %cst_150 = arith.constant 5.000000e-01 : f32
    %232 = vector.broadcast %cst_150 : f32 to vector<16x256xf32>
    %233 = arith.mulf %232, %231 : vector<16x256xf32>
    %234 = math.tanh %233 : vector<16x256xf32>
    %cst_151 = arith.constant 5.000000e-01 : f32
    %235 = vector.broadcast %cst_151 : f32 to vector<16x256xf32>
    %236 = arith.mulf %235, %231 : vector<16x256xf32>
    %cst_152 = arith.constant 1.000000e+00 : f32
    %237 = vector.broadcast %cst_152 : f32 to vector<16x256xf32>
    %238 = arith.addf %237, %234 : vector<16x256xf32>
    %239 = arith.mulf %236, %238 : vector<16x256xf32>
    %240 = arith.truncf %239 : vector<16x256xf32> to vector<16x256xbf16>
    %c2_153 = arith.constant 2 : index
    %c0_154 = arith.constant 0 : index
    %c0_155 = arith.constant 0 : index
    %241 = vector.load %arg8[%c2_153, %c0_154, %c0_155] : memref<5x256x256xbf16, #tpu.memory_space<vmem>>, vector<1x256x256xbf16>
    %242 = vector.shape_cast %241 : vector<1x256x256xbf16> to vector<256x256xbf16>
    %c2_156 = arith.constant 2 : index
    %c0_157 = arith.constant 0 : index
    %c0_158 = arith.constant 0 : index
    %243 = vector.load %arg9[%c2_156, %c0_157, %c0_158] : memref<5x1x256xf32, #tpu.memory_space<vmem>>, vector<1x1x256xf32>
    %244 = vector.shape_cast %243 : vector<1x1x256xf32> to vector<1x256xf32>
    %cst_159 = arith.constant dense<0.000000e+00> : vector<16x256xf32>
    %245 = tpu.matmul %240, %242, %cst_159 {dimension_numbers = #tpu.dot_dimension_numbers<[1], [0], [0], [1], [0, 0, 1, 1], [], []>} : vector<16x256xbf16>, vector<256x256xbf16>, vector<16x256xf32> -> vector<16x256xf32>
    %246 = vector.broadcast %244 : vector<1x256xf32> to vector<16x256xf32>
    %247 = arith.addf %245, %246 : vector<16x256xf32>
    %cst_160 = arith.constant 5.000000e-01 : f32
    %248 = vector.broadcast %cst_160 : f32 to vector<16x256xf32>
    %249 = arith.mulf %248, %247 : vector<16x256xf32>
    %250 = math.tanh %249 : vector<16x256xf32>
    %cst_161 = arith.constant 5.000000e-01 : f32
    %251 = vector.broadcast %cst_161 : f32 to vector<16x256xf32>
    %252 = arith.mulf %251, %247 : vector<16x256xf32>
    %cst_162 = arith.constant 1.000000e+00 : f32
    %253 = vector.broadcast %cst_162 : f32 to vector<16x256xf32>
    %254 = arith.addf %253, %250 : vector<16x256xf32>
    %255 = arith.mulf %252, %254 : vector<16x256xf32>
    %256 = arith.truncf %255 : vector<16x256xf32> to vector<16x256xbf16>
    %c2_163 = arith.constant 2 : index
    %c0_164 = arith.constant 0 : index
    %c0_165 = arith.constant 0 : index
    %257 = vector.load %arg10[%c2_163, %c0_164, %c0_165] : memref<5x256x128xbf16, #tpu.memory_space<vmem>>, vector<1x256x128xbf16>
    %258 = vector.shape_cast %257 : vector<1x256x128xbf16> to vector<256x128xbf16>
    %cst_166 = arith.constant dense<0.000000e+00> : vector<16x128xf32>
    %259 = tpu.matmul %256, %258, %cst_166 {dimension_numbers = #tpu.dot_dimension_numbers<[1], [0], [0], [1], [0, 0, 1, 1], [], []>} : vector<16x256xbf16>, vector<256x128xbf16>, vector<16x128xf32> -> vector<16x128xf32>
    %c2_167 = arith.constant 2 : index
    %c0_168 = arith.constant 0 : index
    %c0_169 = arith.constant 0 : index
    %260 = vector.load %arg11[%c2_167, %c0_168, %c0_169] : memref<5x1x128xf32, #tpu.memory_space<vmem>>, vector<1x1x128xf32>
    %261 = vector.shape_cast %260 : vector<1x1x128xf32> to vector<1x128xf32>
    %262 = vector.broadcast %261 : vector<1x128xf32> to vector<16x128xf32>
    %263 = arith.addf %259, %262 : vector<16x128xf32>
    %264 = vector.extract_strided_slice %263 {offsets = [0, 0], sizes = [16, 12], strides = [1, 1]} : vector<16x128xf32> to vector<16x12xf32>
    %c2_170 = arith.constant 2 : index
    %c0_171 = arith.constant 0 : index
    %c0_172 = arith.constant 0 : index
    %265 = vector.load %arg15[%c2_170, %c0_171, %c0_172] : memref<5x16x12xf32, #tpu.memory_space<vmem>>, vector<1x16x12xf32>
    %266 = vector.shape_cast %265 : vector<1x16x12xf32> to vector<16x12xf32>
    %267 = vector.shape_cast %264 : vector<16x12xf32> to vector<1x16x12xf32>
    tpu.vector_store %arg15[%c2_170, %c0_171, %c0_172], %267 {strides = array<i32>} : memref<5x16x12xf32, #tpu.memory_space<vmem>>, vector<1x16x12xf32>,
    %268 = vector.extract_strided_slice %263 {offsets = [0, 12], sizes = [16, 12], strides = [1, 1]} : vector<16x128xf32> to vector<16x12xf32>
    %269 = vector.broadcast %0 : vector<1x12xf32> to vector<16x12xf32>
    %270 = arith.subf %268, %269 : vector<16x12xf32>
    %cst_173 = arith.constant 5.000000e-01 : f32
    %271 = vector.broadcast %cst_173 : f32 to vector<16x12xf32>
    %272 = arith.mulf %271, %270 : vector<16x12xf32>
    %273 = math.tanh %272 : vector<16x12xf32>
    %cst_174 = arith.constant 1.000000e+00 : f32
    %274 = vector.broadcast %cst_174 : f32 to vector<16x12xf32>
    %275 = arith.addf %274, %273 : vector<16x12xf32>
    %cst_175 = arith.constant 5.000000e-01 : f32
    %276 = vector.broadcast %cst_175 : f32 to vector<16x12xf32>
    %277 = arith.mulf %276, %275 : vector<16x12xf32>
    %278 = vector.broadcast %1 : vector<1x12xf32> to vector<16x12xf32>
    %279 = arith.mulf %278, %277 : vector<16x12xf32>
    %280 = vector.broadcast %2 : vector<1x12xf32> to vector<16x12xf32>
    %281 = arith.addf %280, %279 : vector<16x12xf32>
    %c2_176 = arith.constant 2 : index
    %c0_177 = arith.constant 0 : index
    %c0_178 = arith.constant 0 : index
    %282 = vector.load %arg16[%c2_176, %c0_177, %c0_178] : memref<5x16x12xf32, #tpu.memory_space<vmem>>, vector<1x16x12xf32>
    %283 = vector.shape_cast %282 : vector<1x16x12xf32> to vector<16x12xf32>
    %284 = vector.shape_cast %281 : vector<16x12xf32> to vector<1x16x12xf32>
    tpu.vector_store %arg16[%c2_176, %c0_177, %c0_178], %284 {strides = array<i32>} : memref<5x16x12xf32, #tpu.memory_space<vmem>>, vector<1x16x12xf32>,
    %c3 = arith.constant 3 : index
    %c0_179 = arith.constant 0 : index
    %c0_180 = arith.constant 0 : index
    %285 = vector.load %arg1[%c3, %c0_179, %c0_180] : memref<5x16x14xbf16, #tpu.memory_space<vmem>>, vector<1x16x14xbf16>
    %286 = vector.shape_cast %285 : vector<1x16x14xbf16> to vector<16x14xbf16>
    %c3_181 = arith.constant 3 : index
    %c0_182 = arith.constant 0 : index
    %c0_183 = arith.constant 0 : index
    %287 = vector.load %arg2[%c3_181, %c0_182, %c0_183] : memref<5x14x256xbf16, #tpu.memory_space<vmem>>, vector<1x14x256xbf16>
    %288 = vector.shape_cast %287 : vector<1x14x256xbf16> to vector<14x256xbf16>
    %c3_184 = arith.constant 3 : index
    %c0_185 = arith.constant 0 : index
    %c0_186 = arith.constant 0 : index
    %289 = vector.load %arg3[%c3_184, %c0_185, %c0_186] : memref<5x1x256xf32, #tpu.memory_space<vmem>>, vector<1x1x256xf32>
    %290 = vector.shape_cast %289 : vector<1x1x256xf32> to vector<1x256xf32>
    %cst_187 = arith.constant dense<0.000000e+00> : vector<16x256xf32>
    %291 = tpu.matmul %286, %288, %cst_187 {dimension_numbers = #tpu.dot_dimension_numbers<[1], [0], [0], [1], [0, 0, 1, 1], [], []>} : vector<16x14xbf16>, vector<14x256xbf16>, vector<16x256xf32> -> vector<16x256xf32>
    %292 = vector.broadcast %290 : vector<1x256xf32> to vector<16x256xf32>
    %293 = arith.addf %291, %292 : vector<16x256xf32>
    %cst_188 = arith.constant 5.000000e-01 : f32
    %294 = vector.broadcast %cst_188 : f32 to vector<16x256xf32>
    %295 = arith.mulf %294, %293 : vector<16x256xf32>
    %296 = math.tanh %295 : vector<16x256xf32>
    %cst_189 = arith.constant 5.000000e-01 : f32
    %297 = vector.broadcast %cst_189 : f32 to vector<16x256xf32>
    %298 = arith.mulf %297, %293 : vector<16x256xf32>
    %cst_190 = arith.constant 1.000000e+00 : f32
    %299 = vector.broadcast %cst_190 : f32 to vector<16x256xf32>
    %300 = arith.addf %299, %296 : vector<16x256xf32>
    %301 = arith.mulf %298, %300 : vector<16x256xf32>
    %302 = arith.truncf %301 : vector<16x256xf32> to vector<16x256xbf16>
    %c3_191 = arith.constant 3 : index
    %c0_192 = arith.constant 0 : index
    %c0_193 = arith.constant 0 : index
    %303 = vector.load %arg4[%c3_191, %c0_192, %c0_193] : memref<5x256x256xbf16, #tpu.memory_space<vmem>>, vector<1x256x256xbf16>
    %304 = vector.shape_cast %303 : vector<1x256x256xbf16> to vector<256x256xbf16>
    %c3_194 = arith.constant 3 : index
    %c0_195 = arith.constant 0 : index
    %c0_196 = arith.constant 0 : index
    %305 = vector.load %arg5[%c3_194, %c0_195, %c0_196] : memref<5x1x256xf32, #tpu.memory_space<vmem>>, vector<1x1x256xf32>
    %306 = vector.shape_cast %305 : vector<1x1x256xf32> to vector<1x256xf32>
    %cst_197 = arith.constant dense<0.000000e+00> : vector<16x256xf32>
    %307 = tpu.matmul %302, %304, %cst_197 {dimension_numbers = #tpu.dot_dimension_numbers<[1], [0], [0], [1], [0, 0, 1, 1], [], []>} : vector<16x256xbf16>, vector<256x256xbf16>, vector<16x256xf32> -> vector<16x256xf32>
    %308 = vector.broadcast %306 : vector<1x256xf32> to vector<16x256xf32>
    %309 = arith.addf %307, %308 : vector<16x256xf32>
    %cst_198 = arith.constant 5.000000e-01 : f32
    %310 = vector.broadcast %cst_198 : f32 to vector<16x256xf32>
    %311 = arith.mulf %310, %309 : vector<16x256xf32>
    %312 = math.tanh %311 : vector<16x256xf32>
    %cst_199 = arith.constant 5.000000e-01 : f32
    %313 = vector.broadcast %cst_199 : f32 to vector<16x256xf32>
    %314 = arith.mulf %313, %309 : vector<16x256xf32>
    %cst_200 = arith.constant 1.000000e+00 : f32
    %315 = vector.broadcast %cst_200 : f32 to vector<16x256xf32>
    %316 = arith.addf %315, %312 : vector<16x256xf32>
    %317 = arith.mulf %314, %316 : vector<16x256xf32>
    %318 = arith.truncf %317 : vector<16x256xf32> to vector<16x256xbf16>
    %c3_201 = arith.constant 3 : index
    %c0_202 = arith.constant 0 : index
    %c0_203 = arith.constant 0 : index
    %319 = vector.load %arg6[%c3_201, %c0_202, %c0_203] : memref<5x256x256xbf16, #tpu.memory_space<vmem>>, vector<1x256x256xbf16>
    %320 = vector.shape_cast %319 : vector<1x256x256xbf16> to vector<256x256xbf16>
    %c3_204 = arith.constant 3 : index
    %c0_205 = arith.constant 0 : index
    %c0_206 = arith.constant 0 : index
    %321 = vector.load %arg7[%c3_204, %c0_205, %c0_206] : memref<5x1x256xf32, #tpu.memory_space<vmem>>, vector<1x1x256xf32>
    %322 = vector.shape_cast %321 : vector<1x1x256xf32> to vector<1x256xf32>
    %cst_207 = arith.constant dense<0.000000e+00> : vector<16x256xf32>
    %323 = tpu.matmul %318, %320, %cst_207 {dimension_numbers = #tpu.dot_dimension_numbers<[1], [0], [0], [1], [0, 0, 1, 1], [], []>} : vector<16x256xbf16>, vector<256x256xbf16>, vector<16x256xf32> -> vector<16x256xf32>
    %324 = vector.broadcast %322 : vector<1x256xf32> to vector<16x256xf32>
    %325 = arith.addf %323, %324 : vector<16x256xf32>
    %cst_208 = arith.constant 5.000000e-01 : f32
    %326 = vector.broadcast %cst_208 : f32 to vector<16x256xf32>
    %327 = arith.mulf %326, %325 : vector<16x256xf32>
    %328 = math.tanh %327 : vector<16x256xf32>
    %cst_209 = arith.constant 5.000000e-01 : f32
    %329 = vector.broadcast %cst_209 : f32 to vector<16x256xf32>
    %330 = arith.mulf %329, %325 : vector<16x256xf32>
    %cst_210 = arith.constant 1.000000e+00 : f32
    %331 = vector.broadcast %cst_210 : f32 to vector<16x256xf32>
    %332 = arith.addf %331, %328 : vector<16x256xf32>
    %333 = arith.mulf %330, %332 : vector<16x256xf32>
    %334 = arith.truncf %333 : vector<16x256xf32> to vector<16x256xbf16>
    %c3_211 = arith.constant 3 : index
    %c0_212 = arith.constant 0 : index
    %c0_213 = arith.constant 0 : index
    %335 = vector.load %arg8[%c3_211, %c0_212, %c0_213] : memref<5x256x256xbf16, #tpu.memory_space<vmem>>, vector<1x256x256xbf16>
    %336 = vector.shape_cast %335 : vector<1x256x256xbf16> to vector<256x256xbf16>
    %c3_214 = arith.constant 3 : index
    %c0_215 = arith.constant 0 : index
    %c0_216 = arith.constant 0 : index
    %337 = vector.load %arg9[%c3_214, %c0_215, %c0_216] : memref<5x1x256xf32, #tpu.memory_space<vmem>>, vector<1x1x256xf32>
    %338 = vector.shape_cast %337 : vector<1x1x256xf32> to vector<1x256xf32>
    %cst_217 = arith.constant dense<0.000000e+00> : vector<16x256xf32>
    %339 = tpu.matmul %334, %336, %cst_217 {dimension_numbers = #tpu.dot_dimension_numbers<[1], [0], [0], [1], [0, 0, 1, 1], [], []>} : vector<16x256xbf16>, vector<256x256xbf16>, vector<16x256xf32> -> vector<16x256xf32>
    %340 = vector.broadcast %338 : vector<1x256xf32> to vector<16x256xf32>
    %341 = arith.addf %339, %340 : vector<16x256xf32>
    %cst_218 = arith.constant 5.000000e-01 : f32
    %342 = vector.broadcast %cst_218 : f32 to vector<16x256xf32>
    %343 = arith.mulf %342, %341 : vector<16x256xf32>
    %344 = math.tanh %343 : vector<16x256xf32>
    %cst_219 = arith.constant 5.000000e-01 : f32
    %345 = vector.broadcast %cst_219 : f32 to vector<16x256xf32>
    %346 = arith.mulf %345, %341 : vector<16x256xf32>
    %cst_220 = arith.constant 1.000000e+00 : f32
    %347 = vector.broadcast %cst_220 : f32 to vector<16x256xf32>
    %348 = arith.addf %347, %344 : vector<16x256xf32>
    %349 = arith.mulf %346, %348 : vector<16x256xf32>
    %350 = arith.truncf %349 : vector<16x256xf32> to vector<16x256xbf16>
    %c3_221 = arith.constant 3 : index
    %c0_222 = arith.constant 0 : index
    %c0_223 = arith.constant 0 : index
    %351 = vector.load %arg10[%c3_221, %c0_222, %c0_223] : memref<5x256x128xbf16, #tpu.memory_space<vmem>>, vector<1x256x128xbf16>
    %352 = vector.shape_cast %351 : vector<1x256x128xbf16> to vector<256x128xbf16>
    %cst_224 = arith.constant dense<0.000000e+00> : vector<16x128xf32>
    %353 = tpu.matmul %350, %352, %cst_224 {dimension_numbers = #tpu.dot_dimension_numbers<[1], [0], [0], [1], [0, 0, 1, 1], [], []>} : vector<16x256xbf16>, vector<256x128xbf16>, vector<16x128xf32> -> vector<16x128xf32>
    %c3_225 = arith.constant 3 : index
    %c0_226 = arith.constant 0 : index
    %c0_227 = arith.constant 0 : index
    %354 = vector.load %arg11[%c3_225, %c0_226, %c0_227] : memref<5x1x128xf32, #tpu.memory_space<vmem>>, vector<1x1x128xf32>
    %355 = vector.shape_cast %354 : vector<1x1x128xf32> to vector<1x128xf32>
    %356 = vector.broadcast %355 : vector<1x128xf32> to vector<16x128xf32>
    %357 = arith.addf %353, %356 : vector<16x128xf32>
    %358 = vector.extract_strided_slice %357 {offsets = [0, 0], sizes = [16, 12], strides = [1, 1]} : vector<16x128xf32> to vector<16x12xf32>
    %c3_228 = arith.constant 3 : index
    %c0_229 = arith.constant 0 : index
    %c0_230 = arith.constant 0 : index
    %359 = vector.load %arg15[%c3_228, %c0_229, %c0_230] : memref<5x16x12xf32, #tpu.memory_space<vmem>>, vector<1x16x12xf32>
    %360 = vector.shape_cast %359 : vector<1x16x12xf32> to vector<16x12xf32>
    %361 = vector.shape_cast %358 : vector<16x12xf32> to vector<1x16x12xf32>
    tpu.vector_store %arg15[%c3_228, %c0_229, %c0_230], %361 {strides = array<i32>} : memref<5x16x12xf32, #tpu.memory_space<vmem>>, vector<1x16x12xf32>,
    %362 = vector.extract_strided_slice %357 {offsets = [0, 12], sizes = [16, 12], strides = [1, 1]} : vector<16x128xf32> to vector<16x12xf32>
    %363 = vector.broadcast %0 : vector<1x12xf32> to vector<16x12xf32>
    %364 = arith.subf %362, %363 : vector<16x12xf32>
    %cst_231 = arith.constant 5.000000e-01 : f32
    %365 = vector.broadcast %cst_231 : f32 to vector<16x12xf32>
    %366 = arith.mulf %365, %364 : vector<16x12xf32>
    %367 = math.tanh %366 : vector<16x12xf32>
    %cst_232 = arith.constant 1.000000e+00 : f32
    %368 = vector.broadcast %cst_232 : f32 to vector<16x12xf32>
    %369 = arith.addf %368, %367 : vector<16x12xf32>
    %cst_233 = arith.constant 5.000000e-01 : f32
    %370 = vector.broadcast %cst_233 : f32 to vector<16x12xf32>
    %371 = arith.mulf %370, %369 : vector<16x12xf32>
    %372 = vector.broadcast %1 : vector<1x12xf32> to vector<16x12xf32>
    %373 = arith.mulf %372, %371 : vector<16x12xf32>
    %374 = vector.broadcast %2 : vector<1x12xf32> to vector<16x12xf32>
    %375 = arith.addf %374, %373 : vector<16x12xf32>
    %c3_234 = arith.constant 3 : index
    %c0_235 = arith.constant 0 : index
    %c0_236 = arith.constant 0 : index
    %376 = vector.load %arg16[%c3_234, %c0_235, %c0_236] : memref<5x16x12xf32, #tpu.memory_space<vmem>>, vector<1x16x12xf32>
    %377 = vector.shape_cast %376 : vector<1x16x12xf32> to vector<16x12xf32>
    %378 = vector.shape_cast %375 : vector<16x12xf32> to vector<1x16x12xf32>
    tpu.vector_store %arg16[%c3_234, %c0_235, %c0_236], %378 {strides = array<i32>} : memref<5x16x12xf32, #tpu.memory_space<vmem>>, vector<1x16x12xf32>,
    %c4 = arith.constant 4 : index
    %c0_237 = arith.constant 0 : index
    %c0_238 = arith.constant 0 : index
    %379 = vector.load %arg1[%c4, %c0_237, %c0_238] : memref<5x16x14xbf16, #tpu.memory_space<vmem>>, vector<1x16x14xbf16>
    %380 = vector.shape_cast %379 : vector<1x16x14xbf16> to vector<16x14xbf16>
    %c4_239 = arith.constant 4 : index
    %c0_240 = arith.constant 0 : index
    %c0_241 = arith.constant 0 : index
    %381 = vector.load %arg2[%c4_239, %c0_240, %c0_241] : memref<5x14x256xbf16, #tpu.memory_space<vmem>>, vector<1x14x256xbf16>
    %382 = vector.shape_cast %381 : vector<1x14x256xbf16> to vector<14x256xbf16>
    %c4_242 = arith.constant 4 : index
    %c0_243 = arith.constant 0 : index
    %c0_244 = arith.constant 0 : index
    %383 = vector.load %arg3[%c4_242, %c0_243, %c0_244] : memref<5x1x256xf32, #tpu.memory_space<vmem>>, vector<1x1x256xf32>
    %384 = vector.shape_cast %383 : vector<1x1x256xf32> to vector<1x256xf32>
    %cst_245 = arith.constant dense<0.000000e+00> : vector<16x256xf32>
    %385 = tpu.matmul %380, %382, %cst_245 {dimension_numbers = #tpu.dot_dimension_numbers<[1], [0], [0], [1], [0, 0, 1, 1], [], []>} : vector<16x14xbf16>, vector<14x256xbf16>, vector<16x256xf32> -> vector<16x256xf32>
    %386 = vector.broadcast %384 : vector<1x256xf32> to vector<16x256xf32>
    %387 = arith.addf %385, %386 : vector<16x256xf32>
    %cst_246 = arith.constant 5.000000e-01 : f32
    %388 = vector.broadcast %cst_246 : f32 to vector<16x256xf32>
    %389 = arith.mulf %388, %387 : vector<16x256xf32>
    %390 = math.tanh %389 : vector<16x256xf32>
    %cst_247 = arith.constant 5.000000e-01 : f32
    %391 = vector.broadcast %cst_247 : f32 to vector<16x256xf32>
    %392 = arith.mulf %391, %387 : vector<16x256xf32>
    %cst_248 = arith.constant 1.000000e+00 : f32
    %393 = vector.broadcast %cst_248 : f32 to vector<16x256xf32>
    %394 = arith.addf %393, %390 : vector<16x256xf32>
    %395 = arith.mulf %392, %394 : vector<16x256xf32>
    %396 = arith.truncf %395 : vector<16x256xf32> to vector<16x256xbf16>
    %c4_249 = arith.constant 4 : index
    %c0_250 = arith.constant 0 : index
    %c0_251 = arith.constant 0 : index
    %397 = vector.load %arg4[%c4_249, %c0_250, %c0_251] : memref<5x256x256xbf16, #tpu.memory_space<vmem>>, vector<1x256x256xbf16>
    %398 = vector.shape_cast %397 : vector<1x256x256xbf16> to vector<256x256xbf16>
    %c4_252 = arith.constant 4 : index
    %c0_253 = arith.constant 0 : index
    %c0_254 = arith.constant 0 : index
    %399 = vector.load %arg5[%c4_252, %c0_253, %c0_254] : memref<5x1x256xf32, #tpu.memory_space<vmem>>, vector<1x1x256xf32>
    %400 = vector.shape_cast %399 : vector<1x1x256xf32> to vector<1x256xf32>
    %cst_255 = arith.constant dense<0.000000e+00> : vector<16x256xf32>
    %401 = tpu.matmul %396, %398, %cst_255 {dimension_numbers = #tpu.dot_dimension_numbers<[1], [0], [0], [1], [0, 0, 1, 1], [], []>} : vector<16x256xbf16>, vector<256x256xbf16>, vector<16x256xf32> -> vector<16x256xf32>
    %402 = vector.broadcast %400 : vector<1x256xf32> to vector<16x256xf32>
    %403 = arith.addf %401, %402 : vector<16x256xf32>
    %cst_256 = arith.constant 5.000000e-01 : f32
    %404 = vector.broadcast %cst_256 : f32 to vector<16x256xf32>
    %405 = arith.mulf %404, %403 : vector<16x256xf32>
    %406 = math.tanh %405 : vector<16x256xf32>
    %cst_257 = arith.constant 5.000000e-01 : f32
    %407 = vector.broadcast %cst_257 : f32 to vector<16x256xf32>
    %408 = arith.mulf %407, %403 : vector<16x256xf32>
    %cst_258 = arith.constant 1.000000e+00 : f32
    %409 = vector.broadcast %cst_258 : f32 to vector<16x256xf32>
    %410 = arith.addf %409, %406 : vector<16x256xf32>
    %411 = arith.mulf %408, %410 : vector<16x256xf32>
    %412 = arith.truncf %411 : vector<16x256xf32> to vector<16x256xbf16>
    %c4_259 = arith.constant 4 : index
    %c0_260 = arith.constant 0 : index
    %c0_261 = arith.constant 0 : index
    %413 = vector.load %arg6[%c4_259, %c0_260, %c0_261] : memref<5x256x256xbf16, #tpu.memory_space<vmem>>, vector<1x256x256xbf16>
    %414 = vector.shape_cast %413 : vector<1x256x256xbf16> to vector<256x256xbf16>
    %c4_262 = arith.constant 4 : index
    %c0_263 = arith.constant 0 : index
    %c0_264 = arith.constant 0 : index
    %415 = vector.load %arg7[%c4_262, %c0_263, %c0_264] : memref<5x1x256xf32, #tpu.memory_space<vmem>>, vector<1x1x256xf32>
    %416 = vector.shape_cast %415 : vector<1x1x256xf32> to vector<1x256xf32>
    %cst_265 = arith.constant dense<0.000000e+00> : vector<16x256xf32>
    %417 = tpu.matmul %412, %414, %cst_265 {dimension_numbers = #tpu.dot_dimension_numbers<[1], [0], [0], [1], [0, 0, 1, 1], [], []>} : vector<16x256xbf16>, vector<256x256xbf16>, vector<16x256xf32> -> vector<16x256xf32>
    %418 = vector.broadcast %416 : vector<1x256xf32> to vector<16x256xf32>
    %419 = arith.addf %417, %418 : vector<16x256xf32>
    %cst_266 = arith.constant 5.000000e-01 : f32
    %420 = vector.broadcast %cst_266 : f32 to vector<16x256xf32>
    %421 = arith.mulf %420, %419 : vector<16x256xf32>
    %422 = math.tanh %421 : vector<16x256xf32>
    %cst_267 = arith.constant 5.000000e-01 : f32
    %423 = vector.broadcast %cst_267 : f32 to vector<16x256xf32>
    %424 = arith.mulf %423, %419 : vector<16x256xf32>
    %cst_268 = arith.constant 1.000000e+00 : f32
    %425 = vector.broadcast %cst_268 : f32 to vector<16x256xf32>
    %426 = arith.addf %425, %422 : vector<16x256xf32>
    %427 = arith.mulf %424, %426 : vector<16x256xf32>
    %428 = arith.truncf %427 : vector<16x256xf32> to vector<16x256xbf16>
    %c4_269 = arith.constant 4 : index
    %c0_270 = arith.constant 0 : index
    %c0_271 = arith.constant 0 : index
    %429 = vector.load %arg8[%c4_269, %c0_270, %c0_271] : memref<5x256x256xbf16, #tpu.memory_space<vmem>>, vector<1x256x256xbf16>
    %430 = vector.shape_cast %429 : vector<1x256x256xbf16> to vector<256x256xbf16>
    %c4_272 = arith.constant 4 : index
    %c0_273 = arith.constant 0 : index
    %c0_274 = arith.constant 0 : index
    %431 = vector.load %arg9[%c4_272, %c0_273, %c0_274] : memref<5x1x256xf32, #tpu.memory_space<vmem>>, vector<1x1x256xf32>
    %432 = vector.shape_cast %431 : vector<1x1x256xf32> to vector<1x256xf32>
    %cst_275 = arith.constant dense<0.000000e+00> : vector<16x256xf32>
    %433 = tpu.matmul %428, %430, %cst_275 {dimension_numbers = #tpu.dot_dimension_numbers<[1], [0], [0], [1], [0, 0, 1, 1], [], []>} : vector<16x256xbf16>, vector<256x256xbf16>, vector<16x256xf32> -> vector<16x256xf32>
    %434 = vector.broadcast %432 : vector<1x256xf32> to vector<16x256xf32>
    %435 = arith.addf %433, %434 : vector<16x256xf32>
    %cst_276 = arith.constant 5.000000e-01 : f32
    %436 = vector.broadcast %cst_276 : f32 to vector<16x256xf32>
    %437 = arith.mulf %436, %435 : vector<16x256xf32>
    %438 = math.tanh %437 : vector<16x256xf32>
    %cst_277 = arith.constant 5.000000e-01 : f32
    %439 = vector.broadcast %cst_277 : f32 to vector<16x256xf32>
    %440 = arith.mulf %439, %435 : vector<16x256xf32>
    %cst_278 = arith.constant 1.000000e+00 : f32
    %441 = vector.broadcast %cst_278 : f32 to vector<16x256xf32>
    %442 = arith.addf %441, %438 : vector<16x256xf32>
    %443 = arith.mulf %440, %442 : vector<16x256xf32>
    %444 = arith.truncf %443 : vector<16x256xf32> to vector<16x256xbf16>
    %c4_279 = arith.constant 4 : index
    %c0_280 = arith.constant 0 : index
    %c0_281 = arith.constant 0 : index
    %445 = vector.load %arg10[%c4_279, %c0_280, %c0_281] : memref<5x256x128xbf16, #tpu.memory_space<vmem>>, vector<1x256x128xbf16>
    %446 = vector.shape_cast %445 : vector<1x256x128xbf16> to vector<256x128xbf16>
    %cst_282 = arith.constant dense<0.000000e+00> : vector<16x128xf32>
    %447 = tpu.matmul %444, %446, %cst_282 {dimension_numbers = #tpu.dot_dimension_numbers<[1], [0], [0], [1], [0, 0, 1, 1], [], []>} : vector<16x256xbf16>, vector<256x128xbf16>, vector<16x128xf32> -> vector<16x128xf32>
    %c4_283 = arith.constant 4 : index
    %c0_284 = arith.constant 0 : index
    %c0_285 = arith.constant 0 : index
    %448 = vector.load %arg11[%c4_283, %c0_284, %c0_285] : memref<5x1x128xf32, #tpu.memory_space<vmem>>, vector<1x1x128xf32>
    %449 = vector.shape_cast %448 : vector<1x1x128xf32> to vector<1x128xf32>
    %450 = vector.broadcast %449 : vector<1x128xf32> to vector<16x128xf32>
    %451 = arith.addf %447, %450 : vector<16x128xf32>
    %452 = vector.extract_strided_slice %451 {offsets = [0, 0], sizes = [16, 12], strides = [1, 1]} : vector<16x128xf32> to vector<16x12xf32>
    %c4_286 = arith.constant 4 : index
    %c0_287 = arith.constant 0 : index
    %c0_288 = arith.constant 0 : index
    %453 = vector.load %arg15[%c4_286, %c0_287, %c0_288] : memref<5x16x12xf32, #tpu.memory_space<vmem>>, vector<1x16x12xf32>
    %454 = vector.shape_cast %453 : vector<1x16x12xf32> to vector<16x12xf32>
    %455 = vector.shape_cast %452 : vector<16x12xf32> to vector<1x16x12xf32>
    tpu.vector_store %arg15[%c4_286, %c0_287, %c0_288], %455 {strides = array<i32>} : memref<5x16x12xf32, #tpu.memory_space<vmem>>, vector<1x16x12xf32>,
    %456 = vector.extract_strided_slice %451 {offsets = [0, 12], sizes = [16, 12], strides = [1, 1]} : vector<16x128xf32> to vector<16x12xf32>
    %457 = vector.broadcast %0 : vector<1x12xf32> to vector<16x12xf32>
    %458 = arith.subf %456, %457 : vector<16x12xf32>
    %cst_289 = arith.constant 5.000000e-01 : f32
    %459 = vector.broadcast %cst_289 : f32 to vector<16x12xf32>
    %460 = arith.mulf %459, %458 : vector<16x12xf32>
    %461 = math.tanh %460 : vector<16x12xf32>
    %cst_290 = arith.constant 1.000000e+00 : f32
    %462 = vector.broadcast %cst_290 : f32 to vector<16x12xf32>
    %463 = arith.addf %462, %461 : vector<16x12xf32>
    %cst_291 = arith.constant 5.000000e-01 : f32
    %464 = vector.broadcast %cst_291 : f32 to vector<16x12xf32>
    %465 = arith.mulf %464, %463 : vector<16x12xf32>
    %466 = vector.broadcast %1 : vector<1x12xf32> to vector<16x12xf32>
    %467 = arith.mulf %466, %465 : vector<16x12xf32>
    %468 = vector.broadcast %2 : vector<1x12xf32> to vector<16x12xf32>
    %469 = arith.addf %468, %467 : vector<16x12xf32>
    %c4_292 = arith.constant 4 : index
    %c0_293 = arith.constant 0 : index
    %c0_294 = arith.constant 0 : index
    %470 = vector.load %arg16[%c4_292, %c0_293, %c0_294] : memref<5x16x12xf32, #tpu.memory_space<vmem>>, vector<1x16x12xf32>
    %471 = vector.shape_cast %470 : vector<1x16x12xf32> to vector<16x12xf32>
    %472 = vector.shape_cast %469 : vector<16x12xf32> to vector<1x16x12xf32>
    tpu.vector_store %arg16[%c4_292, %c0_293, %c0_294], %472 {strides = array<i32>} : memref<5x16x12xf32, #tpu.memory_space<vmem>>, vector<1x16x12xf32>,
    return
  }
  func.func @transform_0(%arg0: i32) -> (i32, i32, i32) {
    %c0_i32 = arith.constant 0 : i32
    %c0_i32_0 = arith.constant 0 : i32
    %c0_i32_1 = arith.constant 0 : i32
    return %c0_i32, %arg0, %c0_i32_0 : i32, i32, i32
  }
  func.func @transform_1(%arg0: i32) -> (i32, i32, i32) {
    %c0_i32 = arith.constant 0 : i32
    %c0_i32_0 = arith.constant 0 : i32
    %c0_i32_1 = arith.constant 0 : i32
    %c0_i32_2 = arith.constant 0 : i32
    return %c0_i32, %c0_i32_0, %c0_i32_1 : i32, i32, i32
  }
  func.func @transform_2(%arg0: i32) -> (i32, i32, i32) {
    %c0_i32 = arith.constant 0 : i32
    %c0_i32_0 = arith.constant 0 : i32
    %c0_i32_1 = arith.constant 0 : i32
    %c0_i32_2 = arith.constant 0 : i32
    return %c0_i32, %c0_i32_0, %c0_i32_1 : i32, i32, i32
  }
  func.func @transform_3(%arg0: i32) -> (i32, i32, i32) {
    %c0_i32 = arith.constant 0 : i32
    %c0_i32_0 = arith.constant 0 : i32
    %c0_i32_1 = arith.constant 0 : i32
    %c0_i32_2 = arith.constant 0 : i32
    return %c0_i32, %c0_i32_0, %c0_i32_1 : i32, i32, i32
  }
  func.func @transform_4(%arg0: i32) -> (i32, i32, i32) {
    %c0_i32 = arith.constant 0 : i32
    %c0_i32_0 = arith.constant 0 : i32
    %c0_i32_1 = arith.constant 0 : i32
    %c0_i32_2 = arith.constant 0 : i32
    return %c0_i32, %c0_i32_0, %c0_i32_1 : i32, i32, i32
  }
  func.func @transform_5(%arg0: i32) -> (i32, i32, i32) {
    %c0_i32 = arith.constant 0 : i32
    %c0_i32_0 = arith.constant 0 : i32
    %c0_i32_1 = arith.constant 0 : i32
    %c0_i32_2 = arith.constant 0 : i32
    return %c0_i32, %c0_i32_0, %c0_i32_1 : i32, i32, i32
  }
  func.func @transform_6(%arg0: i32) -> (i32, i32, i32) {
    %c0_i32 = arith.constant 0 : i32
    %c0_i32_0 = arith.constant 0 : i32
    %c0_i32_1 = arith.constant 0 : i32
    %c0_i32_2 = arith.constant 0 : i32
    return %c0_i32, %c0_i32_0, %c0_i32_1 : i32, i32, i32
  }
  func.func @transform_7(%arg0: i32) -> (i32, i32, i32) {
    %c0_i32 = arith.constant 0 : i32
    %c0_i32_0 = arith.constant 0 : i32
    %c0_i32_1 = arith.constant 0 : i32
    %c0_i32_2 = arith.constant 0 : i32
    return %c0_i32, %c0_i32_0, %c0_i32_1 : i32, i32, i32
  }
  func.func @transform_8(%arg0: i32) -> (i32, i32, i32) {
    %c0_i32 = arith.constant 0 : i32
    %c0_i32_0 = arith.constant 0 : i32
    %c0_i32_1 = arith.constant 0 : i32
    %c0_i32_2 = arith.constant 0 : i32
    return %c0_i32, %c0_i32_0, %c0_i32_1 : i32, i32, i32
  }
  func.func @transform_9(%arg0: i32) -> (i32, i32, i32) {
    %c0_i32 = arith.constant 0 : i32
    %c0_i32_0 = arith.constant 0 : i32
    %c0_i32_1 = arith.constant 0 : i32
    %c0_i32_2 = arith.constant 0 : i32
    return %c0_i32, %c0_i32_0, %c0_i32_1 : i32, i32, i32
  }
  func.func @transform_10(%arg0: i32) -> (i32, i32, i32) {
    %c0_i32 = arith.constant 0 : i32
    %c0_i32_0 = arith.constant 0 : i32
    %c0_i32_1 = arith.constant 0 : i32
    %c0_i32_2 = arith.constant 0 : i32
    return %c0_i32, %c0_i32_0, %c0_i32_1 : i32, i32, i32
  }
  func.func @transform_11(%arg0: i32) -> (i32, i32) {
    %c0_i32 = arith.constant 0 : i32
    %c0_i32_0 = arith.constant 0 : i32
    %c0_i32_1 = arith.constant 0 : i32
    return %c0_i32, %c0_i32_0 : i32, i32
  }
  func.func @transform_12(%arg0: i32) -> (i32, i32) {
    %c0_i32 = arith.constant 0 : i32
    %c0_i32_0 = arith.constant 0 : i32
    %c0_i32_1 = arith.constant 0 : i32
    return %c0_i32, %c0_i32_0 : i32, i32
  }
  func.func @transform_13(%arg0: i32) -> (i32, i32) {
    %c0_i32 = arith.constant 0 : i32
    %c0_i32_0 = arith.constant 0 : i32
    %c0_i32_1 = arith.constant 0 : i32
    return %c0_i32, %c0_i32_0 : i32, i32
  }
  func.func @transform_14(%arg0: i32) -> (i32, i32, i32) {
    %c0_i32 = arith.constant 0 : i32
    %c0_i32_0 = arith.constant 0 : i32
    %c0_i32_1 = arith.constant 0 : i32
    return %c0_i32, %arg0, %c0_i32_0 : i32, i32, i32
  }
  func.func @transform_15(%arg0: i32) -> (i32, i32, i32) {
    %c0_i32 = arith.constant 0 : i32
    %c0_i32_0 = arith.constant 0 : i32
    %c0_i32_1 = arith.constant 0 : i32
    return %c0_i32, %arg0, %c0_i32_0 : i32, i32, i32
  }
}

</mosaic_0001>

<bundles_post_ra>
// kernel: ensemble_forward.1
= control target key start
LH: loop header
LB: loop body
LE: loop exit
PB: predicated region body
PF: predicated region fallthrough
CT: control target
= control target key end

     0   :  { %s9097_s0 = inlined_call_operand.vmem [shape: bf16[5,32,14], index: 0, kind: input, shape index: {}]   ;;  %s9098_s1 = inlined_call_operand.vmem [shape: bf16[5,14,256], index: 1, kind: input, shape index: {}]   ;;  %s9099_s2 = inlined_call_operand.vmem [shape: f32[5,1,256], index: 2, kind: input, shape index: {}]   ;;  %s9100_s3 = inlined_call_operand.hbm [shape: bf16[5,256,256], index: 3, kind: input, shape index: {}]   ;;  %s9101_s4 = inlined_call_operand.vmem [shape: f32[5,1,256], index: 4, kind: input, shape index: {}]   ;;  %s9102_s5 = inlined_call_operand.hbm [shape: bf16[5,256,256], index: 5, kind: input, shape index: {}]   ;;  %s9103_s6 = inlined_call_operand.vmem [shape: f32[5,1,256], index: 6, kind: input, shape index: {}]   ;;  %s9104_s7 = inlined_call_operand.hbm [shape: bf16[5,256,256], index: 7, kind: input, shape index: {}]   ;;  %s9105_s8 = inlined_call_operand.vmem [shape: f32[5,1,256], index: 8, kind: input, shape index: {}]   ;;  %s9106_s9 = inlined_call_operand.hbm [shape: bf16[5,256,128], index: 9, kind: input, shape index: {}]   ;;  %s9107_s10 = inlined_call_operand.vmem [shape: f32[5,1,128], index: 10, kind: input, shape index: {}]   ;;  %s9108_s11 = inlined_call_operand.vmem [shape: f32[1,12], index: 11, kind: input, shape index: {}]   ;;  %s9109_s12 = inlined_call_operand.vmem [shape: f32[1,12], index: 12, kind: input, shape index: {}]   ;;  %s9110_s13 = inlined_call_operand.vmem [shape: f32[1,12], index: 13, kind: input, shape index: {}]   ;;  %s9111_s14 = inlined_call_operand.vmem [shape: f32[5,32,12], index: 14, kind: output, shape index: {0}]   ;;  %s9112_s15 = inlined_call_operand.vmem [shape: f32[5,32,12], index: 15, kind: output, shape index: {1}]  }
   0x1   :  { %9122 = sst [smem:[#allocation18_spill]] %s9105_s8 }
   0x2   :  { %9123 = sst [smem:[#allocation19_spill]] %s9107_s10 }
   0x3   :  { %9124 = sst [smem:[#allocation20_spill]] %s9108_s11 }
   0x4   :  { %9125 = sst [smem:[#allocation21_spill]] %s9109_s12 }
   0x5   :  { %9126 = sst [smem:[#allocation22_spill]] %s9110_s13 }
   0x6   :  { %9127 = sst [smem:[#allocation23_spill]] %s9111_s14 }
   0x7   :  { %9128 = sst [smem:[#allocation24_spill]] %s9112_s15 }
   0x8   :  { %21 = vsyncpa [#allocation4], 0 }
   0x9   :  { %22 = vsyncpa [#allocation6], 0 }
   0xa   :  { %23 = vsyncpa [#allocation9], 0  ;;  %s8573_s18 = smov 0   ;;  %s8575_s19 = smov 0  }
   0xb   :  { %s8577_s20 = smov 0  }
   0xc LB: > { %s8589_s21 = sadd.s32 4294967295, %s8480_s20   ;;  %s8592_s22 = sadd.s32 1, %s8480_s20   ;;  %s8480_s20 = sphi %s8577_s20, %s9156_s20   ;;  %s8476_s19 = sphi %s8575_s19, %s9159_s19   ;;  %s8472_s18 = sphi %s8573_s18, %s9158_s18  }
   0xd   : > { %9129 = sst [smem:[#allocation15_spill]] %s8592_s22  ;;  %s33_s23 = ssub.s32 %s8480_s20, %s8592_s22 }
   0xe   : > { %s36_s24 = sadd.s32 1, %s8476_s19  ;;  %p34_p0 = scmp.eq.s32.totalorder %s33_s23, 0 }
   0xf   : > { %p43_p1 = scmp.ne.s32.totalorder %s8476_s19, %s8472_s18  ;;  %p44_p2 = scmp.eq.s32.totalorder %s8480_s20, 0 }
  0x10   : > { %p346_p3 = scmp.eq.s32.totalorder %s8589_s21, 1  ;;  %p6478_p6 = scmp.ge.s32.totalorder %s8480_s20, 1 }
  0x11   : > { %s8602_s25 = scalar_select %p34_p0, %s8476_s19, %s36_s24  }
  0x12   : > { %p8604_p4 = por %p44_p2, %p43_p1  ;;  %p8608_p5 = por %p346_p3, %p43_p1 }
  0x13   : > { %9130 = sst [smem:[#allocation16_spill]] %s8602_s25  ;;  %p385_p7 = scmp.lt.s32.totalorder %s8480_s20, 3 }
  0x14   : > { %s9131_s26 = scalar_select %p8604_p4, 1, 0 }
  0x15   : > { %s9132_s27 = scalar_select %p8608_p5, 1, 0 }
  0x16   : > { %p9117_p8 = scmp.eq.s32.totalorder %s8589_s21, 0  ;;  %p8615_p9 = pnand %p6478_p6, %p385_p7 }
  0x17   : > { %9133 = sst [smem:[#allocation17_spill]] %s9132_s27  ;;  %s8482_s29 = smov [#allocation5]  }
  0x18   : > { %s9134_s28 = scalar_select %p8615_p9, 1, 0 }
  0x19   : > { %p7274_p10 = pneg %p8615_p9  ;;  %s419_s30 = sshll.u32 %s8482_s29, 4  ;;  %s8621_s30 = int_to_ptr.vmem [resolvable:$true] %s419_s30 }
  0x1a   : > { %s8483_s17 = smov [#allocation3]   ;;  %s8484_s24 = smov [#allocation7]  }
  0x1b   : > { %p8625_p11 = pnand %p9117_p8, %p7274_p10  ;;  %s403_s23 = sshll.u32 %s8483_s17, 4  ;;  %s8629_s23 = int_to_ptr.vmem [resolvable:$true] %s403_s23 }
  0x1c   : > { %s8631_s25 = sshll.u32 %s8484_s24, 4  ;;  %s8334_s14 = scalar_lea.hbm %s9102_s5, 20480  ;;  %s436_s25 = int_to_ptr.vmem [resolvable:$true] %s8631_s25 }
  0x1d   : > { %p8335_p12 = scmp.ne.s32.totalorder %s9102_s5, %s8334_s14  ;;  %p8641_p13 = pneg %p8625_p11 }
  0x1e   : > { %p8341_p2 = scmp.lt.u32.totalorder %s8334_s14, %s9102_s5 }
  0x1f   : > { %p8337_p0 = pnand %p8641_p13, %p8335_p12 }
  0x21   : > { %p8338_p1 = pneg %p8337_p0 }
  0x23   : > { %p8343_p3 = pnand %p8341_p2, %p8338_p1 }
  0x25   : > { %8346 = shalt.err (!%p8343_p3)
}
  0x26   : > { %s8347_s15 = scalar_lea.vmem %s8621_s30, 20480  ;;  %p8355_p8 = scmp.lt.s32.totalorder %s8621_s30, %s8621_s30 }
  0x27   : > { %p8348_p6 = scmp.ne.s32.totalorder %s8621_s30, %s8347_s15  ;;  %p8356_p5 = scmp.lt.s32.totalorder %s8347_s15, %s8347_s15 }
  0x29   : > { %p8350_p7 = pnand %p8348_p6, %p8641_p13  ;;  %p8357_p12 = por %p8356_p5, %p8355_p8 }
  0x2b   : > { %p8351_p10 = pneg %p8350_p7 }
  0x2d   : > { %p8358_p0 = pnand %p8357_p12, %p8351_p10 }
  0x2f   : > { %8361 = shalt.err (!%p8358_p0)
}
  0x30   : > { %s8485_s22 = smov 128   ;;  %s8486_s14 = smov 8  }
  0x31   : > { %7280 = dma.hbm_to_vmem [thread:$0]  (!%p8625_p11), %s9102_s5, 20480, %s8621_s30, [#allocation6], %s8485_s22, %s8485_s22, %s8486_s14  }
  0x32   : > { %s8362_s15 = scalar_lea.hbm %s9100_s3, 20480 }
  0x33   : > { %p8363_p5 = scmp.ne.s32.totalorder %s9100_s3, %s8362_s15  ;;  %p8369_p2 = scmp.lt.u32.totalorder %s8362_s15, %s9100_s3 }
  0x35   : > { %p8365_p8 = pnand %p8363_p5, %p8641_p13 }
  0x37   : > { %p8366_p1 = pneg %p8365_p8 }
  0x39   : > { %p8371_p3 = pnand %p8369_p2, %p8366_p1 }
  0x3b   : > { %8374 = shalt.err (!%p8371_p3)
}
  0x3c   : > { %s8375_s30 = scalar_lea.vmem %s8629_s23, 20480  ;;  %p8383_p12 = scmp.lt.s32.totalorder %s8629_s23, %s8629_s23 }
  0x3d   : > { %p8376_p6 = scmp.ne.s32.totalorder %s8629_s23, %s8375_s30  ;;  %p8384_p0 = scmp.lt.s32.totalorder %s8375_s30, %s8375_s30 }
  0x3f   : > { %p8378_p7 = pnand %p8376_p6, %p8641_p13  ;;  %p8385_p5 = por %p8384_p0, %p8383_p12 }
  0x41   : > { %p8379_p10 = pneg %p8378_p7 }
  0x43   : > { %p8386_p8 = pnand %p8385_p5, %p8379_p10 }
  0x45   : > { %8389 = shalt.err (!%p8386_p8)
}
  0x46   : > { %7277 = dma.hbm_to_vmem [thread:$0]  (!%p8625_p11), %s9100_s3, 20480, %s8629_s23, [#allocation4], %s8485_s22, %s8485_s22, %s8486_s14  }
  0x47   : > { %s8390_s27 = scalar_lea.hbm %s9104_s7, 20480 }
  0x48   : > { %p8391_p1 = scmp.ne.s32.totalorder %s9104_s7, %s8390_s27  ;;  %p8397_p6 = scmp.lt.u32.totalorder %s8390_s27, %s9104_s7 }
  0x4a   : > { %p8393_p2 = pnand %p8391_p1, %p8641_p13 }
  0x4c   : > { %p8394_p3 = pneg %p8393_p2 }
  0x4e   : > { %p8399_p7 = pnand %p8397_p6, %p8394_p3 }
  0x50   : > { %8402 = shalt.err (!%p8399_p7)
}
  0x51   : > { %s8403_s30 = scalar_lea.vmem %s436_s25, 20480  ;;  %p8411_p5 = scmp.lt.s32.totalorder %s436_s25, %s436_s25 }
  0x52   : > { %p8404_p10 = scmp.ne.s32.totalorder %s436_s25, %s8403_s30  ;;  %p8412_p8 = scmp.lt.s32.totalorder %s8403_s30, %s8403_s30 }
  0x54   : > { %p8406_p12 = pnand %p8404_p10, %p8641_p13  ;;  %p8413_p9 = por %p8412_p8, %p8411_p5 }
  0x56   : > { %p8407_p0 = pneg %p8406_p12 }
  0x58   : > { %p8414_p4 = pnand %p8413_p9, %p8407_p0 }
  0x5a   : > { %8417 = shalt.err (!%p8414_p4)
}
  0x5b   : > { %7283 = dma.hbm_to_vmem [thread:$0]  (!%p8625_p11), %s9104_s7, 20480, %s436_s25, [#allocation6], %s8485_s22, %s8485_s22, %s8486_s14  }
  0x5c   : > { %s8487_s10 = smov [#allocation8]   ;;  %s8418_s29 = scalar_lea.hbm %s9106_s9, 10240 }
  0x5d   : > { %s451_s11 = sshll.u32 %s8487_s10, 4  ;;  %p8419_p4 = scmp.ne.s32.totalorder %s9106_s9, %s8418_s29  ;;  %s452_s11 = int_to_ptr.vmem [resolvable:$true] %s451_s11 }
  0x5e   : > { %p8425_p2 = scmp.lt.u32.totalorder %s8418_s29, %s9106_s9 }
  0x5f   : > { %p8421_p9 = pnand %p8419_p4, %p8641_p13 }
  0x61   : > { %p8422_p1 = pneg %p8421_p9 }
  0x63   : > { %p8427_p3 = pnand %p8425_p2, %p8422_p1 }
  0x65   : > { %8430 = shalt.err (!%p8427_p3)
}
  0x66   : > { %s8431_s25 = scalar_lea.vmem %s452_s11, 10240  ;;  %p8439_p12 = scmp.lt.s32.totalorder %s452_s11, %s452_s11 }
  0x67   : > { %p8432_p6 = scmp.ne.s32.totalorder %s452_s11, %s8431_s25  ;;  %p8440_p0 = scmp.lt.s32.totalorder %s8431_s25, %s8431_s25 }
  0x69   : > { %p8434_p7 = pnand %p8432_p6, %p8641_p13  ;;  %p8441_p5 = por %p8440_p0, %p8439_p12 }
  0x6b   : > { %p8435_p10 = pneg %p8434_p7 }
  0x6d   : > { %p8442_p8 = pnand %p8441_p5, %p8435_p10 }
  0x6f   : > { %8445 = shalt.err (!%p8442_p8)
}
  0x70   : > { %s8488_s22 = smov 64   ;;  %s8489_s14 = smov 4  }
  0x71   : > { %7286 = dma.hbm_to_vmem [thread:$0]  (!%p8625_p11), %s9106_s9, 10240, %s452_s11, [#allocation9], %s8488_s22, %s8488_s22, %s8489_s14  }
  0x72   : > { %p6483_p4 = scmp.ge.s32.totalorder %s8480_s20, 2 }
  0x73   : > { %p9137_p9 = scmp.ne.s32.totalorder (!%p6483_p4), %s9131_s26, 0 }
  0x74   : > { %473 = sbr.rel (%p6483_p4) target bundleno = 130 (0x82), region = 68 }
  0x7b   : > { %476 = sbr.rel (!%p9137_p9) target bundleno = 130 (0x82), region = 72  ;;  %s478_s13 = sand.u32 (%p9137_p9), 1, %s8476_s19  }
  0x7c   : > { %s7142_s10 = sshll.u32 (%p9137_p9), %s8480_s20, 3  ;;  %s7255_s12 = smul.u32 (%p9137_p9), 40, %s478_s13 }
  0x7d   : > { %s483_s17 = scalar_lea.vmem (%p9137_p9), %s9097_s0, %s7142_s10 }
  0x7e   : > { %v499_v0 = vld [vmem:[%s483_s17] sm:$0xff] (%p9137_p9)   ;;  %v503_v1 = vld [vmem:[%s483_s17 + $0x10] sm:$0xff] (%p9137_p9)   ;;  %s480_s16 = scalar_lea.vmem (%p9137_p9), [#allocation2], %s7255_s12 }
  0x7f   : > { %v507_v2 = vld [vmem:[%s483_s17 + $0x20] sm:$0xff] (%p9137_p9)   ;;  %v511_v3 = vld [vmem:[%s483_s17 + $0x30] sm:$0xff] (%p9137_p9)   ;;  %500 = vst [vmem:[%s480_s16] sm:$0xff] (%p9137_p9), %v499_v0   ;;  %504 = vst [vmem:[%s480_s16 + $0x8] sm:$0xff] (%p9137_p9), %v503_v1  }
  0x80   : > { %v515_v4 = vld [vmem:[%s483_s17 + $0x40] sm:$0xff] (%p9137_p9)   ;;  %508 = vst [vmem:[%s480_s16 + $0x10] sm:$0xff] (%p9137_p9), %v507_v2   ;;  %512 = vst [vmem:[%s480_s16 + $0x18] sm:$0xff] (%p9137_p9), %v511_v3  }
  0x81   : > { %516 = vst [vmem:[%s480_s16 + $0x20] sm:$0xff] (%p9137_p9), %v515_v4  }
  0x82 PF: > { %p9138_p11 = scmp.ne.s32.totalorder %s9134_s28, 0 }
  0x83   : > { %s567_s20 = sand.u32 (!%p9138_p11), 1, %s8472_s18   ;;  %p9139_p13 = scmp.eq.s32.totalorder (!%p9138_p11), %s8589_s21, 0 }
  0x84   : > { %564 = sbr.rel (%p9138_p11) target bundleno = 4940 (0x134c), region = 113 }
  0x85   : > { %s7256_s26 = smul.u32 (!%p9138_p11), 40, %s567_s20 }
  0x87   : > { %s8744_s11 = scalar_lea.vmem (!%p9138_p11), [#allocation2], %s7256_s26 }
  0x8b   : > { %8459 = dma.done.wait (%p9139_p13), [#allocation4], 20480   ;;  %p9140_p1 = pmov %p9139_p13 }
  0x8d   : > { %8461 = vsyncadd (%p9140_p1), [#allocation4], 4294946816  ;;  %p9141_p2 = pmov %p9140_p1 }
  0x8e   : > { %p9142_p3 = pmov %p9140_p1 }
  0x8f   : > { %8463 = dma.done.wait (%p9141_p2), [#allocation6], 40960  }
  0x90   : > { %8465 = vsyncadd (%p9142_p3), [#allocation6], 4294926336  ;;  %p9143_p6 = pmov %p9140_p1 }
  0x91   : > { %p9144_p7 = pmov %p9140_p1 }
  0x92   : > { %8467 = dma.done.wait (%p9143_p6), [#allocation9], 10240  }
  0x93   : > { %8469 = vsyncadd (%p9144_p7), [#allocation9], 4294957056  ;;  %v8490_v5 = vmov 0   ;;  %vm673_vm0 = vcmask 1046528   ;;  %v7333_v8 = vld [vmem:[%s8744_s11] sm:$0xff]   ;;  %vm669_vm1 = vcmask 113664   ;;  %v646_v62 = vlaneseq }
  0x94   : > { %712 = vmatprep.mubr.bf16.mxu0 %v8490_v5  ;;  %v7330_v6 = vld [vmem:[%s9098_s1 + $0x4] ss:$8 sps:$4 sm:$0x7f]   ;;  %v7332_v7 = vld [vmem:[%s9098_s1] ss:$8 sps:$4 sm:$0x7f]  }
  0x95   : > { %6494 = vmatprep.subr.msk.bf16.mxu0 %vm673_vm0, %v7330_v6  ;;  %v675_v9 = vsel %vm673_vm0, %v7332_v7, 0  ;;  %v7334_v10 = vld [vmem:[#allocation3 + $0x4] ss:$8 sps:$4 sm:$0xff]   ;;  %v7336_v11 = vld [vmem:[#allocation3] ss:$8 sps:$4 sm:$0xff]   ;;  %v647_v63 = vshrl.u32 %v646_v62, 7 }
  0x96   : > { %681 = vmatpush1.bf16.msra.mxu0 %v675_v9  ;;  %v7337_v12 = vld [vmem:[#allocation3 + $0x14] ss:$8 sps:$4 sm:$0xff]   ;;  %945 = vmatprep.subr.bf16.mxu1 %v7334_v10  ;;  %v7339_v13 = vld [vmem:[#allocation3 + $0x10] ss:$8 sps:$4 sm:$0xff]   ;;  %v7340_v14 = vld [vmem:[#allocation3 + $0x24] ss:$8 sps:$4 sm:$0xff]  }
  0x97   : > { %946 = vmatpush1.bf16.msra.mxu1 %v7336_v11  ;;  %v7342_v15 = vld [vmem:[#allocation3 + $0x20] ss:$8 sps:$4 sm:$0xff]   ;;  %v7343_v16 = vld [vmem:[#allocation3 + $0x34] ss:$8 sps:$4 sm:$0xff]   ;;  %v7345_v17 = vld [vmem:[#allocation3 + $0x30] ss:$8 sps:$4 sm:$0xff]  }
  0x98   : > { %947 = vmatprep.subr.bf16.mxu1 %v7337_v12  ;;  %v7346_v18 = vld [vmem:[#allocation3 + $0x44] ss:$8 sps:$4 sm:$0xff]   ;;  %v7348_v19 = vld [vmem:[#allocation3 + $0x40] ss:$8 sps:$4 sm:$0xff]   ;;  %v7349_v20 = vld [vmem:[#allocation3 + $0x54] ss:$8 sps:$4 sm:$0xff]  }
  0x99   : > { %6495 = vmatmul.mubr.msk.bf16.vlgmr.msra.gmra.mrb[0].mxu0 %vm669_vm1, %v7333_v8  ;;  %v7351_v21 = vld [vmem:[#allocation3 + $0x50] ss:$8 sps:$4 sm:$0xff]   ;;  %v7352_v22 = vld [vmem:[#allocation3 + $0x64] ss:$8 sps:$4 sm:$0xff]   ;;  %v7354_v23 = vld [vmem:[#allocation3 + $0x60] ss:$8 sps:$4 sm:$0xff]  }
  0x9a   : > { %v7355_v24 = vld [vmem:[#allocation3 + $0x74] ss:$8 sps:$4 sm:$0xff]   ;;  %v7357_v25 = vld [vmem:[#allocation3 + $0x70] ss:$8 sps:$4 sm:$0xff]   ;;  %v7358_v26 = vld [vmem:[#allocation3 + $0x84] ss:$8 sps:$4 sm:$0xff]  }
  0x9b   : > { %948 = vmatpush1.bf16.msra.mxu1 %v7339_v13  ;;  %v7360_v27 = vld [vmem:[#allocation3 + $0x80] ss:$8 sps:$4 sm:$0xff]   ;;  %v7361_v28 = vld [vmem:[#allocation3 + $0x94] ss:$8 sps:$4 sm:$0xff]   ;;  %v7363_v29 = vld [vmem:[#allocation3 + $0x90] ss:$8 sps:$4 sm:$0xff]  }
  0x9c   : > { %949 = vmatprep.subr.bf16.mxu1 %v7340_v14  ;;  %v7364_v30 = vld [vmem:[#allocation3 + $0xa4] ss:$8 sps:$4 sm:$0xff]   ;;  %v7366_v31 = vld [vmem:[#allocation3 + $0xa0] ss:$8 sps:$4 sm:$0xff]   ;;  %v7367_v32 = vld [vmem:[#allocation3 + $0xb4] ss:$8 sps:$4 sm:$0xff]  }
  0x9d   : > { %v7369_v33 = vld [vmem:[#allocation3 + $0xb0] ss:$8 sps:$4 sm:$0xff]   ;;  %v7370_v34 = vld [vmem:[#allocation3 + $0xc4] ss:$8 sps:$4 sm:$0xff]   ;;  %v7372_v35 = vld [vmem:[#allocation3 + $0xc0] ss:$8 sps:$4 sm:$0xff]  }
  0x9e   : > { %v7373_v36 = vld [vmem:[#allocation3 + $0xd4] ss:$8 sps:$4 sm:$0xff]   ;;  %v7375_v37 = vld [vmem:[#allocation3 + $0xd0] ss:$8 sps:$4 sm:$0xff]   ;;  %v7376_v38 = vld [vmem:[#allocation3 + $0xe4] ss:$8 sps:$4 sm:$0xff]  }
  0x9f   : > { %950 = vmatpush1.bf16.msra.mxu1 %v7342_v15  ;;  %v7378_v39 = vld [vmem:[#allocation3 + $0xe0] ss:$8 sps:$4 sm:$0xff]   ;;  %v7379_v40 = vld [vmem:[#allocation3 + $0xf4] ss:$8 sps:$4 sm:$0xff]   ;;  %v7381_v41 = vld [vmem:[#allocation3 + $0xf0] ss:$8 sps:$4 sm:$0xff]  }
  0xa0   : > { %951 = vmatprep.subr.bf16.mxu1 %v7343_v16  ;;  %v7382_v42 = vld [vmem:[#allocation5] ss:$8 sps:$4 sm:$0xff]   ;;  %v7384_v43 = vld [vmem:[#allocation5 + $0x4] ss:$8 sps:$4 sm:$0xff]   ;;  %v7387_v44 = vld [vmem:[#allocation5 + $0x14] ss:$8 sps:$4 sm:$0xff]  }
  0xa1   : > { %1210 = vmatprep.subr.bf16.mxu0 %v7384_v43  ;;  %v7385_v45 = vld [vmem:[#allocation5 + $0x10] ss:$8 sps:$4 sm:$0xff]   ;;  %v7390_v46 = vld [vmem:[#allocation5 + $0x24] ss:$8 sps:$4 sm:$0xff]   ;;  %v7388_v47 = vld [vmem:[#allocation5 + $0x20] ss:$8 sps:$4 sm:$0xff]  }
  0xa2   : > { %1211 = vmatpush1.bf16.msra.mxu0 %v7382_v42  ;;  %v7393_v48 = vld [vmem:[#allocation5 + $0x34] ss:$8 sps:$4 sm:$0xff]   ;;  %v7391_v49 = vld [vmem:[#allocation5 + $0x30] ss:$8 sps:$4 sm:$0xff]   ;;  %v7396_v50 = vld [vmem:[#allocation5 + $0x44] ss:$8 sps:$4 sm:$0xff]  }
  0xa3   : > { %952 = vmatpush1.bf16.msra.mxu1 %v7345_v17  ;;  %1212 = vmatprep.subr.bf16.mxu0 %v7387_v44  ;;  %v7394_v51 = vld [vmem:[#allocation5 + $0x40] ss:$8 sps:$4 sm:$0xff]   ;;  %v7399_v52 = vld [vmem:[#allocation5 + $0x54] ss:$8 sps:$4 sm:$0xff]   ;;  %v7397_v53 = vld [vmem:[#allocation5 + $0x50] ss:$8 sps:$4 sm:$0xff]  }
  0xa4   : > { %953 = vmatprep.subr.bf16.mxu1 %v7346_v18  ;;  %v7402_v54 = vld [vmem:[#allocation5 + $0x64] ss:$8 sps:$4 sm:$0xff]   ;;  %v7400_v55 = vld [vmem:[#allocation5 + $0x60] ss:$8 sps:$4 sm:$0xff]   ;;  %v7405_v56 = vld [vmem:[#allocation5 + $0x74] ss:$8 sps:$4 sm:$0xff]  }
  0xa5   : > { %v7403_v57 = vld [vmem:[#allocation5 + $0x70] ss:$8 sps:$4 sm:$0xff]   ;;  %v7408_v58 = vld [vmem:[#allocation5 + $0x84] ss:$8 sps:$4 sm:$0xff]   ;;  %v7406_v59 = vld [vmem:[#allocation5 + $0x80] ss:$8 sps:$4 sm:$0xff]  }
  0xa6   : > { %1213 = vmatpush1.bf16.msra.mxu0 %v7385_v45  ;;  %v7411_v60 = vld [vmem:[#allocation5 + $0x94] ss:$8 sps:$4 sm:$0xff]   ;;  %v7409_v61 = vld [vmem:[#allocation5 + $0x90] ss:$8 sps:$4 sm:$0xff]   ;;  %v8772_v1 = vsub.s32 0, %v647_v63  ;;  %v8774_v2 = vsub.s32 1, %v647_v63 }
  0xa7   : > { %954 = vmatpush1.bf16.msra.mxu1 %v7348_v19  ;;  %1214 = vmatprep.subr.bf16.mxu0 %v7390_v46  ;;  %v644_v0 = vld [vmem:[%s9099_s2] sm:$0x3]  ;;  %v7429_v42 = vld [vmem:[#allocation5 + $0xf4] ss:$8 sps:$4 sm:$0xff]   ;;  %v7430_v44 = vld [vmem:[#allocation7] ss:$8 sps:$4 sm:$0xff]  }
  0xa8   : > { %955 = vmatprep.subr.bf16.mxu1 %v7349_v20  ;;  %v649_v3 = vrot.slane %v644_v0, %v8772_v1  ;;  %v653_v4 = vrot.slane %v644_v0, %v8774_v2  ;;  %v7427_v43 = vld [vmem:[#allocation5 + $0xf0] ss:$8 sps:$4 sm:$0xff]   ;;  %v7432_v45 = vld [vmem:[#allocation7 + $0x4] ss:$8 sps:$4 sm:$0xff]   ;;  %v7435_v46 = vld [vmem:[#allocation7 + $0x14] ss:$8 sps:$4 sm:$0xff]  }
  0xa9   : > { %v7459_v62 = vld [vmem:[#allocation7 + $0x94] ss:$8 sps:$4 sm:$0xff]   ;;  %v7457_v63 = vld [vmem:[#allocation7 + $0x90] ss:$8 sps:$4 sm:$0xff]   ;;  %s9145_s17 = sld [smem:[#allocation20_spill]]  ;;  %s8491_s16 = smov 12  }
  0xaa   : > { %1215 = vmatpush1.bf16.msra.mxu0 %v7388_v47  ;;  %v7433_v47 = vld [vmem:[#allocation7 + $0x10] ss:$8 sps:$4 sm:$0xff]   ;;  %s9146_s24 = sld [smem:[#allocation18_spill]]  ;;  %s8809_s25 = smul.u32 80, %s567_s20  ;;  %vm1712_vm2 = vcmask 97280  }
  0xab   : > { %956 = vmatpush1.bf16.msra.mxu1 %v7351_v21  ;;  %1216 = vmatprep.subr.bf16.mxu0 %v7393_v48  ;;  %v7438_v48 = vld [vmem:[#allocation7 + $0x24] ss:$8 sps:$4 sm:$0xff]   ;;  %v773_v0 = vld [vmem:[%s9101_s4] sm:$0x3]  ;;  %s9147_s23 = sld [smem:[#allocation19_spill]]  ;;  %s8492_s20 = smov 116  }
  0xac   : > { %957 = vmatprep.subr.bf16.mxu1 %v7352_v22  ;;  %s8821_s18 = scalar_lea.vmem [#allocation10], %s8809_s25  ;;  %s9148_s27 = sld [smem:[#allocation21_spill]] }
  0xad   : > { %s8846_s26 = scalar_lea.vmem [#allocation11], %s8809_s25  ;;  %s9150_s10 = sld [smem:[#allocation17_spill]] }
  0xae   : > { %1217 = vmatpush1.bf16.msra.mxu0 %v7391_v49  ;;  %v7436_v49 = vld [vmem:[#allocation7 + $0x20] ss:$8 sps:$4 sm:$0xff]  }
  0xaf   : > { %958 = vmatpush1.bf16.msra.mxu1 %v7354_v23  ;;  %1218 = vmatprep.subr.bf16.mxu0 %v7396_v50  ;;  %v7441_v50 = vld [vmem:[#allocation7 + $0x34] ss:$8 sps:$4 sm:$0xff]  }
  0xb0   : > { %959 = vmatprep.subr.bf16.mxu1 %v7355_v24 }
  0xb2   : > { %1219 = vmatpush1.bf16.msra.mxu0 %v7394_v51  ;;  %v7439_v51 = vld [vmem:[#allocation7 + $0x30] ss:$8 sps:$4 sm:$0xff]  }
  0xb3   : > { %960 = vmatpush1.bf16.msra.mxu1 %v7357_v25  ;;  %1220 = vmatprep.subr.bf16.mxu0 %v7399_v52  ;;  %v7444_v52 = vld [vmem:[#allocation7 + $0x44] ss:$8 sps:$4 sm:$0xff]   ;;  %p9151_p10 = scmp.ne.s32.totalorder %s9150_s10, 0 }
  0xb4   : > { %961 = vmatprep.subr.bf16.mxu1 %v7358_v26 }
  0xb6   : > { %1221 = vmatpush1.bf16.msra.mxu0 %v7397_v53  ;;  %v7442_v53 = vld [vmem:[#allocation7 + $0x40] ss:$8 sps:$4 sm:$0xff]  }
  0xb7   : > { %962 = vmatpush1.bf16.msra.mxu1 %v7360_v27  ;;  %1222 = vmatprep.subr.bf16.mxu0 %v7402_v54  ;;  %v7447_v54 = vld [vmem:[#allocation7 + $0x54] ss:$8 sps:$4 sm:$0xff]  }
  0xb8   : > { %963 = vmatprep.subr.bf16.mxu1 %v7361_v28 }
  0xba   : > { %1223 = vmatpush1.bf16.msra.mxu0 %v7400_v55  ;;  %v7445_v55 = vld [vmem:[#allocation7 + $0x50] ss:$8 sps:$4 sm:$0xff]  }
  0xbb   : > { %964 = vmatpush1.bf16.msra.mxu1 %v7363_v29  ;;  %1224 = vmatprep.subr.bf16.mxu0 %v7405_v56  ;;  %v7450_v56 = vld [vmem:[#allocation7 + $0x64] ss:$8 sps:$4 sm:$0xff]  }
  0xbc   : > { %965 = vmatprep.subr.bf16.mxu1 %v7364_v30 }
  0xbe   : > { %1225 = vmatpush1.bf16.msra.mxu0 %v7403_v57  ;;  %v7448_v57 = vld [vmem:[#allocation7 + $0x60] ss:$8 sps:$4 sm:$0xff]  }
  0xbf   : > { %966 = vmatpush1.bf16.msra.mxu1 %v7366_v31  ;;  %1226 = vmatprep.subr.bf16.mxu0 %v7408_v58  ;;  %v7453_v58 = vld [vmem:[#allocation7 + $0x74] ss:$8 sps:$4 sm:$0xff]  }
  0xc0   : > { %967 = vmatprep.subr.bf16.mxu1 %v7367_v32  ;;  %v7414_v32 = vld [vmem:[#allocation5 + $0xa4] ss:$8 sps:$4 sm:$0xff]  }
  0xc2   : > { %1227 = vmatpush1.bf16.msra.mxu0 %v7406_v59  ;;  %v7451_v59 = vld [vmem:[#allocation7 + $0x70] ss:$8 sps:$4 sm:$0xff]  }
  0xc3   : > { %968 = vmatpush1.bf16.msra.mxu1 %v7369_v33  ;;  %1228 = vmatprep.subr.bf16.mxu0 %v7411_v60  ;;  %v7412_v33 = vld [vmem:[#allocation5 + $0xa0] ss:$8 sps:$4 sm:$0xff]   ;;  %v7456_v60 = vld [vmem:[#allocation7 + $0x84] ss:$8 sps:$4 sm:$0xff]  }
  0xc4   : > { %969 = vmatprep.subr.bf16.mxu1 %v7370_v34  ;;  %v7417_v34 = vld [vmem:[#allocation5 + $0xb4] ss:$8 sps:$4 sm:$0xff]  }
  0xc6   : > { %1229 = vmatpush1.bf16.msra.mxu0 %v7409_v61  ;;  %v7454_v61 = vld [vmem:[#allocation7 + $0x80] ss:$8 sps:$4 sm:$0xff]  }
  0xc7   : > { %970 = vmatpush1.bf16.msra.mxu1 %v7372_v35  ;;  %1230 = vmatprep.subr.bf16.mxu0 %v7414_v32  ;;  %v7415_v35 = vld [vmem:[#allocation5 + $0xb0] ss:$8 sps:$4 sm:$0xff]   ;;  %v7462_v32 = vld [vmem:[#allocation7 + $0xa4] ss:$8 sps:$4 sm:$0xff]  }
  0xc8   : > { %971 = vmatprep.subr.bf16.mxu1 %v7373_v36  ;;  %v7420_v36 = vld [vmem:[#allocation5 + $0xc4] ss:$8 sps:$4 sm:$0xff]  }
  0xca   : > { %1231 = vmatpush1.bf16.msra.mxu0 %v7412_v33  ;;  %v7460_v33 = vld [vmem:[#allocation7 + $0xa0] ss:$8 sps:$4 sm:$0xff]  }
  0xcb   : > { %972 = vmatpush1.bf16.msra.mxu1 %v7375_v37  ;;  %1232 = vmatprep.subr.bf16.mxu0 %v7417_v34  ;;  %v7418_v37 = vld [vmem:[#allocation5 + $0xc0] ss:$8 sps:$4 sm:$0xff]   ;;  %v7465_v34 = vld [vmem:[#allocation7 + $0xb4] ss:$8 sps:$4 sm:$0xff]  }
  0xcc   : > { %973 = vmatprep.subr.bf16.mxu1 %v7376_v38  ;;  %v7423_v38 = vld [vmem:[#allocation5 + $0xd4] ss:$8 sps:$4 sm:$0xff]  }
  0xce   : > { %1233 = vmatpush1.bf16.msra.mxu0 %v7415_v35  ;;  %v7463_v35 = vld [vmem:[#allocation7 + $0xb0] ss:$8 sps:$4 sm:$0xff]  }
  0xcf   : > { %974 = vmatpush1.bf16.msra.mxu1 %v7378_v39  ;;  %1234 = vmatprep.subr.bf16.mxu0 %v7420_v36  ;;  %v7421_v39 = vld [vmem:[#allocation5 + $0xd0] ss:$8 sps:$4 sm:$0xff]   ;;  %v7468_v36 = vld [vmem:[#allocation7 + $0xc4] ss:$8 sps:$4 sm:$0xff]  }
  0xd0   : > { %975 = vmatprep.subr.bf16.mxu1 %v7379_v40  ;;  %v7426_v40 = vld [vmem:[#allocation5 + $0xe4] ss:$8 sps:$4 sm:$0xff]  }
  0xd2   : > { %1235 = vmatpush1.bf16.msra.mxu0 %v7418_v37  ;;  %v7466_v37 = vld [vmem:[#allocation7 + $0xc0] ss:$8 sps:$4 sm:$0xff]  }
  0xd3   : > { %976 = vmatpush1.bf16.msra.mxu1 %v7381_v41  ;;  %1236 = vmatprep.subr.bf16.mxu0 %v7423_v38  ;;  %v7424_v41 = vld [vmem:[#allocation5 + $0xe0] ss:$8 sps:$4 sm:$0xff]   ;;  %v7471_v38 = vld [vmem:[#allocation7 + $0xd4] ss:$8 sps:$4 sm:$0xff]  }
  0xd4   : > { %1475 = vmatprep.subr.bf16.mxu1 %v7432_v45  ;;  %v7479_v45 = vld [vmem:[#allocation8] sm:$0xff]  }
  0xd6   : > { %1237 = vmatpush1.bf16.msra.mxu0 %v7421_v39  ;;  %v7469_v39 = vld [vmem:[#allocation7 + $0xd0] ss:$8 sps:$4 sm:$0xff]  }
  0xd7   : > { %1238 = vmatprep.subr.bf16.mxu0 %v7426_v40  ;;  %v7474_v40 = vld [vmem:[#allocation7 + $0xe4] ss:$8 sps:$4 sm:$0xff]  }
  0xda   : > { %1239 = vmatpush1.bf16.msra.mxu0 %v7424_v41  ;;  %v7472_v41 = vld [vmem:[#allocation7 + $0xe0] ss:$8 sps:$4 sm:$0xff]  }
  0xdb   : > { %1240 = vmatprep.subr.bf16.mxu0 %v7429_v42  ;;  %v7477_v42 = vld [vmem:[#allocation7 + $0xf4] ss:$8 sps:$4 sm:$0xff]  }
  0xde   : > { %1241 = vmatpush1.bf16.msra.mxu0 %v7427_v43  ;;  %v7475_v43 = vld [vmem:[#allocation7 + $0xf0] ss:$8 sps:$4 sm:$0xff]  }
 0x16c   : > { %v714_v6 = vpop.f32.mrb[0].mxu0 }
 0x16d   : > { %v715_v7 = vadd.f32 %v714_v6, %v649_v3  ;;  %v716_v8 = vpop.f32.mrb[1].mxu0 }
 0x16e   : > { %v717_v9 = vadd.f32 %v716_v8, %v653_v4  ;;  %v718_v10 = vpop.f32.mrb[2].mxu0 }
 0x16f   : > { %v723_v11 = vmul.f32 0.5, %v715_v7  ;;  %v719_v12 = vadd.f32 %v718_v10, %v649_v3  ;;  %v720_v13 = vpop.f32.mrb[3].mxu0  ;;  %v778_v3 = vrot.slane %v773_v0, %v8772_v1 }
 0x170   : > { %v724_v14 = vmul.f32 0.5, %v717_v9  ;;  %v721_v15 = vadd.f32 %v720_v13, %v653_v4  ;;  %v782_v4 = vrot.slane %v773_v0, %v8774_v2 }
 0x171   : > { %8150 = vtanh.f32 %v723_v11  ;;  %v725_v16 = vmul.f32 0.5, %v719_v12 }
 0x172   : > { %8152 = vtanh.f32 %v724_v14  ;;  %v726_v17 = vmul.f32 0.5, %v721_v15 }
 0x173   : > { %8154 = vtanh.f32 %v725_v16 }
 0x174   : > { %8156 = vtanh.f32 %v726_v17 }
 0x17b   : > { %v8151_v18 = vpop.eup %8150 }
 0x17c   : > { %v8153_v19 = vpop.eup %8152  ;;  %v731_v20 = vadd.f32 1.0, %v8151_v18 }
 0x17d   : > { %v8155_v21 = vpop.eup %8154  ;;  %v732_v22 = vadd.f32 1.0, %v8153_v19 }
 0x17e   : > { %v8157_v23 = vpop.eup %8156  ;;  %v733_v24 = vadd.f32 1.0, %v8155_v21  ;;  %v735_v26 = vmul.f32 %v731_v20, %v723_v11 }
 0x17f   : > { %v734_v25 = vadd.f32 1.0, %v8157_v23  ;;  %v736_v28 = vmul.f32 %v732_v22, %v724_v14 }
 0x180   : > { %v737_v27 = vmul.f32 %v733_v24, %v725_v16 }
 0x181   : > { %v738_v29 = vmul.f32 %v734_v25, %v726_v17 }
 0x182   : > { %v739_v30 = vpack.c.bf16 %v737_v27, %v735_v26 }
 0x183   : > { %v740_v31 = vpack.c.bf16 %v738_v29, %v736_v28 }
 0x185   : > { %977 = vmatprep.mubr.bf16.mxu1 %v740_v31 }
 0x186   : > { %978 = vmatmul.mubr.bf16.vlgmr.msra.gmra.mrb[0].mxu1 %v739_v30 }
 0x187   : > { %1476 = vmatpush1.bf16.msra.mxu1 %v7430_v44  ;;  %v7478_v44 = vld [vmem:[#allocation8 + $0x40] sm:$0xff]  }
 0x188   : > { %1477 = vmatprep.subr.bf16.mxu1 %v7435_v46  ;;  %v7480_v46 = vld [vmem:[#allocation8 + $0x48] sm:$0xff]   ;;  %7145 = vmatprep.subr.bf16.mxu0 %v7478_v44 }
 0x18b   : > { %1478 = vmatpush1.bf16.msra.mxu1 %v7433_v47  ;;  %v7481_v47 = vld [vmem:[#allocation8 + $0x8] sm:$0xff]  }
 0x18c   : > { %1479 = vmatprep.subr.bf16.mxu1 %v7438_v48  ;;  %v1038_v48 = vld [vmem:[%s9103_s6] sm:$0x3] }
 0x18f   : > { %1480 = vmatpush1.bf16.msra.mxu1 %v7436_v49  ;;  %v1043_v49 = vrot.slane %v1038_v48, %v8772_v1 }
 0x190   : > { %1481 = vmatprep.subr.bf16.mxu1 %v7441_v50  ;;  %v1047_v50 = vrot.slane %v1038_v48, %v8774_v2 }
 0x193   : > { %1482 = vmatpush1.bf16.msra.mxu1 %v7439_v51 }
 0x194   : > { %1483 = vmatprep.subr.bf16.mxu1 %v7444_v52 }
 0x197   : > { %1484 = vmatpush1.bf16.msra.mxu1 %v7442_v53 }
 0x198   : > { %1485 = vmatprep.subr.bf16.mxu1 %v7447_v54 }
 0x19b   : > { %1486 = vmatpush1.bf16.msra.mxu1 %v7445_v55 }
 0x19c   : > { %1487 = vmatprep.subr.bf16.mxu1 %v7450_v56 }
 0x19f   : > { %1488 = vmatpush1.bf16.msra.mxu1 %v7448_v57 }
 0x1a0   : > { %1489 = vmatprep.subr.bf16.mxu1 %v7453_v58 }
 0x1a3   : > { %1490 = vmatpush1.bf16.msra.mxu1 %v7451_v59 }
 0x1a4   : > { %1491 = vmatprep.subr.bf16.mxu1 %v7456_v60 }
 0x1a7   : > { %1492 = vmatpush1.bf16.msra.mxu1 %v7454_v61 }
 0x1a8   : > { %1493 = vmatprep.subr.bf16.mxu1 %v7459_v62 }
 0x1ab   : > { %1494 = vmatpush1.bf16.msra.mxu1 %v7457_v63 }
 0x1ac   : > { %1495 = vmatprep.subr.bf16.mxu1 %v7462_v32 }
 0x1af   : > { %1496 = vmatpush1.bf16.msra.mxu1 %v7460_v33 }
 0x1b0   : > { %1497 = vmatprep.subr.bf16.mxu1 %v7465_v34 }
 0x1b3   : > { %1498 = vmatpush1.bf16.msra.mxu1 %v7463_v35 }
 0x1b4   : > { %1499 = vmatprep.subr.bf16.mxu1 %v7468_v36 }
 0x1b7   : > { %1500 = vmatpush1.bf16.msra.mxu1 %v7466_v37 }
 0x1b8   : > { %1501 = vmatprep.subr.bf16.mxu1 %v7471_v38 }
 0x1bb   : > { %1502 = vmatpush1.bf16.msra.mxu1 %v7469_v39 }
 0x1bc   : > { %1503 = vmatprep.subr.bf16.mxu1 %v7474_v40 }
 0x1bf   : > { %1504 = vmatpush1.bf16.msra.mxu1 %v7472_v41 }
 0x1c0   : > { %1505 = vmatprep.subr.bf16.mxu1 %v7477_v42 }
 0x1c3   : > { %1506 = vmatpush1.bf16.msra.mxu1 %v7475_v43 }
 0x259   : > { %v979_v6 = vpop.f32.mrb[0].mxu1 }
 0x25a   : > { %v980_v7 = vadd.f32 %v979_v6, %v778_v3  ;;  %v981_v8 = vpop.f32.mrb[1].mxu1 }
 0x25b   : > { %v982_v9 = vadd.f32 %v981_v8, %v782_v4  ;;  %v983_v10 = vpop.f32.mrb[2].mxu1 }
 0x25c   : > { %v988_v11 = vmul.f32 0.5, %v980_v7  ;;  %v984_v12 = vadd.f32 %v983_v10, %v778_v3  ;;  %v985_v13 = vpop.f32.mrb[3].mxu1 }
 0x25d   : > { %v989_v14 = vmul.f32 0.5, %v982_v9  ;;  %v986_v15 = vadd.f32 %v985_v13, %v782_v4 }
 0x25e   : > { %8158 = vtanh.f32 %v988_v11  ;;  %v990_v16 = vmul.f32 0.5, %v984_v12 }
 0x25f   : > { %8160 = vtanh.f32 %v989_v14  ;;  %v991_v17 = vmul.f32 0.5, %v986_v15 }
 0x260   : > { %8162 = vtanh.f32 %v990_v16 }
 0x261   : > { %8164 = vtanh.f32 %v991_v17 }
 0x268   : > { %v8159_v18 = vpop.eup %8158 }
 0x269   : > { %v8161_v19 = vpop.eup %8160  ;;  %v996_v20 = vadd.f32 1.0, %v8159_v18  ;;  %v7484_v18 = vld [vmem:[#allocation8 + $0x58] sm:$0xff]  }
 0x26a   : > { %v8163_v21 = vpop.eup %8162  ;;  %v997_v22 = vadd.f32 1.0, %v8161_v19  ;;  %v7485_v19 = vld [vmem:[#allocation8 + $0x18] sm:$0xff]  }
 0x26b   : > { %v8165_v23 = vpop.eup %8164  ;;  %v998_v24 = vadd.f32 1.0, %v8163_v21  ;;  %v1000_v26 = vmul.f32 %v996_v20, %v988_v11  ;;  %v7486_v20 = vld [vmem:[#allocation8 + $0x60] sm:$0xff]  }
 0x26c   : > { %v999_v25 = vadd.f32 1.0, %v8165_v23  ;;  %v1001_v28 = vmul.f32 %v997_v22, %v989_v14  ;;  %v7487_v21 = vld [vmem:[#allocation8 + $0x20] sm:$0xff]   ;;  %v7488_v22 = vld [vmem:[#allocation8 + $0x68] sm:$0xff]  }
 0x26d   : > { %v1002_v27 = vmul.f32 %v998_v24, %v990_v16  ;;  %v7482_v16 = vld [vmem:[#allocation8 + $0x50] sm:$0xff]   ;;  %v7489_v23 = vld [vmem:[#allocation8 + $0x28] sm:$0xff]  }
 0x26e   : > { %v1003_v29 = vmul.f32 %v999_v25, %v991_v17  ;;  %v7483_v17 = vld [vmem:[#allocation8 + $0x10] sm:$0xff]  }
 0x26f   : > { %v1004_v30 = vpack.c.bf16 %v1002_v27, %v1000_v26  ;;  %v7490_v24 = vld [vmem:[#allocation8 + $0x70] sm:$0xff]   ;;  %v7492_v26 = vld [vmem:[#allocation8 + $0x78] sm:$0xff]  }
 0x270   : > { %v1005_v31 = vpack.c.bf16 %v1003_v29, %v1001_v28  ;;  %v7491_v25 = vld [vmem:[#allocation8 + $0x30] sm:$0xff]   ;;  %v7493_v27 = vld [vmem:[#allocation8 + $0x38] sm:$0xff]   ;;  %v7494_v28 = vld [vmem:[%s9098_s1 + $0x14] ss:$8 sps:$4 sm:$0x7f]  }
 0x271   : > { %v6609_v29 = vld [vmem:[%s9145_s17] ss:$0 sm:$0xff]  ;;  %s9152_s17 = sld [smem:[#allocation23_spill]] (%p9151_p10) }
 0x272   : > { %1242 = vmatprep.mubr.bf16.mxu0 %v1005_v31  ;;  %1720 = vrot.lane.b32.xlu0 %v6609_v29, %s8491_s16  ;;  %v7542_v29 = vld [vmem:[#allocation3 + $0x1e4] ss:$8 sps:$4 sm:$0xff]   ;;  %s9149_s16 = sld [smem:[#allocation22_spill]] }
 0x273   : > { %1243 = vmatmul.mubr.bf16.vlgmr.msra.gmra.mrb[4].mxu0 %v1004_v30  ;;  %v1303_v30 = vld [vmem:[%s9146_s24] sm:$0x3] }
 0x274   : > { %7146 = vmatpush3.bf16.msra.mxu0 %v7479_v45  ;;  %v1308_v31 = vrot.slane %v1303_v30, %v8772_v1  ;;  %v1312_v32 = vrot.slane %v1303_v30, %v8774_v2  ;;  %v7540_v30 = vld [vmem:[#allocation3 + $0x1e0] ss:$8 sps:$4 sm:$0xff]  }
 0x275   : > { %7147 = vmatprep.subr.bf16.mxu0 %v7480_v46 }
 0x278   : > { %7148 = vmatpush3.bf16.msra.mxu0 %v7481_v47 }
 0x279   : > { %7149 = vmatprep.subr.bf16.mxu0 %v7482_v16  ;;  %v7519_v16 = vld [vmem:[#allocation3 + $0x170] ss:$8 sps:$4 sm:$0xff]  }
 0x27c   : > { %7150 = vmatpush3.bf16.msra.mxu0 %v7483_v17  ;;  %v7524_v17 = vld [vmem:[#allocation3 + $0x184] ss:$8 sps:$4 sm:$0xff]  }
 0x27d   : > { %7151 = vmatprep.subr.bf16.mxu0 %v7484_v18  ;;  %v7522_v18 = vld [vmem:[#allocation3 + $0x180] ss:$8 sps:$4 sm:$0xff]  }
 0x280   : > { %7152 = vmatpush3.bf16.msra.mxu0 %v7485_v19  ;;  %v7527_v19 = vld [vmem:[#allocation3 + $0x194] ss:$8 sps:$4 sm:$0xff]  }
 0x281   : > { %7153 = vmatprep.subr.bf16.mxu0 %v7486_v20  ;;  %v7525_v20 = vld [vmem:[#allocation3 + $0x190] ss:$8 sps:$4 sm:$0xff]  }
 0x284   : > { %7154 = vmatpush3.bf16.msra.mxu0 %v7487_v21  ;;  %v7530_v21 = vld [vmem:[#allocation3 + $0x1a4] ss:$8 sps:$4 sm:$0xff]  }
 0x285   : > { %7155 = vmatprep.subr.bf16.mxu0 %v7488_v22  ;;  %v7528_v22 = vld [vmem:[#allocation3 + $0x1a0] ss:$8 sps:$4 sm:$0xff]  }
 0x288   : > { %7156 = vmatpush3.bf16.msra.mxu0 %v7489_v23  ;;  %v7533_v23 = vld [vmem:[#allocation3 + $0x1b4] ss:$8 sps:$4 sm:$0xff]  }
 0x289   : > { %7157 = vmatprep.subr.bf16.mxu0 %v7490_v24  ;;  %v7531_v24 = vld [vmem:[#allocation3 + $0x1b0] ss:$8 sps:$4 sm:$0xff]  }
 0x28c   : > { %7158 = vmatpush3.bf16.msra.mxu0 %v7491_v25  ;;  %v7536_v25 = vld [vmem:[#allocation3 + $0x1c4] ss:$8 sps:$4 sm:$0xff]  }
 0x28d   : > { %7159 = vmatprep.subr.bf16.mxu0 %v7492_v26  ;;  %v7534_v26 = vld [vmem:[#allocation3 + $0x1c0] ss:$8 sps:$4 sm:$0xff]  }
 0x290   : > { %7160 = vmatpush3.bf16.msra.mxu0 %v7493_v27  ;;  %v7539_v27 = vld [vmem:[#allocation3 + $0x1d4] ss:$8 sps:$4 sm:$0xff]  }
 0x291   : > { %6620 = vmatprep.subr.msk.bf16.mxu0 %vm673_vm0, %v7494_v28  ;;  %v7537_v28 = vld [vmem:[#allocation3 + $0x1d0] ss:$8 sps:$4 sm:$0xff]  }
 0x346   : > { %v1244_v51 = vpop.f32.mrb[4].mxu0 }
 0x347   : > { %v1245_v52 = vadd.f32 %v1244_v51, %v1043_v49  ;;  %v1246_v53 = vpop.f32.mrb[5].mxu0 }
 0x348   : > { %v1247_v54 = vadd.f32 %v1246_v53, %v1047_v50  ;;  %v1248_v55 = vpop.f32.mrb[6].mxu0 }
 0x349   : > { %v1253_v56 = vmul.f32 0.5, %v1245_v52  ;;  %v1249_v57 = vadd.f32 %v1248_v55, %v1043_v49  ;;  %v1250_v58 = vpop.f32.mrb[7].mxu0  ;;  %v7496_v55 = vld [vmem:[%s9098_s1 + $0x10] ss:$8 sps:$4 sm:$0x7f]  }
 0x34a   : > { %v1254_v59 = vmul.f32 0.5, %v1247_v54  ;;  %v1251_v60 = vadd.f32 %v1250_v58, %v1047_v50 }
 0x34b   : > { %8166 = vtanh.f32 %v1253_v56  ;;  %v1255_v61 = vmul.f32 0.5, %v1249_v57 }
 0x34c   : > { %8168 = vtanh.f32 %v1254_v59  ;;  %v1256_v62 = vmul.f32 0.5, %v1251_v60  ;;  %v1795_v60 = vsel %vm673_vm0, %v7496_v55, 0 }
 0x34d   : > { %8170 = vtanh.f32 %v1255_v61 }
 0x34e   : > { %8172 = vtanh.f32 %v1256_v62 }
 0x355   : > { %v8167_v63 = vpop.eup %8166 }
 0x356   : > { %v8169_v0 = vpop.eup %8168  ;;  %v1261_v3 = vadd.f32 1.0, %v8167_v63  ;;  %v7498_v63 = vld [vmem:[#allocation3 + $0x100] ss:$8 sps:$4 sm:$0xff]  }
 0x357   : > { %v8171_v4 = vpop.eup %8170  ;;  %v1262_v6 = vadd.f32 1.0, %v8169_v0  ;;  %v7503_v0 = vld [vmem:[#allocation3 + $0x114] ss:$8 sps:$4 sm:$0xff]  }
 0x358   : > { %v8173_v7 = vpop.eup %8172  ;;  %v1263_v8 = vadd.f32 1.0, %v8171_v4  ;;  %v1265_v10 = vmul.f32 %v1261_v3, %v1253_v56  ;;  %v7501_v3 = vld [vmem:[#allocation3 + $0x110] ss:$8 sps:$4 sm:$0xff]   ;;  %v7506_v4 = vld [vmem:[#allocation3 + $0x124] ss:$8 sps:$4 sm:$0xff]  }
 0x359   : > { %v1264_v9 = vadd.f32 1.0, %v8173_v7  ;;  %v1266_v12 = vmul.f32 %v1262_v6, %v1254_v59  ;;  %v7504_v6 = vld [vmem:[#allocation3 + $0x120] ss:$8 sps:$4 sm:$0xff]   ;;  %v7509_v7 = vld [vmem:[#allocation3 + $0x134] ss:$8 sps:$4 sm:$0xff]  }
 0x35a   : > { %v1267_v11 = vmul.f32 %v1263_v8, %v1255_v61  ;;  %v7500_v61 = vld [vmem:[#allocation3 + $0x104] ss:$8 sps:$4 sm:$0xff]   ;;  %v7507_v8 = vld [vmem:[#allocation3 + $0x130] ss:$8 sps:$4 sm:$0xff]  }
 0x35b   : > { %v1268_v13 = vmul.f32 %v1264_v9, %v1256_v62  ;;  %v7497_v62 = vld [vmem:[%s8744_s11 + $0x8] sm:$0xff]  }
 0x35c   : > { %v1269_v14 = vpack.c.bf16 %v1267_v11, %v1265_v10  ;;  %v7512_v9 = vld [vmem:[#allocation3 + $0x144] ss:$8 sps:$4 sm:$0xff]   ;;  %v7510_v10 = vld [vmem:[#allocation3 + $0x140] ss:$8 sps:$4 sm:$0xff]   ;;  %v7515_v11 = vld [vmem:[#allocation3 + $0x154] ss:$8 sps:$4 sm:$0xff]  }
 0x35d   : > { %v1270_v15 = vpack.c.bf16 %v1268_v13, %v1266_v12  ;;  %v7513_v12 = vld [vmem:[#allocation3 + $0x150] ss:$8 sps:$4 sm:$0xff]   ;;  %v7518_v13 = vld [vmem:[#allocation3 + $0x164] ss:$8 sps:$4 sm:$0xff]  }
 0x35f   : > { %1507 = vmatprep.mubr.bf16.mxu1 %v1270_v15  ;;  %v7521_v15 = vld [vmem:[#allocation3 + $0x174] ss:$8 sps:$4 sm:$0xff]  }
 0x360   : > { %1508 = vmatmul.mubr.bf16.vlgmr.msra.gmra.mrb[4].mxu1 %v1269_v14  ;;  %v7516_v14 = vld [vmem:[#allocation3 + $0x160] ss:$8 sps:$4 sm:$0xff]  }
 0x433   : > { %v1509_v33 = vpop.f32.mrb[4].mxu1 }
 0x434   : > { %v1510_v34 = vadd.f32 %v1509_v33, %v1308_v31  ;;  %v1511_v35 = vpop.f32.mrb[5].mxu1 }
 0x435   : > { %v1512_v36 = vadd.f32 %v1511_v35, %v1312_v32  ;;  %v1513_v37 = vpop.f32.mrb[6].mxu1 }
 0x436   : > { %v1518_v38 = vmul.f32 0.5, %v1510_v34  ;;  %v1514_v39 = vadd.f32 %v1513_v37, %v1308_v31  ;;  %v1515_v40 = vpop.f32.mrb[7].mxu1  ;;  %v7545_v31 = vld [vmem:[#allocation3 + $0x1f4] ss:$8 sps:$4 sm:$0xff]   ;;  %v6592_v34 = vld [vmem:[%s9147_s23] ss:$0 sm:$0xff] }
 0x437   : > { %v1519_v41 = vmul.f32 0.5, %v1512_v36  ;;  %v1516_v42 = vadd.f32 %v1515_v40, %v1312_v32  ;;  %v7543_v32 = vld [vmem:[#allocation3 + $0x1f0] ss:$8 sps:$4 sm:$0xff]   ;;  %v8817_v40 = vpop.permute.xlu0 %1720 }
 0x438   : > { %8174 = vtanh.f32 %v1518_v38  ;;  %v1520_v43 = vmul.f32 0.5, %v1514_v39 }
 0x439   : > { %8176 = vtanh.f32 %v1519_v41  ;;  %v1521_v44 = vmul.f32 0.5, %v1516_v42 }
 0x43a   : > { %8178 = vtanh.f32 %v1520_v43 }
 0x43b   : > { %8180 = vtanh.f32 %v1521_v44 }
 0x442   : > { %v8175_v45 = vpop.eup %8174 }
 0x443   : > { %v8177_v46 = vpop.eup %8176  ;;  %v1526_v47 = vadd.f32 1.0, %v8175_v45 }
 0x444   : > { %v8179_v48 = vpop.eup %8178  ;;  %v1527_v49 = vadd.f32 1.0, %v8177_v46 }
 0x445   : > { %v8181_v50 = vpop.eup %8180  ;;  %v1528_v51 = vadd.f32 1.0, %v8179_v48  ;;  %v1530_v53 = vmul.f32 %v1526_v47, %v1518_v38  ;;  %v6616_v38 = vld [vmem:[%s9099_s2 + $0x2] sm:$0x3] }
 0x446   : > { %v1529_v52 = vadd.f32 1.0, %v8181_v50  ;;  %v1531_v56 = vmul.f32 %v1527_v49, %v1519_v41  ;;  %v1775_v45 = vrot.slane %v6616_v38, %v8774_v2 }
 0x447   : > { %v1532_v54 = vmul.f32 %v1528_v51, %v1520_v43  ;;  %v1771_v43 = vrot.slane %v6616_v38, %v8772_v1  ;;  %v7570_v38 = vld [vmem:[#allocation5 + $0x180] ss:$8 sps:$4 sm:$0xff]  }
 0x448   : > { %v1533_v57 = vmul.f32 %v1529_v52, %v1521_v44 }
 0x449   : > { %v1534_v58 = vpack.c.bf16 %v1532_v54, %v1530_v53 }
 0x44a   : > { %v1535_v59 = vpack.c.bf16 %v1533_v57, %v1531_v56 }
 0x44c   : > { %1703 = vmatprep.mubr.bf16.mxu0 %v1535_v59 }
 0x44d   : > { %1704 = vmatmul.mubr.bf16.vlgmr.msra.gmra.mrb[8].mxu0 %v1534_v58 }
 0x44e   : > { %1801 = vmatpush1.bf16.msra.mxu0 %v1795_v60  ;;  %1832 = vmatprep.mubr.bf16.mxu0 %v8490_v5 }
 0x44f   : > { %2067 = vmatprep.subr.bf16.mxu0 %v7500_v61 }
 0x455   : > { %6621 = vmatmul.mubr.msk.bf16.vlgmr.msra.gmra.mrb[12].mxu0 %vm669_vm1, %v7497_v62  ;;  %v7546_v62 = vld [vmem:[#allocation5 + $0x100] ss:$8 sps:$4 sm:$0xff]  }
 0x456   : > { %2068 = vmatpush1.bf16.msra.mxu0 %v7498_v63  ;;  %v7548_v63 = vld [vmem:[#allocation5 + $0x104] ss:$8 sps:$4 sm:$0xff]  }
 0x457   : > { %2069 = vmatprep.subr.bf16.mxu0 %v7503_v0  ;;  %v7551_v0 = vld [vmem:[#allocation5 + $0x114] ss:$8 sps:$4 sm:$0xff]   ;;  %2334 = vmatprep.subr.bf16.mxu1 %v7548_v63 }
 0x458   : > { %2335 = vmatpush1.bf16.msra.mxu1 %v7546_v62  ;;  %v7596_v62 = vld [vmem:[#allocation7 + $0x104] ss:$8 sps:$4 sm:$0xff]  }
 0x459   : > { %2336 = vmatprep.subr.bf16.mxu1 %v7551_v0  ;;  %v7599_v0 = vld [vmem:[#allocation7 + $0x114] ss:$8 sps:$4 sm:$0xff]  }
 0x45a   : > { %2070 = vmatpush1.bf16.msra.mxu0 %v7501_v3 }
 0x45b   : > { %2071 = vmatprep.subr.bf16.mxu0 %v7506_v4 }
 0x45e   : > { %2072 = vmatpush1.bf16.msra.mxu0 %v7504_v6  ;;  %v7549_v6 = vld [vmem:[#allocation5 + $0x110] ss:$8 sps:$4 sm:$0xff]  }
 0x45f   : > { %2073 = vmatprep.subr.bf16.mxu0 %v7509_v7  ;;  %2337 = vmatpush1.bf16.msra.mxu1 %v7549_v6  ;;  %v7600_v6 = vld [vmem:[#allocation7 + $0x120] ss:$8 sps:$4 sm:$0xff]  }
 0x462   : > { %2074 = vmatpush1.bf16.msra.mxu0 %v7507_v8  ;;  %v7554_v8 = vld [vmem:[#allocation5 + $0x124] ss:$8 sps:$4 sm:$0xff]  }
 0x463   : > { %2075 = vmatprep.subr.bf16.mxu0 %v7512_v9  ;;  %2338 = vmatprep.subr.bf16.mxu1 %v7554_v8  ;;  %v7603_v8 = vld [vmem:[#allocation7 + $0x130] ss:$8 sps:$4 sm:$0xff]  }
 0x466   : > { %2076 = vmatpush1.bf16.msra.mxu0 %v7510_v10 }
 0x467   : > { %2077 = vmatprep.subr.bf16.mxu0 %v7515_v11 }
 0x46a   : > { %2078 = vmatpush1.bf16.msra.mxu0 %v7513_v12 }
 0x46b   : > { %2079 = vmatprep.subr.bf16.mxu0 %v7518_v13 }
 0x46e   : > { %2080 = vmatpush1.bf16.msra.mxu0 %v7516_v14 }
 0x46f   : > { %2081 = vmatprep.subr.bf16.mxu0 %v7521_v15 }
 0x472   : > { %2082 = vmatpush1.bf16.msra.mxu0 %v7519_v16 }
 0x473   : > { %2083 = vmatprep.subr.bf16.mxu0 %v7524_v17  ;;  %v7552_v17 = vld [vmem:[#allocation5 + $0x120] ss:$8 sps:$4 sm:$0xff]  }
 0x474   : > { %2339 = vmatpush1.bf16.msra.mxu1 %v7552_v17  ;;  %v7620_v17 = vld [vmem:[#allocation7 + $0x184] ss:$8 sps:$4 sm:$0xff]  }
 0x476   : > { %2084 = vmatpush1.bf16.msra.mxu0 %v7522_v18 }
 0x477   : > { %2085 = vmatprep.subr.bf16.mxu0 %v7527_v19 }
 0x47a   : > { %2086 = vmatpush1.bf16.msra.mxu0 %v7525_v20  ;;  %v7557_v20 = vld [vmem:[#allocation5 + $0x134] ss:$8 sps:$4 sm:$0xff]  }
 0x47b   : > { %2087 = vmatprep.subr.bf16.mxu0 %v7530_v21  ;;  %2340 = vmatprep.subr.bf16.mxu1 %v7557_v20  ;;  %v7621_v20 = vld [vmem:[#allocation7 + $0x190] ss:$8 sps:$4 sm:$0xff]  }
 0x47e   : > { %2088 = vmatpush1.bf16.msra.mxu0 %v7528_v22 }
 0x47f   : > { %2089 = vmatprep.subr.bf16.mxu0 %v7533_v23 }
 0x482   : > { %2090 = vmatpush1.bf16.msra.mxu0 %v7531_v24 }
 0x483   : > { %2091 = vmatprep.subr.bf16.mxu0 %v7536_v25 }
 0x486   : > { %2092 = vmatpush1.bf16.msra.mxu0 %v7534_v26  ;;  %v7555_v26 = vld [vmem:[#allocation5 + $0x130] ss:$8 sps:$4 sm:$0xff]  }
 0x487   : > { %2093 = vmatprep.subr.bf16.mxu0 %v7539_v27  ;;  %2341 = vmatpush1.bf16.msra.mxu1 %v7555_v26 }
 0x48a   : > { %2094 = vmatpush1.bf16.msra.mxu0 %v7537_v28  ;;  %v7560_v28 = vld [vmem:[#allocation5 + $0x144] ss:$8 sps:$4 sm:$0xff]  }
 0x48b   : > { %2095 = vmatprep.subr.bf16.mxu0 %v7542_v29  ;;  %2342 = vmatprep.subr.bf16.mxu1 %v7560_v28 }
 0x48e   : > { %2096 = vmatpush1.bf16.msra.mxu0 %v7540_v30  ;;  %v7558_v30 = vld [vmem:[#allocation5 + $0x140] ss:$8 sps:$4 sm:$0xff]  }
 0x48f   : > { %2097 = vmatprep.subr.bf16.mxu0 %v7545_v31  ;;  %v7563_v31 = vld [vmem:[#allocation5 + $0x154] ss:$8 sps:$4 sm:$0xff]   ;;  %2343 = vmatpush1.bf16.msra.mxu1 %v7558_v30 }
 0x490   : > { %2344 = vmatprep.subr.bf16.mxu1 %v7563_v31 }
 0x492   : > { %2098 = vmatpush1.bf16.msra.mxu0 %v7543_v32  ;;  %v7561_v32 = vld [vmem:[#allocation5 + $0x150] ss:$8 sps:$4 sm:$0xff]  }
 0x493   : > { %2345 = vmatpush1.bf16.msra.mxu1 %v7561_v32  ;;  %2601 = vmatprep.subr.bf16.mxu0 %v7596_v62  ;;  %v7636_v62 = vld [vmem:[#allocation7 + $0x1e0] ss:$8 sps:$4 sm:$0xff]  }
 0x520   : > { %v7161_v33 = vpop.f32.mrb[8].mxu0 }
 0x521   : > { %v7162_v35 = vpop.f32.mrb[9].mxu0 }
 0x522   : > { %v7163_v36 = vadd.f32 %v7162_v35, %v7161_v33  ;;  %v7164_v37 = vpop.f32.mrb[10].mxu0  ;;  %v7566_v33 = vld [vmem:[#allocation5 + $0x164] ss:$8 sps:$4 sm:$0xff]   ;;  %v7569_v35 = vld [vmem:[#allocation5 + $0x174] ss:$8 sps:$4 sm:$0xff]  }
 0x523   : > { %v7165_v39 = vpop.f32.mrb[11].mxu0  ;;  %2346 = vmatprep.subr.bf16.mxu1 %v7566_v33 }
 0x524   : > { %v1706_v41 = vadd.f32 %v7163_v36, %v6592_v34  ;;  %v7166_v42 = vadd.f32 %v7165_v39, %v7164_v37  ;;  %v7567_v36 = vld [vmem:[#allocation5 + $0x170] ss:$8 sps:$4 sm:$0xff]   ;;  %v7572_v37 = vld [vmem:[#allocation5 + $0x184] ss:$8 sps:$4 sm:$0xff]   ;;  %v7575_v39 = vld [vmem:[#allocation5 + $0x194] ss:$8 sps:$4 sm:$0xff]  }
 0x526   : > { %1713 = vst.msk [vmem:[%s8821_s18] sm:$0xff] %vm1712_vm2, %v1706_v41  ;;  %v1709_v44 = vadd.f32 %v7166_v42, %v6592_v34  ;;  %v1723_v46 = vsub.f32 %v1706_v41, %v8817_v40  ;;  %v7564_v34 = vld [vmem:[#allocation5 + $0x160] ss:$8 sps:$4 sm:$0xff]   ;;  %v7573_v41 = vld [vmem:[#allocation5 + $0x190] ss:$8 sps:$4 sm:$0xff]  }
 0x527   : > { %2347 = vmatpush1.bf16.msra.mxu1 %v7564_v34  ;;  %v7578_v42 = vld [vmem:[#allocation5 + $0x1a4] ss:$8 sps:$4 sm:$0xff]  }
 0x528   : > { %1714 = vst.msk [vmem:[%s8821_s18 + $0x8] sm:$0xff] %vm1712_vm2, %v1709_v44  ;;  %v1834_v47 = vpop.f32.mrb[12].mxu0  ;;  %v1725_v48 = vmul.f32 0.5, %v1723_v46  ;;  %v1724_v49 = vsub.f32 %v1709_v44, %v8817_v40  ;;  %2348 = vmatprep.subr.bf16.mxu1 %v7569_v35  ;;  %v7581_v44 = vld [vmem:[#allocation5 + $0x1b4] ss:$8 sps:$4 sm:$0xff]  }
 0x529   : > { %v1835_v50 = vadd.f32 %v1834_v47, %v1771_v43  ;;  %v1836_v51 = vpop.f32.mrb[13].mxu0  ;;  %v7584_v46 = vld [vmem:[#allocation5 + $0x1c4] ss:$8 sps:$4 sm:$0xff]   ;;  %v7582_v47 = vld [vmem:[#allocation5 + $0x1c0] ss:$8 sps:$4 sm:$0xff]  }
 0x52a   : > { %v1837_v52 = vadd.f32 %v1836_v51, %v1775_v45  ;;  %v1838_v53 = vpop.f32.mrb[14].mxu0  ;;  %8182 = vtanh.f32 %v1725_v48  ;;  %v1726_v54 = vmul.f32 0.5, %v1724_v49  ;;  %v7587_v48 = vld [vmem:[#allocation5 + $0x1d4] ss:$8 sps:$4 sm:$0xff]   ;;  %v7585_v49 = vld [vmem:[#allocation5 + $0x1d0] ss:$8 sps:$4 sm:$0xff]  }
 0x52b   : > { %v1843_v55 = vmul.f32 0.5, %v1835_v50  ;;  %v1839_v56 = vadd.f32 %v1838_v53, %v1771_v43  ;;  %v1840_v57 = vpop.f32.mrb[15].mxu0  ;;  %2349 = vmatpush1.bf16.msra.mxu1 %v7567_v36  ;;  %v7576_v43 = vld [vmem:[#allocation5 + $0x1a0] ss:$8 sps:$4 sm:$0xff]   ;;  %v7590_v50 = vld [vmem:[#allocation5 + $0x1e4] ss:$8 sps:$4 sm:$0xff]  }
 0x52c   : > { %v1844_v58 = vmul.f32 0.5, %v1837_v52  ;;  %v1841_v59 = vadd.f32 %v1840_v57, %v1775_v45  ;;  %8184 = vtanh.f32 %v1726_v54  ;;  %2350 = vmatprep.subr.bf16.mxu1 %v7572_v37  ;;  %v7579_v45 = vld [vmem:[#allocation5 + $0x1b0] ss:$8 sps:$4 sm:$0xff]   ;;  %v7588_v51 = vld [vmem:[#allocation5 + $0x1e0] ss:$8 sps:$4 sm:$0xff]  }
 0x52d   : > { %8186 = vtanh.f32 %v1843_v55  ;;  %v1845_v60 = vmul.f32 0.5, %v1839_v56  ;;  %v8835_v52 = vld [vmem:[%s9148_s27] ss:$0 sm:$0xff]  ;;  %v7593_v53 = vld [vmem:[#allocation5 + $0x1f4] ss:$8 sps:$4 sm:$0xff]  }
 0x52e   : > { %8188 = vtanh.f32 %v1844_v58  ;;  %v1846_v61 = vmul.f32 0.5, %v1841_v59  ;;  %v7591_v54 = vld [vmem:[#allocation5 + $0x1f0] ss:$8 sps:$4 sm:$0xff]  }
 0x52f   : > { %8190 = vtanh.f32 %v1845_v60  ;;  %2351 = vmatpush1.bf16.msra.mxu1 %v7570_v38 }
 0x530   : > { %8192 = vtanh.f32 %v1846_v61  ;;  %2352 = vmatprep.subr.bf16.mxu1 %v7575_v39 }
 0x533   : > { %2353 = vmatpush1.bf16.msra.mxu1 %v7573_v41 }
 0x534   : > { %v8183_v3 = vpop.eup %8182  ;;  %2354 = vmatprep.subr.bf16.mxu1 %v7578_v42 }
 0x535   : > { %v1729_v4 = vadd.f32 1.0, %v8183_v3  ;;  %v7597_v3 = vld [vmem:[#allocation7 + $0x110] ss:$8 sps:$4 sm:$0xff]  }
 0x536   : > { %v8185_v7 = vpop.eup %8184 }
 0x537   : > { %v8187_v9 = vpop.eup %8186  ;;  %v1731_v10 = vmul.f32 0.5, %v1729_v4  ;;  %v1730_v11 = vadd.f32 1.0, %v8185_v7  ;;  %2355 = vmatpush1.bf16.msra.mxu1 %v7576_v43  ;;  %v7602_v4 = vld [vmem:[#allocation7 + $0x124] ss:$8 sps:$4 sm:$0xff]   ;;  %v7605_v7 = vld [vmem:[#allocation7 + $0x134] ss:$8 sps:$4 sm:$0xff]  }
 0x538   : > { %v8189_v12 = vpop.eup %8188  ;;  %v1851_v13 = vadd.f32 1.0, %v8187_v9  ;;  %2356 = vmatprep.subr.bf16.mxu1 %v7581_v44  ;;  %v7608_v9 = vld [vmem:[#allocation7 + $0x144] ss:$8 sps:$4 sm:$0xff]  }
 0x539   : > { %v8191_v14 = vpop.eup %8190  ;;  %v1852_v15 = vadd.f32 1.0, %v8189_v12  ;;  %1741 = vrot.lane.b32.xlu0 %v1731_v10, %s8492_s20  ;;  %v1732_v16 = vmul.f32 0.5, %v1730_v11  ;;  %v7606_v10 = vld [vmem:[#allocation7 + $0x140] ss:$8 sps:$4 sm:$0xff]   ;;  %v7611_v11 = vld [vmem:[#allocation7 + $0x154] ss:$8 sps:$4 sm:$0xff]  }
 0x53a   : > { %v8193_v18 = vpop.eup %8192  ;;  %v1853_v19 = vadd.f32 1.0, %v8191_v14  ;;  %v1855_v22 = vmul.f32 %v1851_v13, %v1843_v55  ;;  %v8840_v55 = vld [vmem:[%s9149_s16] ss:$0 sm:$0xff]  ;;  %v7614_v13 = vld [vmem:[#allocation7 + $0x164] ss:$8 sps:$4 sm:$0xff]  }
 0x53b   : > { %v1854_v21 = vadd.f32 1.0, %v8193_v18  ;;  %1743 = vrot.lane.b32.xlu1 %v1732_v16, %s8492_s20  ;;  %v1856_v24 = vmul.f32 %v1852_v15, %v1844_v58  ;;  %2357 = vmatpush1.bf16.msra.mxu1 %v7579_v45  ;;  %v7609_v12 = vld [vmem:[#allocation7 + $0x150] ss:$8 sps:$4 sm:$0xff]   ;;  %v7612_v14 = vld [vmem:[#allocation7 + $0x160] ss:$8 sps:$4 sm:$0xff]  }
 0x53c   : > { %v1857_v23 = vmul.f32 %v1853_v19, %v1845_v60  ;;  %2358 = vmatprep.subr.bf16.mxu1 %v7584_v46  ;;  %v7617_v15 = vld [vmem:[#allocation7 + $0x174] ss:$8 sps:$4 sm:$0xff]   ;;  %v7615_v16 = vld [vmem:[#allocation7 + $0x170] ss:$8 sps:$4 sm:$0xff]   ;;  %v7618_v18 = vld [vmem:[#allocation7 + $0x180] ss:$8 sps:$4 sm:$0xff]  }
 0x53d   : > { %v1858_v25 = vmul.f32 %v1854_v21, %v1846_v61  ;;  %v7594_v61 = vld [vmem:[#allocation7 + $0x100] ss:$8 sps:$4 sm:$0xff]   ;;  %v7623_v19 = vld [vmem:[#allocation7 + $0x194] ss:$8 sps:$4 sm:$0xff]   ;;  %v6622_v21 = vld [vmem:[%s9101_s4 + $0x2] sm:$0x3] }
 0x53e   : > { %v1859_v27 = vpack.c.bf16 %v1857_v23, %v1855_v22  ;;  %v1900_v22 = vrot.slane %v6622_v21, %v8772_v1  ;;  %v1904_v23 = vrot.slane %v6622_v21, %v8774_v2 }
 0x53f   : > { %v1860_v29 = vpack.c.bf16 %v1858_v25, %v1856_v24  ;;  %2359 = vmatpush1.bf16.msra.mxu1 %v7582_v47 }
 0x540   : > { %2360 = vmatprep.subr.bf16.mxu1 %v7587_v48 }
 0x541   : > { %2099 = vmatprep.mubr.bf16.mxu0 %v1860_v29 }
 0x542   : > { %2100 = vmatmul.mubr.bf16.vlgmr.msra.gmra.mrb[16].mxu0 %v1859_v27 }
 0x543   : > { %2361 = vmatpush1.bf16.msra.mxu1 %v7585_v49  ;;  %2602 = vmatpush1.bf16.msra.mxu0 %v7594_v61  ;;  %v7638_v61 = vld [vmem:[#allocation7 + $0x1e4] ss:$8 sps:$4 sm:$0xff]  }
 0x544   : > { %2362 = vmatprep.subr.bf16.mxu1 %v7590_v50  ;;  %2603 = vmatprep.subr.bf16.mxu0 %v7599_v0  ;;  %v7639_v0 = vld [vmem:[#allocation7 + $0x1f0] ss:$8 sps:$4 sm:$0xff]  }
 0x547   : > { %2363 = vmatpush1.bf16.msra.mxu1 %v7588_v51  ;;  %2604 = vmatpush1.bf16.msra.mxu0 %v7597_v3  ;;  %v7626_v51 = vld [vmem:[#allocation7 + $0x1a4] ss:$8 sps:$4 sm:$0xff]   ;;  %v7642_v3 = vld [vmem:[%s9098_s1 + $0x24] ss:$8 sps:$4 sm:$0x7f]  }
 0x548   : > { %2364 = vmatprep.subr.bf16.mxu1 %v7593_v53  ;;  %2605 = vmatprep.subr.bf16.mxu0 %v7602_v4  ;;  %v7624_v53 = vld [vmem:[#allocation7 + $0x1a0] ss:$8 sps:$4 sm:$0xff]  }
 0x549   : > { %v7646_v4 = vld [vmem:[#allocation8 + $0xc0] sm:$0xff]  }
 0x54b   : > { %2365 = vmatpush1.bf16.msra.mxu1 %v7591_v54  ;;  %2606 = vmatpush1.bf16.msra.mxu0 %v7600_v6  ;;  %v7629_v54 = vld [vmem:[#allocation7 + $0x1b4] ss:$8 sps:$4 sm:$0xff]   ;;  %v7647_v6 = vld [vmem:[#allocation8 + $0x80] sm:$0xff]  }
 0x54c   : > { %2607 = vmatprep.subr.bf16.mxu0 %v7605_v7  ;;  %v7648_v7 = vld [vmem:[#allocation8 + $0xc8] sm:$0xff]   ;;  %7167 = vmatprep.subr.bf16.mxu1 %v7646_v4 }
 0x54f   : > { %2608 = vmatpush1.bf16.msra.mxu0 %v7603_v8  ;;  %v7649_v8 = vld [vmem:[#allocation8 + $0x88] sm:$0xff]  }
 0x550   : > { %2609 = vmatprep.subr.bf16.mxu0 %v7608_v9  ;;  %v6655_v9 = vld [vmem:[%s9103_s6 + $0x2] sm:$0x3] }
 0x553   : > { %2610 = vmatpush1.bf16.msra.mxu0 %v7606_v10  ;;  %v2167_v10 = vrot.slane %v6655_v9, %v8772_v1 }
 0x554   : > { %2611 = vmatprep.subr.bf16.mxu0 %v7611_v11  ;;  %v2171_v11 = vrot.slane %v6655_v9, %v8774_v2 }
 0x557   : > { %2612 = vmatpush1.bf16.msra.mxu0 %v7609_v12 }
 0x558   : > { %2613 = vmatprep.subr.bf16.mxu0 %v7614_v13 }
 0x55b   : > { %2614 = vmatpush1.bf16.msra.mxu0 %v7612_v14 }
 0x55c   : > { %2615 = vmatprep.subr.bf16.mxu0 %v7617_v15 }
 0x55f   : > { %2616 = vmatpush1.bf16.msra.mxu0 %v7615_v16 }
 0x560   : > { %2617 = vmatprep.subr.bf16.mxu0 %v7620_v17 }
 0x563   : > { %2618 = vmatpush1.bf16.msra.mxu0 %v7618_v18 }
 0x564   : > { %2619 = vmatprep.subr.bf16.mxu0 %v7623_v19 }
 0x567   : > { %2620 = vmatpush1.bf16.msra.mxu0 %v7621_v20 }
 0x568   : > { %2621 = vmatprep.subr.bf16.mxu0 %v7626_v51  ;;  %v7659_v51 = vld [vmem:[#allocation8 + $0xb0] sm:$0xff]  }
 0x56b   : > { %2622 = vmatpush1.bf16.msra.mxu0 %v7624_v53  ;;  %v7660_v53 = vld [vmem:[#allocation8 + $0xf8] sm:$0xff]  }
 0x56c   : > { %2623 = vmatprep.subr.bf16.mxu0 %v7629_v54  ;;  %v7661_v54 = vld [vmem:[#allocation8 + $0xb8] sm:$0xff]  }
 0x5ab   : > { %v1742_v56 = vpop.permute.xlu0 %1741 }
 0x5ac   : > { %v1747_v57 = vmul.f32 %v8835_v52, %v1742_v56  ;;  %v7627_v56 = vld [vmem:[#allocation7 + $0x1b0] ss:$8 sps:$4 sm:$0xff]  }
 0x5ad   : > { %v1744_v58 = vpop.permute.xlu1 %1743  ;;  %2624 = vmatpush1.bf16.msra.mxu0 %v7627_v56  ;;  %v7664_v56 = vld [vmem:[#allocation3 + $0x204] ss:$8 sps:$4 sm:$0xff]  }
 0x5ae   : > { %v1755_v59 = vadd.f32 %v8840_v55, %v1747_v57  ;;  %v1748_v60 = vmul.f32 %v8835_v52, %v1744_v58  ;;  %v7632_v57 = vld [vmem:[#allocation7 + $0x1c4] ss:$8 sps:$4 sm:$0xff]   ;;  %v7630_v58 = vld [vmem:[#allocation7 + $0x1c0] ss:$8 sps:$4 sm:$0xff]  }
 0x5af   : > { %2625 = vmatprep.subr.bf16.mxu0 %v7632_v57  ;;  %v6688_v57 = vld [vmem:[%s9146_s24 + $0x2] sm:$0x3] }
 0x5b0   : > { %1757 = vst.msk [vmem:[%s8846_s26] sm:$0xff] %vm1712_vm2, %v1755_v59  ;;  %v1756_v63 = vadd.f32 %v8840_v55, %v1748_v60  ;;  %v7635_v59 = vld [vmem:[#allocation7 + $0x1d4] ss:$8 sps:$4 sm:$0xff]   ;;  %v7633_v60 = vld [vmem:[#allocation7 + $0x1d0] ss:$8 sps:$4 sm:$0xff]  }
 0x5b1   : > { %2626 = vmatpush1.bf16.msra.mxu0 %v7630_v58  ;;  %v2434_v58 = vrot.slane %v6688_v57, %v8772_v1 }
 0x5b2   : > { %1758 = vst.msk [vmem:[%s8846_s26 + $0x8] sm:$0xff] %vm1712_vm2, %v1756_v63  ;;  %2627 = vmatprep.subr.bf16.mxu0 %v7635_v59  ;;  %v7641_v63 = vld [vmem:[#allocation7 + $0x1f4] ss:$8 sps:$4 sm:$0xff]   ;;  %v2438_v59 = vrot.slane %v6688_v57, %v8774_v2 }
 0x5b5   : > { %2628 = vmatpush1.bf16.msra.mxu0 %v7633_v60 }
 0x5b6   : > { %2629 = vmatprep.subr.bf16.mxu0 %v7638_v61 }
 0x5b9   : > { %2630 = vmatpush1.bf16.msra.mxu0 %v7636_v62 }
 0x5ba   : > { %2631 = vmatprep.subr.bf16.mxu0 %v7641_v63 }
 0x5bd   : > { %2632 = vmatpush1.bf16.msra.mxu0 %v7639_v0 }
 0x5be   : > { %6751 = vmatprep.subr.msk.bf16.mxu0 %vm673_vm0, %v7642_v3  ;;  %v6747_v3 = vld [vmem:[%s9099_s2 + $0x4] sm:$0x3] }
 0x615   : > { %v2101_v24 = vpop.f32.mrb[16].mxu0 }
 0x616   : > { %v2102_v25 = vadd.f32 %v2101_v24, %v1900_v22  ;;  %v2103_v26 = vpop.f32.mrb[17].mxu0 }
 0x617   : > { %v2104_v27 = vadd.f32 %v2103_v26, %v1904_v23  ;;  %v2105_v28 = vpop.f32.mrb[18].mxu0 }
 0x618   : > { %v2110_v29 = vmul.f32 0.5, %v2102_v25  ;;  %v2106_v30 = vadd.f32 %v2105_v28, %v1900_v22  ;;  %v2107_v31 = vpop.f32.mrb[19].mxu0 }
 0x619   : > { %v2111_v32 = vmul.f32 0.5, %v2104_v27  ;;  %v2108_v33 = vadd.f32 %v2107_v31, %v1904_v23 }
 0x61a   : > { %8194 = vtanh.f32 %v2110_v29  ;;  %v2112_v34 = vmul.f32 0.5, %v2106_v30 }
 0x61b   : > { %8196 = vtanh.f32 %v2111_v32  ;;  %v2113_v35 = vmul.f32 0.5, %v2108_v33 }
 0x61c   : > { %8198 = vtanh.f32 %v2112_v34 }
 0x61d   : > { %8200 = vtanh.f32 %v2113_v35 }
 0x624   : > { %v8195_v36 = vpop.eup %8194 }
 0x625   : > { %v8197_v37 = vpop.eup %8196  ;;  %v2118_v38 = vadd.f32 1.0, %v8195_v36 }
 0x626   : > { %v8199_v39 = vpop.eup %8198  ;;  %v2119_v41 = vadd.f32 1.0, %v8197_v37 }
 0x627   : > { %v8201_v42 = vpop.eup %8200  ;;  %v2120_v43 = vadd.f32 1.0, %v8199_v39  ;;  %v2122_v45 = vmul.f32 %v2118_v38, %v2110_v29 }
 0x628   : > { %v2121_v44 = vadd.f32 1.0, %v8201_v42  ;;  %v2123_v47 = vmul.f32 %v2119_v41, %v2111_v32  ;;  %v7645_v41 = vld [vmem:[%s8744_s11 + $0x10] sm:$0xff]   ;;  %v7650_v42 = vld [vmem:[#allocation8 + $0xd0] sm:$0xff]  }
 0x629   : > { %v2124_v46 = vmul.f32 %v2120_v43, %v2112_v34  ;;  %v7644_v34 = vld [vmem:[%s9098_s1 + $0x20] ss:$8 sps:$4 sm:$0x7f]  }
 0x62a   : > { %v2125_v48 = vmul.f32 %v2121_v44, %v2113_v35  ;;  %v2904_v39 = vsel %vm673_vm0, %v7644_v34, 0  ;;  %v7651_v43 = vld [vmem:[#allocation8 + $0x90] sm:$0xff]   ;;  %v7652_v44 = vld [vmem:[#allocation8 + $0xd8] sm:$0xff]  }
 0x62b   : > { %v2126_v49 = vpack.c.bf16 %v2124_v46, %v2122_v45  ;;  %v7653_v45 = vld [vmem:[#allocation8 + $0x98] sm:$0xff]   ;;  %v7654_v46 = vld [vmem:[#allocation8 + $0xe0] sm:$0xff]  }
 0x62c   : > { %v2127_v50 = vpack.c.bf16 %v2125_v48, %v2123_v47  ;;  %v7655_v47 = vld [vmem:[#allocation8 + $0xa0] sm:$0xff]   ;;  %v7656_v48 = vld [vmem:[#allocation8 + $0xe8] sm:$0xff]  }
 0x62e   : > { %2366 = vmatprep.mubr.bf16.mxu1 %v2127_v50  ;;  %v7658_v50 = vld [vmem:[#allocation8 + $0xf0] sm:$0xff]  }
 0x62f   : > { %2367 = vmatmul.mubr.bf16.vlgmr.msra.gmra.mrb[8].mxu1 %v2126_v49  ;;  %v7657_v49 = vld [vmem:[#allocation8 + $0xa8] sm:$0xff]  }
 0x630   : > { %7168 = vmatpush3.bf16.msra.mxu1 %v7647_v6 }
 0x631   : > { %7169 = vmatprep.subr.bf16.mxu1 %v7648_v7 }
 0x634   : > { %7170 = vmatpush3.bf16.msra.mxu1 %v7649_v8 }
 0x635   : > { %7171 = vmatprep.subr.bf16.mxu1 %v7650_v42  ;;  %v7662_v42 = vld [vmem:[#allocation3 + $0x200] ss:$8 sps:$4 sm:$0xff]  }
 0x638   : > { %7172 = vmatpush3.bf16.msra.mxu1 %v7651_v43 }
 0x639   : > { %7173 = vmatprep.subr.bf16.mxu1 %v7652_v44  ;;  %v7667_v44 = vld [vmem:[#allocation3 + $0x214] ss:$8 sps:$4 sm:$0xff]  }
 0x63c   : > { %7174 = vmatpush3.bf16.msra.mxu1 %v7653_v45 }
 0x63d   : > { %7175 = vmatprep.subr.bf16.mxu1 %v7654_v46 }
 0x640   : > { %7176 = vmatpush3.bf16.msra.mxu1 %v7655_v47 }
 0x641   : > { %7177 = vmatprep.subr.bf16.mxu1 %v7656_v48 }
 0x644   : > { %7178 = vmatpush3.bf16.msra.mxu1 %v7657_v49 }
 0x645   : > { %7179 = vmatprep.subr.bf16.mxu1 %v7658_v50 }
 0x648   : > { %7180 = vmatpush3.bf16.msra.mxu1 %v7659_v51  ;;  %v7665_v51 = vld [vmem:[#allocation3 + $0x210] ss:$8 sps:$4 sm:$0xff]  }
 0x649   : > { %7181 = vmatprep.subr.bf16.mxu1 %v7660_v53 }
 0x64c   : > { %7182 = vmatpush3.bf16.msra.mxu1 %v7661_v54 }
 0x64d   : > { %3176 = vmatprep.subr.bf16.mxu1 %v7664_v56  ;;  %v7670_v56 = vld [vmem:[#allocation3 + $0x224] ss:$8 sps:$4 sm:$0xff]  }
 0x702   : > { %v2368_v12 = vpop.f32.mrb[8].mxu1 }
 0x703   : > { %v2369_v13 = vadd.f32 %v2368_v12, %v2167_v10  ;;  %v2370_v14 = vpop.f32.mrb[9].mxu1 }
 0x704   : > { %v2371_v15 = vadd.f32 %v2370_v14, %v2171_v11  ;;  %v2372_v16 = vpop.f32.mrb[10].mxu1 }
 0x705   : > { %v2377_v17 = vmul.f32 0.5, %v2369_v13  ;;  %v2373_v18 = vadd.f32 %v2372_v16, %v2167_v10  ;;  %v2374_v19 = vpop.f32.mrb[11].mxu1  ;;  %v2884_v13 = vrot.slane %v6747_v3, %v8774_v2 }
 0x706   : > { %v2378_v20 = vmul.f32 0.5, %v2371_v15  ;;  %v2375_v21 = vadd.f32 %v2374_v19, %v2171_v11  ;;  %v2880_v11 = vrot.slane %v6747_v3, %v8772_v1  ;;  %v7674_v3 = vld [vmem:[#allocation3 + $0x240] ss:$8 sps:$4 sm:$0xff]  }
 0x707   : > { %8202 = vtanh.f32 %v2377_v17  ;;  %v2379_v22 = vmul.f32 0.5, %v2373_v18 }
 0x708   : > { %8204 = vtanh.f32 %v2378_v20  ;;  %v2380_v23 = vmul.f32 0.5, %v2375_v21 }
 0x709   : > { %8206 = vtanh.f32 %v2379_v22 }
 0x70a   : > { %8208 = vtanh.f32 %v2380_v23 }
 0x711   : > { %v8203_v24 = vpop.eup %8202 }
 0x712   : > { %v8205_v25 = vpop.eup %8204  ;;  %v2385_v26 = vadd.f32 1.0, %v8203_v24 }
 0x713   : > { %v8207_v27 = vpop.eup %8206  ;;  %v2386_v28 = vadd.f32 1.0, %v8205_v25 }
 0x714   : > { %v8209_v29 = vpop.eup %8208  ;;  %v2387_v30 = vadd.f32 1.0, %v8207_v27  ;;  %v2389_v32 = vmul.f32 %v2385_v26, %v2377_v17 }
 0x715   : > { %v2388_v31 = vadd.f32 1.0, %v8209_v29  ;;  %v2390_v35 = vmul.f32 %v2386_v28, %v2378_v20 }
 0x716   : > { %v2391_v33 = vmul.f32 %v2387_v30, %v2379_v22 }
 0x717   : > { %v2392_v36 = vmul.f32 %v2388_v31, %v2380_v23 }
 0x718   : > { %v2393_v37 = vpack.c.bf16 %v2391_v33, %v2389_v32 }
 0x719   : > { %v2394_v38 = vpack.c.bf16 %v2392_v36, %v2390_v35 }
 0x71b   : > { %2633 = vmatprep.mubr.bf16.mxu0 %v2394_v38 }
 0x71c   : > { %2634 = vmatmul.mubr.bf16.vlgmr.msra.gmra.mrb[20].mxu0 %v2393_v37 }
 0x71d   : > { %2910 = vmatpush1.bf16.msra.mxu0 %v2904_v39  ;;  %2941 = vmatprep.mubr.bf16.mxu0 %v8490_v5 }
 0x724   : > { %6752 = vmatmul.mubr.msk.bf16.vlgmr.msra.gmra.mrb[24].mxu0 %vm669_vm1, %v7645_v41 }
 0x7ef   : > { %v2635_v60 = vpop.f32.mrb[20].mxu0 }
 0x7f0   : > { %v2636_v61 = vadd.f32 %v2635_v60, %v2434_v58  ;;  %v2637_v62 = vpop.f32.mrb[21].mxu0  ;;  %v7668_v60 = vld [vmem:[#allocation3 + $0x220] ss:$8 sps:$4 sm:$0xff]  }
 0x7f1   : > { %v2638_v63 = vadd.f32 %v2637_v62, %v2438_v59  ;;  %v2639_v0 = vpop.f32.mrb[22].mxu0  ;;  %v7673_v62 = vld [vmem:[#allocation3 + $0x234] ss:$8 sps:$4 sm:$0xff]  }
 0x7f2   : > { %v2644_v4 = vmul.f32 0.5, %v2636_v61  ;;  %v2640_v6 = vadd.f32 %v2639_v0, %v2434_v58  ;;  %v2641_v7 = vpop.f32.mrb[23].mxu0  ;;  %v7676_v0 = vld [vmem:[#allocation3 + $0x244] ss:$8 sps:$4 sm:$0xff]  }
 0x7f3   : > { %v2645_v8 = vmul.f32 0.5, %v2638_v63  ;;  %v2642_v9 = vadd.f32 %v2641_v7, %v2438_v59  ;;  %v7671_v63 = vld [vmem:[#allocation3 + $0x230] ss:$8 sps:$4 sm:$0xff]   ;;  %v7682_v7 = vld [vmem:[#allocation3 + $0x264] ss:$8 sps:$4 sm:$0xff]  }
 0x7f4   : > { %8210 = vtanh.f32 %v2644_v4  ;;  %v2646_v10 = vmul.f32 0.5, %v2640_v6  ;;  %v7677_v6 = vld [vmem:[#allocation3 + $0x250] ss:$8 sps:$4 sm:$0xff]  }
 0x7f5   : > { %8212 = vtanh.f32 %v2645_v8  ;;  %v2647_v12 = vmul.f32 0.5, %v2642_v9  ;;  %v7685_v9 = vld [vmem:[#allocation3 + $0x274] ss:$8 sps:$4 sm:$0xff]  }
 0x7f6   : > { %8214 = vtanh.f32 %v2646_v10 }
 0x7f7   : > { %8216 = vtanh.f32 %v2647_v12  ;;  %v2943_v14 = vpop.f32.mrb[24].mxu0 }
 0x7f8   : > { %v2944_v15 = vadd.f32 %v2943_v14, %v2880_v11  ;;  %v2945_v16 = vpop.f32.mrb[25].mxu0  ;;  %v7689_v14 = vld [vmem:[#allocation3 + $0x290] ss:$8 sps:$4 sm:$0xff]  }
 0x7f9   : > { %v2946_v17 = vadd.f32 %v2945_v16, %v2884_v13  ;;  %v2947_v18 = vpop.f32.mrb[26].mxu0  ;;  %v7692_v16 = vld [vmem:[#allocation3 + $0x2a0] ss:$8 sps:$4 sm:$0xff]  }
 0x7fa   : > { %v2952_v19 = vmul.f32 0.5, %v2944_v15  ;;  %v2948_v20 = vadd.f32 %v2947_v18, %v2880_v11  ;;  %v2949_v21 = vpop.f32.mrb[27].mxu0  ;;  %v7688_v11 = vld [vmem:[#allocation3 + $0x284] ss:$8 sps:$4 sm:$0xff]   ;;  %v7695_v18 = vld [vmem:[#allocation3 + $0x2b0] ss:$8 sps:$4 sm:$0xff]  }
 0x7fb   : > { %v2953_v22 = vmul.f32 0.5, %v2946_v17  ;;  %v2950_v23 = vadd.f32 %v2949_v21, %v2884_v13  ;;  %v7691_v13 = vld [vmem:[#allocation3 + $0x294] ss:$8 sps:$4 sm:$0xff]   ;;  %v7694_v15 = vld [vmem:[#allocation3 + $0x2a4] ss:$8 sps:$4 sm:$0xff]  }
 0x7fc   : > { %8218 = vtanh.f32 %v2952_v19  ;;  %v2954_v24 = vmul.f32 0.5, %v2948_v20  ;;  %v7697_v17 = vld [vmem:[#allocation3 + $0x2b4] ss:$8 sps:$4 sm:$0xff]   ;;  %v7698_v20 = vld [vmem:[#allocation3 + $0x2c0] ss:$8 sps:$4 sm:$0xff]  }
 0x7fd   : > { %8220 = vtanh.f32 %v2953_v22  ;;  %v2955_v25 = vmul.f32 0.5, %v2950_v23  ;;  %v7703_v21 = vld [vmem:[#allocation3 + $0x2d4] ss:$8 sps:$4 sm:$0xff]   ;;  %v7706_v23 = vld [vmem:[#allocation3 + $0x2e4] ss:$8 sps:$4 sm:$0xff]  }
 0x7fe   : > { %v8211_v26 = vpop.eup %8210  ;;  %8222 = vtanh.f32 %v2954_v24 }
 0x7ff   : > { %v8213_v27 = vpop.eup %8212  ;;  %v2652_v28 = vadd.f32 1.0, %v8211_v26  ;;  %8224 = vtanh.f32 %v2955_v25  ;;  %v7707_v26 = vld [vmem:[#allocation3 + $0x2f0] ss:$8 sps:$4 sm:$0xff]  }
 0x800   : > { %v8215_v29 = vpop.eup %8214  ;;  %v2653_v30 = vadd.f32 1.0, %v8213_v27  ;;  %v7710_v27 = vld [vmem:[#allocation5 + $0x200] ss:$8 sps:$4 sm:$0xff]  }
 0x801   : > { %v8217_v31 = vpop.eup %8216  ;;  %v2654_v32 = vadd.f32 1.0, %v8215_v29  ;;  %v2656_v34 = vmul.f32 %v2652_v28, %v2644_v4  ;;  %v7679_v4 = vld [vmem:[#allocation3 + $0x254] ss:$8 sps:$4 sm:$0xff]   ;;  %v7712_v28 = vld [vmem:[#allocation5 + $0x204] ss:$8 sps:$4 sm:$0xff]  }
 0x802   : > { %v2655_v33 = vadd.f32 1.0, %v8217_v31  ;;  %v2657_v36 = vmul.f32 %v2653_v30, %v2645_v8  ;;  %v7680_v8 = vld [vmem:[#allocation3 + $0x260] ss:$8 sps:$4 sm:$0xff]   ;;  %3443 = vmatprep.subr.bf16.mxu0 %v7712_v28  ;;  %v7713_v29 = vld [vmem:[#allocation5 + $0x210] ss:$8 sps:$4 sm:$0xff]  }
 0x803   : > { %v2658_v35 = vmul.f32 %v2654_v32, %v2646_v10  ;;  %v7683_v10 = vld [vmem:[#allocation3 + $0x270] ss:$8 sps:$4 sm:$0xff]   ;;  %3444 = vmatpush1.bf16.msra.mxu0 %v7710_v27  ;;  %v7715_v30 = vld [vmem:[#allocation5 + $0x214] ss:$8 sps:$4 sm:$0xff]   ;;  %v7718_v31 = vld [vmem:[#allocation5 + $0x224] ss:$8 sps:$4 sm:$0xff]  }
 0x804   : > { %v2659_v37 = vmul.f32 %v2655_v33, %v2647_v12  ;;  %v7686_v12 = vld [vmem:[#allocation3 + $0x280] ss:$8 sps:$4 sm:$0xff]   ;;  %3445 = vmatprep.subr.bf16.mxu0 %v7715_v30  ;;  %v7721_v33 = vld [vmem:[#allocation5 + $0x234] ss:$8 sps:$4 sm:$0xff]   ;;  %v7767_v27 = vld [vmem:[#allocation7 + $0x230] ss:$8 sps:$4 sm:$0xff]  }
 0x805   : > { %v2660_v38 = vpack.c.bf16 %v2658_v35, %v2656_v34  ;;  %v7716_v32 = vld [vmem:[#allocation5 + $0x220] ss:$8 sps:$4 sm:$0xff]   ;;  %v7719_v34 = vld [vmem:[#allocation5 + $0x230] ss:$8 sps:$4 sm:$0xff]   ;;  %v7724_v35 = vld [vmem:[#allocation5 + $0x244] ss:$8 sps:$4 sm:$0xff]  }
 0x806   : > { %v8219_v39 = vpop.eup %8218  ;;  %v2661_v41 = vpack.c.bf16 %v2659_v37, %v2657_v36  ;;  %v7722_v36 = vld [vmem:[#allocation5 + $0x240] ss:$8 sps:$4 sm:$0xff]   ;;  %v7727_v37 = vld [vmem:[#allocation5 + $0x254] ss:$8 sps:$4 sm:$0xff]   ;;  %v7772_v28 = vld [vmem:[#allocation7 + $0x244] ss:$8 sps:$4 sm:$0xff]  }
 0x807   : > { %v8221_v43 = vpop.eup %8220  ;;  %v2960_v45 = vadd.f32 1.0, %v8219_v39  ;;  %3446 = vmatpush1.bf16.msra.mxu0 %v7713_v29  ;;  %v7730_v39 = vld [vmem:[#allocation5 + $0x264] ss:$8 sps:$4 sm:$0xff]   ;;  %v7770_v29 = vld [vmem:[#allocation7 + $0x240] ss:$8 sps:$4 sm:$0xff]  }
 0x808   : > { %v8223_v46 = vpop.eup %8222  ;;  %2831 = vmatprep.mubr.bf16.mxu1 %v2661_v41  ;;  %v2961_v47 = vadd.f32 1.0, %v8221_v43  ;;  %3447 = vmatprep.subr.bf16.mxu0 %v7718_v31  ;;  %v7728_v41 = vld [vmem:[#allocation5 + $0x260] ss:$8 sps:$4 sm:$0xff]   ;;  %v7731_v43 = vld [vmem:[#allocation5 + $0x270] ss:$8 sps:$4 sm:$0xff]  }
 0x809   : > { %v8225_v48 = vpop.eup %8224  ;;  %2832 = vmatmul.mubr.bf16.vlgmr.msra.gmra.mrb[12].mxu1 %v2660_v38  ;;  %v8884_v49 = vmul.f32 %v2960_v45, %v2952_v19  ;;  %v2962_v50 = vadd.f32 1.0, %v8223_v46  ;;  %v7700_v19 = vld [vmem:[#allocation3 + $0x2c4] ss:$8 sps:$4 sm:$0xff]   ;;  %v7725_v38 = vld [vmem:[#allocation5 + $0x250] ss:$8 sps:$4 sm:$0xff]  }
 0x80a   : > { %3177 = vmatpush1.bf16.msra.mxu1 %v7662_v42  ;;  %v2965_v53 = vmul.f32 %v2961_v47, %v2953_v22  ;;  %v2963_v54 = vadd.f32 1.0, %v8225_v48  ;;  %v7701_v22 = vld [vmem:[#allocation3 + $0x2d0] ss:$8 sps:$4 sm:$0xff]   ;;  %v7733_v42 = vld [vmem:[#allocation5 + $0x274] ss:$8 sps:$4 sm:$0xff]  }
 0x80b   : > { %3178 = vmatprep.subr.bf16.mxu1 %v7667_v44  ;;  %v2966_v57 = vmul.f32 %v2962_v50, %v2954_v24  ;;  %v7704_v24 = vld [vmem:[#allocation3 + $0x2e0] ss:$8 sps:$4 sm:$0xff]   ;;  %3448 = vmatpush1.bf16.msra.mxu0 %v7716_v32  ;;  %v7736_v44 = vld [vmem:[#allocation5 + $0x284] ss:$8 sps:$4 sm:$0xff]   ;;  %v7739_v46 = vld [vmem:[#allocation5 + $0x294] ss:$8 sps:$4 sm:$0xff]  }
 0x80c   : > { %v2967_v58 = vmul.f32 %v2963_v54, %v2955_v25  ;;  %v7709_v25 = vld [vmem:[#allocation3 + $0x2f4] ss:$8 sps:$4 sm:$0xff]   ;;  %3449 = vmatprep.subr.bf16.mxu0 %v7721_v33  ;;  %v7734_v45 = vld [vmem:[#allocation5 + $0x280] ss:$8 sps:$4 sm:$0xff]   ;;  %v7737_v47 = vld [vmem:[#allocation5 + $0x290] ss:$8 sps:$4 sm:$0xff]  }
 0x80d   : > { %v2968_v59 = vpack.c.bf16 %v2966_v57, %v8884_v49  ;;  %v7742_v48 = vld [vmem:[#allocation5 + $0x2a4] ss:$8 sps:$4 sm:$0xff]   ;;  %v7740_v49 = vld [vmem:[#allocation5 + $0x2a0] ss:$8 sps:$4 sm:$0xff]   ;;  %v7745_v50 = vld [vmem:[#allocation5 + $0x2b4] ss:$8 sps:$4 sm:$0xff]  }
 0x80e   : > { %3179 = vmatpush1.bf16.msra.mxu1 %v7665_v51  ;;  %v2969_v61 = vpack.c.bf16 %v2967_v58, %v2965_v53  ;;  %v7743_v51 = vld [vmem:[#allocation5 + $0x2b0] ss:$8 sps:$4 sm:$0xff]   ;;  %v7748_v53 = vld [vmem:[#allocation5 + $0x2c4] ss:$8 sps:$4 sm:$0xff]   ;;  %v7746_v54 = vld [vmem:[#allocation5 + $0x2c0] ss:$8 sps:$4 sm:$0xff]  }
 0x80f   : > { %3180 = vmatprep.subr.bf16.mxu1 %v7670_v56  ;;  %3450 = vmatpush1.bf16.msra.mxu0 %v7719_v34  ;;  %v7751_v56 = vld [vmem:[#allocation5 + $0x2d4] ss:$8 sps:$4 sm:$0xff]   ;;  %v7749_v57 = vld [vmem:[#allocation5 + $0x2d0] ss:$8 sps:$4 sm:$0xff]   ;;  %v7754_v58 = vld [vmem:[#allocation5 + $0x2e4] ss:$8 sps:$4 sm:$0xff]  }
 0x810   : > { %3208 = vmatprep.mubr.bf16.mxu1 %v2969_v61  ;;  %3451 = vmatprep.subr.bf16.mxu0 %v7724_v35  ;;  %v7755_v61 = vld [vmem:[#allocation5 + $0x2f0] ss:$8 sps:$4 sm:$0xff]   ;;  %v7775_v30 = vld [vmem:[#allocation7 + $0x254] ss:$8 sps:$4 sm:$0xff]   ;;  %v7778_v32 = vld [vmem:[#allocation7 + $0x264] ss:$8 sps:$4 sm:$0xff]  }
 0x811   : > { %v7773_v31 = vld [vmem:[#allocation7 + $0x250] ss:$8 sps:$4 sm:$0xff]   ;;  %v7776_v33 = vld [vmem:[#allocation7 + $0x260] ss:$8 sps:$4 sm:$0xff]   ;;  %v7781_v34 = vld [vmem:[#allocation7 + $0x274] ss:$8 sps:$4 sm:$0xff]  }
 0x812   : > { %3181 = vmatpush1.bf16.msra.mxu1 %v7668_v60  ;;  %v7757_v60 = vld [vmem:[#allocation5 + $0x2f4] ss:$8 sps:$4 sm:$0xff]   ;;  %v7779_v35 = vld [vmem:[#allocation7 + $0x270] ss:$8 sps:$4 sm:$0xff]  }
 0x813   : > { %3182 = vmatprep.subr.bf16.mxu1 %v7673_v62  ;;  %3452 = vmatpush1.bf16.msra.mxu0 %v7722_v36  ;;  %v7784_v36 = vld [vmem:[#allocation7 + $0x284] ss:$8 sps:$4 sm:$0xff]  }
 0x814   : > { %3453 = vmatprep.subr.bf16.mxu0 %v7727_v37  ;;  %v7782_v37 = vld [vmem:[#allocation7 + $0x280] ss:$8 sps:$4 sm:$0xff]  }
 0x816   : > { %3183 = vmatpush1.bf16.msra.mxu1 %v7671_v63  ;;  %v6722_v63 = vld [vmem:[%s9147_s23 + $0x1] ss:$0 sm:$0xff] }
 0x817   : > { %3184 = vmatprep.subr.bf16.mxu1 %v7676_v0  ;;  %3454 = vmatpush1.bf16.msra.mxu0 %v7725_v38  ;;  %v7787_v38 = vld [vmem:[#allocation7 + $0x294] ss:$8 sps:$4 sm:$0xff]  }
 0x818   : > { %3455 = vmatprep.subr.bf16.mxu0 %v7730_v39  ;;  %v7785_v39 = vld [vmem:[#allocation7 + $0x290] ss:$8 sps:$4 sm:$0xff]  }
 0x81a   : > { %3185 = vmatpush1.bf16.msra.mxu1 %v7674_v3 }
 0x81b   : > { %3186 = vmatprep.subr.bf16.mxu1 %v7679_v4  ;;  %3456 = vmatpush1.bf16.msra.mxu0 %v7728_v41  ;;  %v6753_v41 = vld [vmem:[%s9101_s4 + $0x4] sm:$0x3] }
 0x81c   : > { %3457 = vmatprep.subr.bf16.mxu0 %v7733_v42  ;;  %v3009_v42 = vrot.slane %v6753_v41, %v8772_v1 }
 0x81e   : > { %3187 = vmatpush1.bf16.msra.mxu1 %v7677_v6 }
 0x81f   : > { %3188 = vmatprep.subr.bf16.mxu1 %v7682_v7  ;;  %3458 = vmatpush1.bf16.msra.mxu0 %v7731_v43  ;;  %v3013_v43 = vrot.slane %v6753_v41, %v8774_v2 }
 0x820   : > { %3459 = vmatprep.subr.bf16.mxu0 %v7736_v44 }
 0x822   : > { %3189 = vmatpush1.bf16.msra.mxu1 %v7680_v8 }
 0x823   : > { %3190 = vmatprep.subr.bf16.mxu1 %v7685_v9  ;;  %3460 = vmatpush1.bf16.msra.mxu0 %v7734_v45 }
 0x824   : > { %3461 = vmatprep.subr.bf16.mxu0 %v7739_v46 }
 0x826   : > { %3191 = vmatpush1.bf16.msra.mxu1 %v7683_v10 }
 0x827   : > { %3192 = vmatprep.subr.bf16.mxu1 %v7688_v11  ;;  %3462 = vmatpush1.bf16.msra.mxu0 %v7737_v47 }
 0x828   : > { %3463 = vmatprep.subr.bf16.mxu0 %v7742_v48 }
 0x82a   : > { %3193 = vmatpush1.bf16.msra.mxu1 %v7686_v12 }
 0x82b   : > { %3194 = vmatprep.subr.bf16.mxu1 %v7691_v13  ;;  %3464 = vmatpush1.bf16.msra.mxu0 %v7740_v49 }
 0x82c   : > { %3465 = vmatprep.subr.bf16.mxu0 %v7745_v50 }
 0x82e   : > { %3195 = vmatpush1.bf16.msra.mxu1 %v7689_v14  ;;  %v7758_v14 = vld [vmem:[#allocation7 + $0x200] ss:$8 sps:$4 sm:$0xff]  }
 0x82f   : > { %3196 = vmatprep.subr.bf16.mxu1 %v7694_v15  ;;  %3466 = vmatpush1.bf16.msra.mxu0 %v7743_v51  ;;  %v7760_v15 = vld [vmem:[#allocation7 + $0x204] ss:$8 sps:$4 sm:$0xff]  }
 0x830   : > { %3467 = vmatprep.subr.bf16.mxu0 %v7748_v53 }
 0x832   : > { %3197 = vmatpush1.bf16.msra.mxu1 %v7692_v16  ;;  %v7763_v16 = vld [vmem:[#allocation7 + $0x214] ss:$8 sps:$4 sm:$0xff]  }
 0x833   : > { %3198 = vmatprep.subr.bf16.mxu1 %v7697_v17  ;;  %3468 = vmatpush1.bf16.msra.mxu0 %v7746_v54 }
 0x834   : > { %3469 = vmatprep.subr.bf16.mxu0 %v7751_v56 }
 0x836   : > { %3199 = vmatpush1.bf16.msra.mxu1 %v7695_v18 }
 0x837   : > { %3200 = vmatprep.subr.bf16.mxu1 %v7700_v19  ;;  %3470 = vmatpush1.bf16.msra.mxu0 %v7749_v57  ;;  %v7761_v19 = vld [vmem:[#allocation7 + $0x210] ss:$8 sps:$4 sm:$0xff]  }
 0x838   : > { %3471 = vmatprep.subr.bf16.mxu0 %v7754_v58 }
 0x83a   : > { %3201 = vmatpush1.bf16.msra.mxu1 %v7698_v20 }
 0x83b   : > { %3202 = vmatprep.subr.bf16.mxu1 %v7703_v21  ;;  %v7766_v21 = vld [vmem:[#allocation7 + $0x224] ss:$8 sps:$4 sm:$0xff]  }
 0x83e   : > { %3203 = vmatpush1.bf16.msra.mxu1 %v7701_v22 }
 0x83f   : > { %3204 = vmatprep.subr.bf16.mxu1 %v7706_v23 }
 0x842   : > { %3205 = vmatpush1.bf16.msra.mxu1 %v7704_v24 }
 0x843   : > { %3206 = vmatprep.subr.bf16.mxu1 %v7709_v25  ;;  %v7764_v25 = vld [vmem:[#allocation7 + $0x220] ss:$8 sps:$4 sm:$0xff]  }
 0x846   : > { %3207 = vmatpush1.bf16.msra.mxu1 %v7707_v26  ;;  %v7769_v26 = vld [vmem:[#allocation7 + $0x234] ss:$8 sps:$4 sm:$0xff]  }
 0x847   : > { %3710 = vmatprep.subr.bf16.mxu1 %v7760_v15 }
 0x849   : > { %3209 = vmatmul.mubr.bf16.vlgmr.msra.gmra.mrb[16].mxu1 %v2968_v59  ;;  %v7752_v59 = vld [vmem:[#allocation5 + $0x2e0] ss:$8 sps:$4 sm:$0xff]  }
 0x84a   : > { %3472 = vmatpush1.bf16.msra.mxu0 %v7752_v59  ;;  %3711 = vmatpush1.bf16.msra.mxu1 %v7758_v14 }
 0x84b   : > { %3473 = vmatprep.subr.bf16.mxu0 %v7757_v60  ;;  %3712 = vmatprep.subr.bf16.mxu1 %v7763_v16 }
 0x84e   : > { %3474 = vmatpush1.bf16.msra.mxu0 %v7755_v61  ;;  %3713 = vmatpush1.bf16.msra.mxu1 %v7761_v19  ;;  %v7793_v19 = vld [vmem:[#allocation7 + $0x2b4] ss:$8 sps:$4 sm:$0xff]  }
 0x84f   : > { %3714 = vmatprep.subr.bf16.mxu1 %v7766_v21  ;;  %v7796_v21 = vld [vmem:[#allocation7 + $0x2c4] ss:$8 sps:$4 sm:$0xff]  }
 0x852   : > { %3715 = vmatpush1.bf16.msra.mxu1 %v7764_v25  ;;  %v7805_v25 = vld [vmem:[#allocation7 + $0x2f4] ss:$8 sps:$4 sm:$0xff]  }
 0x853   : > { %3716 = vmatprep.subr.bf16.mxu1 %v7769_v26  ;;  %v7803_v26 = vld [vmem:[#allocation7 + $0x2f0] ss:$8 sps:$4 sm:$0xff]  }
 0x856   : > { %3717 = vmatpush1.bf16.msra.mxu1 %v7767_v27  ;;  %v7806_v27 = vld [vmem:[#allocation8 + $0x140] sm:$0xff]  }
 0x857   : > { %3718 = vmatprep.subr.bf16.mxu1 %v7772_v28  ;;  %v7807_v28 = vld [vmem:[#allocation8 + $0x100] sm:$0xff]   ;;  %7189 = vmatprep.subr.bf16.mxu0 %v7806_v27 }
 0x85a   : > { %3719 = vmatpush1.bf16.msra.mxu1 %v7770_v29  ;;  %v7808_v29 = vld [vmem:[#allocation8 + $0x148] sm:$0xff]  }
 0x85b   : > { %3720 = vmatprep.subr.bf16.mxu1 %v7775_v30  ;;  %v7809_v30 = vld [vmem:[#allocation8 + $0x108] sm:$0xff]  }
 0x85e   : > { %3721 = vmatpush1.bf16.msra.mxu1 %v7773_v31  ;;  %v6786_v31 = vld [vmem:[%s9103_s6 + $0x4] sm:$0x3] }
 0x85f   : > { %3722 = vmatprep.subr.bf16.mxu1 %v7778_v32  ;;  %v3276_v32 = vrot.slane %v6786_v31, %v8772_v1 }
 0x862   : > { %3723 = vmatpush1.bf16.msra.mxu1 %v7776_v33  ;;  %v3280_v33 = vrot.slane %v6786_v31, %v8774_v2 }
 0x863   : > { %3724 = vmatprep.subr.bf16.mxu1 %v7781_v34 }
 0x866   : > { %3725 = vmatpush1.bf16.msra.mxu1 %v7779_v35 }
 0x867   : > { %3726 = vmatprep.subr.bf16.mxu1 %v7784_v36 }
 0x86a   : > { %3727 = vmatpush1.bf16.msra.mxu1 %v7782_v37 }
 0x86b   : > { %3728 = vmatprep.subr.bf16.mxu1 %v7787_v38 }
 0x86e   : > { %3729 = vmatpush1.bf16.msra.mxu1 %v7785_v39 }
 0x8dc   : > { %v7183_v62 = vpop.f32.mrb[12].mxu1 }
 0x8dd   : > { %v7184_v0 = vpop.f32.mrb[13].mxu1 }
 0x8de   : > { %v7185_v3 = vadd.f32 %v7184_v0, %v7183_v62  ;;  %v7186_v4 = vpop.f32.mrb[14].mxu1 }
 0x8df   : > { %v7187_v6 = vpop.f32.mrb[15].mxu1 }
 0x8e0   : > { %v2834_v7 = vadd.f32 %v7185_v3, %v6722_v63  ;;  %v7188_v8 = vadd.f32 %v7187_v6, %v7186_v4 }
 0x8e2   : > { %6739 = vst.msk [vmem:[%s8821_s18 + $0x10] sm:$0xff] %vm1712_vm2, %v2834_v7  ;;  %v2843_v9 = vsub.f32 %v2834_v7, %v8817_v40  ;;  %v2837_v10 = vadd.f32 %v7188_v8, %v6722_v63 }
 0x8e4   : > { %v2845_v11 = vmul.f32 0.5, %v2843_v9  ;;  %6740 = vst.msk [vmem:[%s8821_s18 + $0x18] sm:$0xff] %vm1712_vm2, %v2837_v10  ;;  %v2844_v12 = vsub.f32 %v2837_v10, %v8817_v40 }
 0x8e6   : > { %8226 = vtanh.f32 %v2845_v11  ;;  %v2846_v13 = vmul.f32 0.5, %v2844_v12 }
 0x8e8   : > { %8228 = vtanh.f32 %v2846_v13 }
 0x8f0   : > { %v8227_v17 = vpop.eup %8226 }
 0x8f1   : > { %v2849_v18 = vadd.f32 1.0, %v8227_v17  ;;  %v7790_v17 = vld [vmem:[#allocation7 + $0x2a4] ss:$8 sps:$4 sm:$0xff]  }
 0x8f2   : > { %v8229_v20 = vpop.eup %8228  ;;  %3730 = vmatprep.subr.bf16.mxu1 %v7790_v17 }
 0x8f3   : > { %v2851_v22 = vmul.f32 0.5, %v2849_v18  ;;  %v2850_v23 = vadd.f32 1.0, %v8229_v20  ;;  %v7788_v18 = vld [vmem:[#allocation7 + $0x2a0] ss:$8 sps:$4 sm:$0xff]   ;;  %v7791_v20 = vld [vmem:[#allocation7 + $0x2b0] ss:$8 sps:$4 sm:$0xff]  }
 0x8f4   : > { %3731 = vmatpush1.bf16.msra.mxu1 %v7788_v18 }
 0x8f5   : > { %2855 = vrot.lane.b32.xlu1 %v2851_v22, %s8492_s20  ;;  %v2852_v24 = vmul.f32 0.5, %v2850_v23  ;;  %3732 = vmatprep.subr.bf16.mxu1 %v7793_v19  ;;  %v7794_v22 = vld [vmem:[#allocation7 + $0x2c0] ss:$8 sps:$4 sm:$0xff]   ;;  %v7799_v23 = vld [vmem:[#allocation7 + $0x2d4] ss:$8 sps:$4 sm:$0xff]  }
 0x8f7   : > { %2857 = vrot.lane.b32.xlu0 %v2852_v24, %s8492_s20  ;;  %v7802_v24 = vld [vmem:[#allocation7 + $0x2e4] ss:$8 sps:$4 sm:$0xff]  }
 0x8f8   : > { %3733 = vmatpush1.bf16.msra.mxu1 %v7791_v20 }
 0x8f9   : > { %3734 = vmatprep.subr.bf16.mxu1 %v7796_v21 }
 0x8fc   : > { %3735 = vmatpush1.bf16.msra.mxu1 %v7794_v22 }
 0x8fd   : > { %3736 = vmatprep.subr.bf16.mxu1 %v7799_v23 }
 0x91c   : > { %v3210_v44 = vpop.f32.mrb[16].mxu1 }
 0x91d   : > { %v3211_v45 = vadd.f32 %v3210_v44, %v3009_v42  ;;  %v3212_v46 = vpop.f32.mrb[17].mxu1 }
 0x91e   : > { %v3213_v47 = vadd.f32 %v3212_v46, %v3013_v43  ;;  %v3214_v48 = vpop.f32.mrb[18].mxu1 }
 0x91f   : > { %v3219_v49 = vmul.f32 0.5, %v3211_v45  ;;  %v3215_v50 = vadd.f32 %v3214_v48, %v3009_v42  ;;  %v3216_v51 = vpop.f32.mrb[19].mxu1 }
 0x920   : > { %v3220_v53 = vmul.f32 0.5, %v3213_v47  ;;  %v3217_v54 = vadd.f32 %v3216_v51, %v3013_v43 }
 0x921   : > { %8230 = vtanh.f32 %v3219_v49  ;;  %v3221_v56 = vmul.f32 0.5, %v3215_v50 }
 0x922   : > { %8232 = vtanh.f32 %v3220_v53  ;;  %v3222_v57 = vmul.f32 0.5, %v3217_v54 }
 0x923   : > { %8234 = vtanh.f32 %v3221_v56 }
 0x924   : > { %8236 = vtanh.f32 %v3222_v57 }
 0x92b   : > { %v8231_v58 = vpop.eup %8230 }
 0x92c   : > { %v8233_v59 = vpop.eup %8232  ;;  %v3227_v60 = vadd.f32 1.0, %v8231_v58 }
 0x92d   : > { %v8235_v61 = vpop.eup %8234  ;;  %v3228_v62 = vadd.f32 1.0, %v8233_v59 }
 0x92e   : > { %v8237_v63 = vpop.eup %8236  ;;  %v3229_v0 = vadd.f32 1.0, %v8235_v61  ;;  %v3231_v4 = vmul.f32 %v3227_v60, %v3219_v49 }
 0x92f   : > { %v3230_v3 = vadd.f32 1.0, %v8237_v63  ;;  %v3232_v7 = vmul.f32 %v3228_v62, %v3220_v53  ;;  %v7810_v63 = vld [vmem:[#allocation8 + $0x150] sm:$0xff]  }
 0x930   : > { %v3233_v6 = vmul.f32 %v3229_v0, %v3221_v56  ;;  %v7811_v0 = vld [vmem:[#allocation8 + $0x110] sm:$0xff]  }
 0x931   : > { %v3234_v8 = vmul.f32 %v3230_v3, %v3222_v57  ;;  %v7812_v3 = vld [vmem:[#allocation8 + $0x158] sm:$0xff]  }
 0x932   : > { %v3235_v9 = vpack.c.bf16 %v3233_v6, %v3231_v4  ;;  %v7813_v4 = vld [vmem:[#allocation8 + $0x118] sm:$0xff]   ;;  %v7814_v6 = vld [vmem:[#allocation8 + $0x160] sm:$0xff]  }
 0x933   : > { %v3236_v10 = vpack.c.bf16 %v3234_v8, %v3232_v7  ;;  %v7815_v7 = vld [vmem:[#allocation8 + $0x120] sm:$0xff]   ;;  %v7816_v8 = vld [vmem:[#allocation8 + $0x168] sm:$0xff]  }
 0x935   : > { %3475 = vmatprep.mubr.bf16.mxu0 %v3236_v10  ;;  %v7818_v10 = vld [vmem:[#allocation8 + $0x170] sm:$0xff]  }
 0x936   : > { %3476 = vmatmul.mubr.bf16.vlgmr.msra.gmra.mrb[28].mxu0 %v3235_v9  ;;  %v7817_v9 = vld [vmem:[#allocation8 + $0x128] sm:$0xff]  }
 0x937   : > { %7190 = vmatpush3.bf16.msra.mxu0 %v7807_v28 }
 0x938   : > { %7191 = vmatprep.subr.bf16.mxu0 %v7808_v29 }
 0x93b   : > { %7192 = vmatpush3.bf16.msra.mxu0 %v7809_v30 }
 0x93c   : > { %7193 = vmatprep.subr.bf16.mxu0 %v7810_v63  ;;  %v7847_v63 = vld [vmem:[#allocation3 + $0x370] ss:$8 sps:$4 sm:$0xff]  }
 0x93f   : > { %7194 = vmatpush3.bf16.msra.mxu0 %v7811_v0  ;;  %v7852_v0 = vld [vmem:[#allocation3 + $0x384] ss:$8 sps:$4 sm:$0xff]  }
 0x940   : > { %7195 = vmatprep.subr.bf16.mxu0 %v7812_v3  ;;  %v7850_v3 = vld [vmem:[#allocation3 + $0x380] ss:$8 sps:$4 sm:$0xff]  }
 0x943   : > { %7196 = vmatpush3.bf16.msra.mxu0 %v7813_v4  ;;  %v7855_v4 = vld [vmem:[#allocation3 + $0x394] ss:$8 sps:$4 sm:$0xff]  }
 0x944   : > { %7197 = vmatprep.subr.bf16.mxu0 %v7814_v6  ;;  %v7853_v6 = vld [vmem:[#allocation3 + $0x390] ss:$8 sps:$4 sm:$0xff]  }
 0x947   : > { %7198 = vmatpush3.bf16.msra.mxu0 %v7815_v7  ;;  %v7858_v7 = vld [vmem:[#allocation3 + $0x3a4] ss:$8 sps:$4 sm:$0xff]  }
 0x948   : > { %7199 = vmatprep.subr.bf16.mxu0 %v7816_v8  ;;  %v7856_v8 = vld [vmem:[#allocation3 + $0x3a0] ss:$8 sps:$4 sm:$0xff]  }
 0x94b   : > { %7200 = vmatpush3.bf16.msra.mxu0 %v7817_v9  ;;  %v7861_v9 = vld [vmem:[#allocation3 + $0x3b4] ss:$8 sps:$4 sm:$0xff]  }
 0x94c   : > { %7201 = vmatprep.subr.bf16.mxu0 %v7818_v10  ;;  %v7859_v10 = vld [vmem:[#allocation3 + $0x3b0] ss:$8 sps:$4 sm:$0xff]  }
 0x967   : > { %v2856_v11 = vpop.permute.xlu1 %2855 }
 0x968   : > { %v2861_v12 = vmul.f32 %v8835_v52, %v2856_v11  ;;  %v7819_v11 = vld [vmem:[#allocation8 + $0x130] sm:$0xff]  }
 0x969   : > { %v2858_v13 = vpop.permute.xlu0 %2857  ;;  %7202 = vmatpush3.bf16.msra.mxu0 %v7819_v11  ;;  %v7864_v11 = vld [vmem:[#allocation3 + $0x3c4] ss:$8 sps:$4 sm:$0xff]  }
 0x96a   : > { %v2863_v14 = vadd.f32 %v8840_v55, %v2861_v12  ;;  %v2862_v15 = vmul.f32 %v8835_v52, %v2858_v13  ;;  %v7797_v52 = vld [vmem:[#allocation7 + $0x2d0] ss:$8 sps:$4 sm:$0xff]  }
 0x96b   : > { %3737 = vmatpush1.bf16.msra.mxu1 %v7797_v52  ;;  %v7820_v12 = vld [vmem:[#allocation8 + $0x178] sm:$0xff]  }
 0x96c   : > { %6741 = vst.msk [vmem:[%s8846_s26 + $0x10] sm:$0xff] %vm1712_vm2, %v2863_v14  ;;  %v2864_v16 = vadd.f32 %v8840_v55, %v2862_v15  ;;  %v7800_v55 = vld [vmem:[#allocation7 + $0x2e0] ss:$8 sps:$4 sm:$0xff]   ;;  %3738 = vmatprep.subr.bf16.mxu1 %v7802_v24  ;;  %v7821_v13 = vld [vmem:[#allocation8 + $0x138] sm:$0xff]   ;;  %7203 = vmatprep.subr.bf16.mxu0 %v7820_v12  ;;  %v6819_v15 = vld [vmem:[%s9146_s24 + $0x4] sm:$0x3] }
 0x96d   : > { %7204 = vmatpush3.bf16.msra.mxu0 %v7821_v13  ;;  %v7822_v14 = vld [vmem:[%s9098_s1 + $0x34] ss:$8 sps:$4 sm:$0x7f]   ;;  %v3547_v17 = vrot.slane %v6819_v15, %v8774_v2  ;;  %v7862_v12 = vld [vmem:[#allocation3 + $0x3c0] ss:$8 sps:$4 sm:$0xff]  }
 0x96e   : > { %6742 = vst.msk [vmem:[%s8846_s26 + $0x18] sm:$0xff] %vm1712_vm2, %v2864_v16  ;;  %6882 = vmatprep.subr.msk.bf16.mxu0 %vm673_vm0, %v7822_v14  ;;  %v3543_v16 = vrot.slane %v6819_v15, %v8772_v1  ;;  %v7867_v13 = vld [vmem:[#allocation3 + $0x3d4] ss:$8 sps:$4 sm:$0xff]   ;;  %v7865_v14 = vld [vmem:[#allocation3 + $0x3d0] ss:$8 sps:$4 sm:$0xff]  }
 0x96f   : > { %3739 = vmatpush1.bf16.msra.mxu1 %v7800_v55  ;;  %v7870_v15 = vld [vmem:[#allocation3 + $0x3e4] ss:$8 sps:$4 sm:$0xff]  }
 0x970   : > { %3740 = vmatprep.subr.bf16.mxu1 %v7805_v25 }
 0x973   : > { %3741 = vmatpush1.bf16.msra.mxu1 %v7803_v26 }
 0xa09   : > { %v3477_v34 = vpop.f32.mrb[28].mxu0 }
 0xa0a   : > { %v3478_v35 = vadd.f32 %v3477_v34, %v3276_v32  ;;  %v3479_v36 = vpop.f32.mrb[29].mxu0 }
 0xa0b   : > { %v3480_v37 = vadd.f32 %v3479_v36, %v3280_v33  ;;  %v3481_v38 = vpop.f32.mrb[30].mxu0 }
 0xa0c   : > { %v3486_v39 = vmul.f32 0.5, %v3478_v35  ;;  %v3482_v41 = vadd.f32 %v3481_v38, %v3276_v32  ;;  %v3483_v42 = vpop.f32.mrb[31].mxu0  ;;  %v7824_v38 = vld [vmem:[%s9098_s1 + $0x30] ss:$8 sps:$4 sm:$0x7f]  }
 0xa0d   : > { %v3487_v43 = vmul.f32 0.5, %v3480_v37  ;;  %v3484_v44 = vadd.f32 %v3483_v42, %v3280_v33 }
 0xa0e   : > { %8238 = vtanh.f32 %v3486_v39  ;;  %v3488_v45 = vmul.f32 0.5, %v3482_v41 }
 0xa0f   : > { %8240 = vtanh.f32 %v3487_v43  ;;  %v3489_v46 = vmul.f32 0.5, %v3484_v44  ;;  %v4013_v44 = vsel %vm673_vm0, %v7824_v38, 0 }
 0xa10   : > { %8242 = vtanh.f32 %v3488_v45 }
 0xa11   : > { %8244 = vtanh.f32 %v3489_v46 }
 0xa18   : > { %v8239_v47 = vpop.eup %8238 }
 0xa19   : > { %v8241_v48 = vpop.eup %8240  ;;  %v3494_v49 = vadd.f32 1.0, %v8239_v47  ;;  %v7826_v47 = vld [vmem:[#allocation3 + $0x300] ss:$8 sps:$4 sm:$0xff]  }
 0xa1a   : > { %v8243_v50 = vpop.eup %8242  ;;  %v3495_v51 = vadd.f32 1.0, %v8241_v48  ;;  %v7831_v48 = vld [vmem:[#allocation3 + $0x314] ss:$8 sps:$4 sm:$0xff]  }
 0xa1b   : > { %v8245_v53 = vpop.eup %8244  ;;  %v3496_v54 = vadd.f32 1.0, %v8243_v50  ;;  %v3498_v57 = vmul.f32 %v3494_v49, %v3486_v39  ;;  %v7829_v49 = vld [vmem:[#allocation3 + $0x310] ss:$8 sps:$4 sm:$0xff]   ;;  %v7834_v50 = vld [vmem:[#allocation3 + $0x324] ss:$8 sps:$4 sm:$0xff]  }
 0xa1c   : > { %v3497_v56 = vadd.f32 1.0, %v8245_v53  ;;  %v3499_v59 = vmul.f32 %v3495_v51, %v3487_v43  ;;  %v7832_v51 = vld [vmem:[#allocation3 + $0x320] ss:$8 sps:$4 sm:$0xff]   ;;  %v7837_v53 = vld [vmem:[#allocation3 + $0x334] ss:$8 sps:$4 sm:$0xff]  }
 0xa1d   : > { %v3500_v58 = vmul.f32 %v3496_v54, %v3488_v45  ;;  %v7828_v45 = vld [vmem:[#allocation3 + $0x304] ss:$8 sps:$4 sm:$0xff]   ;;  %v7835_v54 = vld [vmem:[#allocation3 + $0x330] ss:$8 sps:$4 sm:$0xff]  }
 0xa1e   : > { %v3501_v60 = vmul.f32 %v3497_v56, %v3489_v46  ;;  %v7825_v46 = vld [vmem:[%s8744_s11 + $0x18] sm:$0xff]  }
 0xa1f   : > { %v3502_v61 = vpack.c.bf16 %v3500_v58, %v3498_v57  ;;  %v7840_v56 = vld [vmem:[#allocation3 + $0x344] ss:$8 sps:$4 sm:$0xff]   ;;  %v7838_v57 = vld [vmem:[#allocation3 + $0x340] ss:$8 sps:$4 sm:$0xff]   ;;  %v7843_v58 = vld [vmem:[#allocation3 + $0x354] ss:$8 sps:$4 sm:$0xff]  }
 0xa20   : > { %v3503_v62 = vpack.c.bf16 %v3501_v60, %v3499_v59  ;;  %v7841_v59 = vld [vmem:[#allocation3 + $0x350] ss:$8 sps:$4 sm:$0xff]   ;;  %v7846_v60 = vld [vmem:[#allocation3 + $0x364] ss:$8 sps:$4 sm:$0xff]  }
 0xa22   : > { %3742 = vmatprep.mubr.bf16.mxu1 %v3503_v62  ;;  %v7849_v62 = vld [vmem:[#allocation3 + $0x374] ss:$8 sps:$4 sm:$0xff]  }
 0xa23   : > { %3743 = vmatmul.mubr.bf16.vlgmr.msra.gmra.mrb[20].mxu1 %v3502_v61  ;;  %v7844_v61 = vld [vmem:[#allocation3 + $0x360] ss:$8 sps:$4 sm:$0xff]  }
 0xaf6   : > { %v3744_v18 = vpop.f32.mrb[20].mxu1 }
 0xaf7   : > { %v3745_v19 = vadd.f32 %v3744_v18, %v3543_v16  ;;  %v3746_v20 = vpop.f32.mrb[21].mxu1  ;;  %v7871_v18 = vld [vmem:[#allocation3 + $0x3f0] ss:$8 sps:$4 sm:$0xff]  }
 0xaf8   : > { %v3747_v21 = vadd.f32 %v3746_v20, %v3547_v17  ;;  %v3748_v22 = vpop.f32.mrb[22].mxu1  ;;  %v6853_v20 = vld [vmem:[%s9147_s23 + $0x2] ss:$0 sm:$0xff] }
 0xaf9   : > { %v3753_v23 = vmul.f32 0.5, %v3745_v19  ;;  %v3749_v52 = vadd.f32 %v3748_v22, %v3543_v16  ;;  %v3750_v24 = vpop.f32.mrb[23].mxu1  ;;  %v7868_v16 = vld [vmem:[#allocation3 + $0x3e0] ss:$8 sps:$4 sm:$0xff]  }
 0xafa   : > { %v3754_v55 = vmul.f32 0.5, %v3747_v21  ;;  %v3751_v25 = vadd.f32 %v3750_v24, %v3547_v17  ;;  %v7873_v17 = vld [vmem:[#allocation3 + $0x3f4] ss:$8 sps:$4 sm:$0xff]  }
 0xafb   : > { %8246 = vtanh.f32 %v3753_v23  ;;  %v3755_v26 = vmul.f32 0.5, %v3749_v52  ;;  %v6878_v52 = vld [vmem:[%s9099_s2 + $0x6] sm:$0x3] }
 0xafc   : > { %8248 = vtanh.f32 %v3754_v55  ;;  %v3756_v27 = vmul.f32 0.5, %v3751_v25 }
 0xafd   : > { %8250 = vtanh.f32 %v3755_v26 }
 0xafe   : > { %8252 = vtanh.f32 %v3756_v27 }
 0xb05   : > { %v8247_v28 = vpop.eup %8246 }
 0xb06   : > { %v8249_v29 = vpop.eup %8248  ;;  %v3761_v30 = vadd.f32 1.0, %v8247_v28 }
 0xb07   : > { %v8251_v31 = vpop.eup %8250  ;;  %v3762_v32 = vadd.f32 1.0, %v8249_v29  ;;  %v3993_v29 = vrot.slane %v6878_v52, %v8774_v2 }
 0xb08   : > { %v8253_v33 = vpop.eup %8252  ;;  %v3763_v34 = vadd.f32 1.0, %v8251_v31  ;;  %v3765_v36 = vmul.f32 %v3761_v30, %v3753_v23 }
 0xb09   : > { %v3764_v35 = vadd.f32 1.0, %v8253_v33  ;;  %v3766_v39 = vmul.f32 %v3762_v32, %v3754_v55 }
 0xb0a   : > { %v3767_v37 = vmul.f32 %v3763_v34, %v3755_v26  ;;  %v3989_v26 = vrot.slane %v6878_v52, %v8772_v1  ;;  %v7898_v52 = vld [vmem:[#allocation5 + $0x380] ss:$8 sps:$4 sm:$0xff]  }
 0xb0b   : > { %v3768_v41 = vmul.f32 %v3764_v35, %v3756_v27 }
 0xb0c   : > { %v3769_v42 = vpack.c.bf16 %v3767_v37, %v3765_v36 }
 0xb0d   : > { %v3770_v43 = vpack.c.bf16 %v3768_v41, %v3766_v39 }
 0xb0f   : > { %3940 = vmatprep.mubr.bf16.mxu0 %v3770_v43 }
 0xb10   : > { %3941 = vmatmul.mubr.bf16.vlgmr.msra.gmra.mrb[32].mxu0 %v3769_v42 }
 0xb11   : > { %4019 = vmatpush1.bf16.msra.mxu0 %v4013_v44  ;;  %4050 = vmatprep.mubr.bf16.mxu0 %v8490_v5 }
 0xb12   : > { %4285 = vmatprep.subr.bf16.mxu0 %v7828_v45 }
 0xb18   : > { %6883 = vmatmul.mubr.msk.bf16.vlgmr.msra.gmra.mrb[36].mxu0 %vm669_vm1, %v7825_v46  ;;  %v7874_v46 = vld [vmem:[#allocation5 + $0x300] ss:$8 sps:$4 sm:$0xff]  }
 0xb19   : > { %4286 = vmatpush1.bf16.msra.mxu0 %v7826_v47  ;;  %v7876_v47 = vld [vmem:[#allocation5 + $0x304] ss:$8 sps:$4 sm:$0xff]  }
 0xb1a   : > { %4287 = vmatprep.subr.bf16.mxu0 %v7831_v48  ;;  %v7879_v48 = vld [vmem:[#allocation5 + $0x314] ss:$8 sps:$4 sm:$0xff]   ;;  %4552 = vmatprep.subr.bf16.mxu1 %v7876_v47 }
 0xb1b   : > { %4553 = vmatpush1.bf16.msra.mxu1 %v7874_v46  ;;  %v7924_v46 = vld [vmem:[#allocation7 + $0x304] ss:$8 sps:$4 sm:$0xff]  }
 0xb1c   : > { %4554 = vmatprep.subr.bf16.mxu1 %v7879_v48  ;;  %v7927_v48 = vld [vmem:[#allocation7 + $0x314] ss:$8 sps:$4 sm:$0xff]  }
 0xb1d   : > { %4288 = vmatpush1.bf16.msra.mxu0 %v7829_v49 }
 0xb1e   : > { %4289 = vmatprep.subr.bf16.mxu0 %v7834_v50 }
 0xb21   : > { %4290 = vmatpush1.bf16.msra.mxu0 %v7832_v51  ;;  %v7877_v51 = vld [vmem:[#allocation5 + $0x310] ss:$8 sps:$4 sm:$0xff]  }
 0xb22   : > { %4291 = vmatprep.subr.bf16.mxu0 %v7837_v53  ;;  %4555 = vmatpush1.bf16.msra.mxu1 %v7877_v51  ;;  %v7928_v51 = vld [vmem:[#allocation7 + $0x320] ss:$8 sps:$4 sm:$0xff]  }
 0xb25   : > { %4292 = vmatpush1.bf16.msra.mxu0 %v7835_v54  ;;  %v7882_v54 = vld [vmem:[#allocation5 + $0x324] ss:$8 sps:$4 sm:$0xff]  }
 0xb26   : > { %4293 = vmatprep.subr.bf16.mxu0 %v7840_v56  ;;  %4556 = vmatprep.subr.bf16.mxu1 %v7882_v54  ;;  %v7931_v54 = vld [vmem:[#allocation7 + $0x330] ss:$8 sps:$4 sm:$0xff]  }
 0xb29   : > { %4294 = vmatpush1.bf16.msra.mxu0 %v7838_v57 }
 0xb2a   : > { %4295 = vmatprep.subr.bf16.mxu0 %v7843_v58 }
 0xb2d   : > { %4296 = vmatpush1.bf16.msra.mxu0 %v7841_v59 }
 0xb2e   : > { %4297 = vmatprep.subr.bf16.mxu0 %v7846_v60 }
 0xb31   : > { %4298 = vmatpush1.bf16.msra.mxu0 %v7844_v61 }
 0xb32   : > { %4299 = vmatprep.subr.bf16.mxu0 %v7849_v62 }
 0xb35   : > { %4300 = vmatpush1.bf16.msra.mxu0 %v7847_v63 }
 0xb36   : > { %4301 = vmatprep.subr.bf16.mxu0 %v7852_v0  ;;  %v7880_v0 = vld [vmem:[#allocation5 + $0x320] ss:$8 sps:$4 sm:$0xff]  }
 0xb37   : > { %4557 = vmatpush1.bf16.msra.mxu1 %v7880_v0  ;;  %v7948_v0 = vld [vmem:[#allocation7 + $0x384] ss:$8 sps:$4 sm:$0xff]  }
 0xb39   : > { %4302 = vmatpush1.bf16.msra.mxu0 %v7850_v3 }
 0xb3a   : > { %4303 = vmatprep.subr.bf16.mxu0 %v7855_v4 }
 0xb3d   : > { %4304 = vmatpush1.bf16.msra.mxu0 %v7853_v6  ;;  %v7885_v6 = vld [vmem:[#allocation5 + $0x334] ss:$8 sps:$4 sm:$0xff]  }
 0xb3e   : > { %4305 = vmatprep.subr.bf16.mxu0 %v7858_v7  ;;  %4558 = vmatprep.subr.bf16.mxu1 %v7885_v6  ;;  %v7949_v6 = vld [vmem:[#allocation7 + $0x390] ss:$8 sps:$4 sm:$0xff]  }
 0xb41   : > { %4306 = vmatpush1.bf16.msra.mxu0 %v7856_v8 }
 0xb42   : > { %4307 = vmatprep.subr.bf16.mxu0 %v7861_v9 }
 0xb45   : > { %4308 = vmatpush1.bf16.msra.mxu0 %v7859_v10 }
 0xb46   : > { %4309 = vmatprep.subr.bf16.mxu0 %v7864_v11 }
 0xb49   : > { %4310 = vmatpush1.bf16.msra.mxu0 %v7862_v12  ;;  %v7883_v12 = vld [vmem:[#allocation5 + $0x330] ss:$8 sps:$4 sm:$0xff]  }
 0xb4a   : > { %4311 = vmatprep.subr.bf16.mxu0 %v7867_v13  ;;  %4559 = vmatpush1.bf16.msra.mxu1 %v7883_v12 }
 0xb4d   : > { %4312 = vmatpush1.bf16.msra.mxu0 %v7865_v14  ;;  %v7888_v14 = vld [vmem:[#allocation5 + $0x344] ss:$8 sps:$4 sm:$0xff]  }
 0xb4e   : > { %4313 = vmatprep.subr.bf16.mxu0 %v7870_v15  ;;  %4560 = vmatprep.subr.bf16.mxu1 %v7888_v14 }
 0xb51   : > { %4314 = vmatpush1.bf16.msra.mxu0 %v7868_v16  ;;  %v7886_v16 = vld [vmem:[#allocation5 + $0x340] ss:$8 sps:$4 sm:$0xff]  }
 0xb52   : > { %4315 = vmatprep.subr.bf16.mxu0 %v7873_v17  ;;  %v7891_v17 = vld [vmem:[#allocation5 + $0x354] ss:$8 sps:$4 sm:$0xff]   ;;  %4561 = vmatpush1.bf16.msra.mxu1 %v7886_v16 }
 0xb53   : > { %4562 = vmatprep.subr.bf16.mxu1 %v7891_v17 }
 0xb55   : > { %4316 = vmatpush1.bf16.msra.mxu0 %v7871_v18  ;;  %v7889_v18 = vld [vmem:[#allocation5 + $0x350] ss:$8 sps:$4 sm:$0xff]  }
 0xb56   : > { %4563 = vmatpush1.bf16.msra.mxu1 %v7889_v18  ;;  %4819 = vmatprep.subr.bf16.mxu0 %v7924_v46  ;;  %v7964_v46 = vld [vmem:[#allocation7 + $0x3e0] ss:$8 sps:$4 sm:$0xff]  }
 0xbe3   : > { %v7205_v19 = vpop.f32.mrb[32].mxu0 }
 0xbe4   : > { %v7206_v21 = vpop.f32.mrb[33].mxu0 }
 0xbe5   : > { %v7207_v22 = vadd.f32 %v7206_v21, %v7205_v19  ;;  %v7208_v23 = vpop.f32.mrb[34].mxu0  ;;  %v7894_v19 = vld [vmem:[#allocation5 + $0x364] ss:$8 sps:$4 sm:$0xff]   ;;  %v7897_v21 = vld [vmem:[#allocation5 + $0x374] ss:$8 sps:$4 sm:$0xff]  }
 0xbe6   : > { %v7209_v24 = vpop.f32.mrb[35].mxu0  ;;  %4564 = vmatprep.subr.bf16.mxu1 %v7894_v19 }
 0xbe7   : > { %v3943_v55 = vadd.f32 %v7207_v22, %v6853_v20  ;;  %v7210_v25 = vadd.f32 %v7209_v24, %v7208_v23  ;;  %v7895_v22 = vld [vmem:[#allocation5 + $0x370] ss:$8 sps:$4 sm:$0xff]   ;;  %v7900_v23 = vld [vmem:[#allocation5 + $0x384] ss:$8 sps:$4 sm:$0xff]   ;;  %v7903_v24 = vld [vmem:[#allocation5 + $0x394] ss:$8 sps:$4 sm:$0xff]  }
 0xbe9   : > { %6870 = vst.msk [vmem:[%s8821_s18 + $0x20] sm:$0xff] %vm1712_vm2, %v3943_v55  ;;  %v3952_v27 = vsub.f32 %v3943_v55, %v8817_v40  ;;  %v3946_v28 = vadd.f32 %v7210_v25, %v6853_v20  ;;  %v7892_v20 = vld [vmem:[#allocation5 + $0x360] ss:$8 sps:$4 sm:$0xff]   ;;  %v7901_v55 = vld [vmem:[#allocation5 + $0x390] ss:$8 sps:$4 sm:$0xff]  }
 0xbea   : > { %4565 = vmatpush1.bf16.msra.mxu1 %v7892_v20  ;;  %v7906_v25 = vld [vmem:[#allocation5 + $0x3a4] ss:$8 sps:$4 sm:$0xff]  }
 0xbeb   : > { %v3954_v30 = vmul.f32 0.5, %v3952_v27  ;;  %6871 = vst.msk [vmem:[%s8821_s18 + $0x28] sm:$0xff] %vm1712_vm2, %v3946_v28  ;;  %v3953_v31 = vsub.f32 %v3946_v28, %v8817_v40  ;;  %v4052_v32 = vpop.f32.mrb[36].mxu0  ;;  %4566 = vmatprep.subr.bf16.mxu1 %v7897_v21  ;;  %v7909_v27 = vld [vmem:[#allocation5 + $0x3b4] ss:$8 sps:$4 sm:$0xff]  }
 0xbec   : > { %v4053_v33 = vadd.f32 %v4052_v32, %v3989_v26  ;;  %v4054_v34 = vpop.f32.mrb[37].mxu0  ;;  %v7907_v28 = vld [vmem:[#allocation5 + $0x3b0] ss:$8 sps:$4 sm:$0xff]  }
 0xbed   : > { %8254 = vtanh.f32 %v3954_v30  ;;  %v3955_v35 = vmul.f32 0.5, %v3953_v31  ;;  %v4055_v36 = vadd.f32 %v4054_v34, %v3993_v29  ;;  %v4056_v37 = vpop.f32.mrb[38].mxu0  ;;  %v7910_v30 = vld [vmem:[#allocation5 + $0x3c0] ss:$8 sps:$4 sm:$0xff]   ;;  %v7915_v31 = vld [vmem:[#allocation5 + $0x3d4] ss:$8 sps:$4 sm:$0xff]  }
 0xbee   : > { %v4061_v38 = vmul.f32 0.5, %v4053_v33  ;;  %v4057_v39 = vadd.f32 %v4056_v37, %v3989_v26  ;;  %v4058_v41 = vpop.f32.mrb[39].mxu0  ;;  %4567 = vmatpush1.bf16.msra.mxu1 %v7895_v22  ;;  %v7904_v26 = vld [vmem:[#allocation5 + $0x3a0] ss:$8 sps:$4 sm:$0xff]   ;;  %v7913_v32 = vld [vmem:[#allocation5 + $0x3d0] ss:$8 sps:$4 sm:$0xff]  }
 0xbef   : > { %8256 = vtanh.f32 %v3955_v35  ;;  %v4062_v42 = vmul.f32 0.5, %v4055_v36  ;;  %v4059_v43 = vadd.f32 %v4058_v41, %v3993_v29  ;;  %4568 = vmatprep.subr.bf16.mxu1 %v7900_v23  ;;  %v7912_v29 = vld [vmem:[#allocation5 + $0x3c4] ss:$8 sps:$4 sm:$0xff]   ;;  %v7916_v34 = vld [vmem:[#allocation5 + $0x3e0] ss:$8 sps:$4 sm:$0xff]  }
 0xbf0   : > { %8258 = vtanh.f32 %v4061_v38  ;;  %v4063_v44 = vmul.f32 0.5, %v4057_v39  ;;  %v7918_v33 = vld [vmem:[#allocation5 + $0x3e4] ss:$8 sps:$4 sm:$0xff]   ;;  %v7921_v35 = vld [vmem:[#allocation5 + $0x3f4] ss:$8 sps:$4 sm:$0xff]  }
 0xbf1   : > { %8260 = vtanh.f32 %v4062_v42  ;;  %v4064_v45 = vmul.f32 0.5, %v4059_v43  ;;  %v7919_v36 = vld [vmem:[#allocation5 + $0x3f0] ss:$8 sps:$4 sm:$0xff]  }
 0xbf2   : > { %8262 = vtanh.f32 %v4063_v44  ;;  %4569 = vmatpush1.bf16.msra.mxu1 %v7898_v52 }
 0xbf3   : > { %8264 = vtanh.f32 %v4064_v45  ;;  %4570 = vmatprep.subr.bf16.mxu1 %v7903_v24 }
 0xbf6   : > { %4571 = vmatpush1.bf16.msra.mxu1 %v7901_v55 }
 0xbf7   : > { %v8255_v49 = vpop.eup %8254  ;;  %4572 = vmatprep.subr.bf16.mxu1 %v7906_v25 }
 0xbf8   : > { %v3958_v50 = vadd.f32 1.0, %v8255_v49  ;;  %v7925_v49 = vld [vmem:[#allocation7 + $0x310] ss:$8 sps:$4 sm:$0xff]  }
 0xbf9   : > { %v8257_v53 = vpop.eup %8256 }
 0xbfa   : > { %v8259_v56 = vpop.eup %8258  ;;  %v3960_v57 = vmul.f32 0.5, %v3958_v50  ;;  %v3959_v58 = vadd.f32 1.0, %v8257_v53  ;;  %4573 = vmatpush1.bf16.msra.mxu1 %v7904_v26  ;;  %v7930_v50 = vld [vmem:[#allocation7 + $0x324] ss:$8 sps:$4 sm:$0xff]   ;;  %v7933_v53 = vld [vmem:[#allocation7 + $0x334] ss:$8 sps:$4 sm:$0xff]  }
 0xbfb   : > { %v8261_v59 = vpop.eup %8260  ;;  %v4069_v60 = vadd.f32 1.0, %v8259_v56  ;;  %4574 = vmatprep.subr.bf16.mxu1 %v7909_v27  ;;  %v7936_v56 = vld [vmem:[#allocation7 + $0x344] ss:$8 sps:$4 sm:$0xff]  }
 0xbfc   : > { %v8263_v61 = vpop.eup %8262  ;;  %v4070_v62 = vadd.f32 1.0, %v8261_v59  ;;  %3964 = vrot.lane.b32.xlu1 %v3960_v57, %s8492_s20  ;;  %v3961_v63 = vmul.f32 0.5, %v3959_v58  ;;  %v7934_v57 = vld [vmem:[#allocation7 + $0x340] ss:$8 sps:$4 sm:$0xff]   ;;  %v7939_v58 = vld [vmem:[#allocation7 + $0x354] ss:$8 sps:$4 sm:$0xff]  }
 0xbfd   : > { %v8265_v3 = vpop.eup %8264  ;;  %v4071_v4 = vadd.f32 1.0, %v8263_v61  ;;  %v4073_v8 = vmul.f32 %v4069_v60, %v4061_v38  ;;  %v8951_v38 = vld [vmem:[%s9148_s27] ss:$0 sm:$0xff]  ;;  %v7942_v60 = vld [vmem:[#allocation7 + $0x364] ss:$8 sps:$4 sm:$0xff]  }
 0xbfe   : > { %v4072_v7 = vadd.f32 1.0, %v8265_v3  ;;  %3966 = vrot.lane.b32.xlu0 %v3961_v63, %s8492_s20  ;;  %v4074_v10 = vmul.f32 %v4070_v62, %v4062_v42  ;;  %4575 = vmatpush1.bf16.msra.mxu1 %v7907_v28  ;;  %v8957_v42 = vld [vmem:[%s9149_s16] ss:$0 sm:$0xff]  ;;  %v7940_v61 = vld [vmem:[#allocation7 + $0x360] ss:$8 sps:$4 sm:$0xff]  }
 0xbff   : > { %v4075_v9 = vmul.f32 %v4071_v4, %v4063_v44  ;;  %4576 = vmatprep.subr.bf16.mxu1 %v7912_v29  ;;  %v7937_v59 = vld [vmem:[#allocation7 + $0x350] ss:$8 sps:$4 sm:$0xff]   ;;  %v7945_v62 = vld [vmem:[#allocation7 + $0x374] ss:$8 sps:$4 sm:$0xff]   ;;  %v7946_v3 = vld [vmem:[#allocation7 + $0x380] ss:$8 sps:$4 sm:$0xff]  }
 0xc00   : > { %v4076_v11 = vmul.f32 %v4072_v7, %v4064_v45  ;;  %v7922_v45 = vld [vmem:[#allocation7 + $0x300] ss:$8 sps:$4 sm:$0xff]   ;;  %v7943_v63 = vld [vmem:[#allocation7 + $0x370] ss:$8 sps:$4 sm:$0xff]   ;;  %v7951_v4 = vld [vmem:[#allocation7 + $0x394] ss:$8 sps:$4 sm:$0xff]  }
 0xc01   : > { %v4077_v13 = vpack.c.bf16 %v4075_v9, %v4073_v8  ;;  %v6884_v7 = vld [vmem:[%s9101_s4 + $0x6] sm:$0x3] }
 0xc02   : > { %v4078_v15 = vpack.c.bf16 %v4076_v11, %v4074_v10  ;;  %4577 = vmatpush1.bf16.msra.mxu1 %v7910_v30  ;;  %v4118_v8 = vrot.slane %v6884_v7, %v8772_v1  ;;  %v4122_v9 = vrot.slane %v6884_v7, %v8774_v2 }
 0xc03   : > { %4578 = vmatprep.subr.bf16.mxu1 %v7915_v31 }
 0xc04   : > { %4317 = vmatprep.mubr.bf16.mxu0 %v4078_v15 }
 0xc05   : > { %4318 = vmatmul.mubr.bf16.vlgmr.msra.gmra.mrb[40].mxu0 %v4077_v13 }
 0xc06   : > { %4579 = vmatpush1.bf16.msra.mxu1 %v7913_v32  ;;  %4820 = vmatpush1.bf16.msra.mxu0 %v7922_v45  ;;  %v7966_v45 = vld [vmem:[#allocation7 + $0x3e4] ss:$8 sps:$4 sm:$0xff]  }
 0xc07   : > { %4580 = vmatprep.subr.bf16.mxu1 %v7918_v33  ;;  %4821 = vmatprep.subr.bf16.mxu0 %v7927_v48  ;;  %v7967_v48 = vld [vmem:[#allocation7 + $0x3f0] ss:$8 sps:$4 sm:$0xff]  }
 0xc0a   : > { %4581 = vmatpush1.bf16.msra.mxu1 %v7916_v34  ;;  %4822 = vmatpush1.bf16.msra.mxu0 %v7925_v49  ;;  %v7954_v34 = vld [vmem:[#allocation7 + $0x3a4] ss:$8 sps:$4 sm:$0xff]   ;;  %v7970_v49 = vld [vmem:[%s9098_s1 + $0x44] ss:$8 sps:$4 sm:$0x7f]  }
 0xc0b   : > { %4582 = vmatprep.subr.bf16.mxu1 %v7921_v35  ;;  %4823 = vmatprep.subr.bf16.mxu0 %v7930_v50  ;;  %v7952_v35 = vld [vmem:[#allocation7 + $0x3a0] ss:$8 sps:$4 sm:$0xff]  }
 0xc0c   : > { %v7974_v50 = vld [vmem:[#allocation8 + $0x1c0] sm:$0xff]  }
 0xc0e   : > { %4583 = vmatpush1.bf16.msra.mxu1 %v7919_v36  ;;  %4824 = vmatpush1.bf16.msra.mxu0 %v7928_v51  ;;  %v7957_v36 = vld [vmem:[#allocation7 + $0x3b4] ss:$8 sps:$4 sm:$0xff]   ;;  %v7975_v51 = vld [vmem:[#allocation8 + $0x180] sm:$0xff]  }
 0xc0f   : > { %4825 = vmatprep.subr.bf16.mxu0 %v7933_v53  ;;  %v7976_v53 = vld [vmem:[#allocation8 + $0x1c8] sm:$0xff]   ;;  %7211 = vmatprep.subr.bf16.mxu1 %v7974_v50 }
 0xc12   : > { %4826 = vmatpush1.bf16.msra.mxu0 %v7931_v54  ;;  %v7977_v54 = vld [vmem:[#allocation8 + $0x188] sm:$0xff]  }
 0xc13   : > { %4827 = vmatprep.subr.bf16.mxu0 %v7936_v56  ;;  %v6917_v56 = vld [vmem:[%s9103_s6 + $0x6] sm:$0x3] }
 0xc16   : > { %4828 = vmatpush1.bf16.msra.mxu0 %v7934_v57  ;;  %v4385_v57 = vrot.slane %v6917_v56, %v8772_v1 }
 0xc17   : > { %4829 = vmatprep.subr.bf16.mxu0 %v7939_v58  ;;  %v4389_v58 = vrot.slane %v6917_v56, %v8774_v2 }
 0xc1a   : > { %4830 = vmatpush1.bf16.msra.mxu0 %v7937_v59 }
 0xc1b   : > { %4831 = vmatprep.subr.bf16.mxu0 %v7942_v60 }
 0xc1e   : > { %4832 = vmatpush1.bf16.msra.mxu0 %v7940_v61 }
 0xc1f   : > { %4833 = vmatprep.subr.bf16.mxu0 %v7945_v62 }
 0xc22   : > { %4834 = vmatpush1.bf16.msra.mxu0 %v7943_v63 }
 0xc23   : > { %4835 = vmatprep.subr.bf16.mxu0 %v7948_v0 }
 0xc26   : > { %4836 = vmatpush1.bf16.msra.mxu0 %v7946_v3 }
 0xc27   : > { %4837 = vmatprep.subr.bf16.mxu0 %v7951_v4 }
 0xc2a   : > { %4838 = vmatpush1.bf16.msra.mxu0 %v7949_v6 }
 0xc2b   : > { %4839 = vmatprep.subr.bf16.mxu0 %v7954_v34  ;;  %v7988_v34 = vld [vmem:[#allocation8 + $0x1f8] sm:$0xff]  }
 0xc2e   : > { %4840 = vmatpush1.bf16.msra.mxu0 %v7952_v35  ;;  %v7989_v35 = vld [vmem:[#allocation8 + $0x1b8] sm:$0xff]  }
 0xc2f   : > { %4841 = vmatprep.subr.bf16.mxu0 %v7957_v36  ;;  %v7992_v36 = vld [vmem:[#allocation3 + $0x404] ss:$8 sps:$4 sm:$0xff]  }
 0xc6e   : > { %v3965_v37 = vpop.permute.xlu1 %3964 }
 0xc6f   : > { %v3970_v39 = vmul.f32 %v8951_v38, %v3965_v37  ;;  %v7955_v37 = vld [vmem:[#allocation7 + $0x3b0] ss:$8 sps:$4 sm:$0xff]  }
 0xc70   : > { %v3967_v41 = vpop.permute.xlu0 %3966  ;;  %4842 = vmatpush1.bf16.msra.mxu0 %v7955_v37  ;;  %v6950_v37 = vld [vmem:[%s9146_s24 + $0x6] sm:$0x3] }
 0xc71   : > { %v3972_v43 = vadd.f32 %v8957_v42, %v3970_v39  ;;  %v3971_v44 = vmul.f32 %v8951_v38, %v3967_v41  ;;  %v7960_v39 = vld [vmem:[#allocation7 + $0x3c4] ss:$8 sps:$4 sm:$0xff]   ;;  %v7958_v41 = vld [vmem:[#allocation7 + $0x3c0] ss:$8 sps:$4 sm:$0xff]  }
 0xc72   : > { %4843 = vmatprep.subr.bf16.mxu0 %v7960_v39  ;;  %v4652_v39 = vrot.slane %v6950_v37, %v8772_v1 }
 0xc73   : > { %6872 = vst.msk [vmem:[%s8846_s26 + $0x20] sm:$0xff] %vm1712_vm2, %v3972_v43  ;;  %v3973_v47 = vadd.f32 %v8957_v42, %v3971_v44  ;;  %v7963_v43 = vld [vmem:[#allocation7 + $0x3d4] ss:$8 sps:$4 sm:$0xff]   ;;  %v7961_v44 = vld [vmem:[#allocation7 + $0x3d0] ss:$8 sps:$4 sm:$0xff]  }
 0xc74   : > { %4844 = vmatpush1.bf16.msra.mxu0 %v7958_v41  ;;  %v4656_v41 = vrot.slane %v6950_v37, %v8774_v2 }
 0xc75   : > { %6873 = vst.msk [vmem:[%s8846_s26 + $0x28] sm:$0xff] %vm1712_vm2, %v3973_v47  ;;  %4845 = vmatprep.subr.bf16.mxu0 %v7963_v43  ;;  %v7969_v47 = vld [vmem:[#allocation7 + $0x3f4] ss:$8 sps:$4 sm:$0xff]  }
 0xc78   : > { %4846 = vmatpush1.bf16.msra.mxu0 %v7961_v44 }
 0xc79   : > { %4847 = vmatprep.subr.bf16.mxu0 %v7966_v45 }
 0xc7c   : > { %4848 = vmatpush1.bf16.msra.mxu0 %v7964_v46 }
 0xc7d   : > { %4849 = vmatprep.subr.bf16.mxu0 %v7969_v47 }
 0xc80   : > { %4850 = vmatpush1.bf16.msra.mxu0 %v7967_v48  ;;  %v7009_v48 = vld [vmem:[%s9099_s2 + $0x8] sm:$0x3] }
 0xc81   : > { %7013 = vmatprep.subr.msk.bf16.mxu0 %vm673_vm0, %v7970_v49 }
 0xcd8   : > { %v4319_v10 = vpop.f32.mrb[40].mxu0 }
 0xcd9   : > { %v4320_v11 = vadd.f32 %v4319_v10, %v4118_v8  ;;  %v4321_v12 = vpop.f32.mrb[41].mxu0 }
 0xcda   : > { %v4322_v13 = vadd.f32 %v4321_v12, %v4122_v9  ;;  %v4323_v14 = vpop.f32.mrb[42].mxu0 }
 0xcdb   : > { %v4328_v15 = vmul.f32 0.5, %v4320_v11  ;;  %v4324_v16 = vadd.f32 %v4323_v14, %v4118_v8  ;;  %v4325_v17 = vpop.f32.mrb[43].mxu0 }
 0xcdc   : > { %v4329_v18 = vmul.f32 0.5, %v4322_v13  ;;  %v4326_v19 = vadd.f32 %v4325_v17, %v4122_v9 }
 0xcdd   : > { %8266 = vtanh.f32 %v4328_v15  ;;  %v4330_v20 = vmul.f32 0.5, %v4324_v16 }
 0xcde   : > { %8268 = vtanh.f32 %v4329_v18  ;;  %v4331_v21 = vmul.f32 0.5, %v4326_v19 }
 0xcdf   : > { %8270 = vtanh.f32 %v4330_v20 }
 0xce0   : > { %8272 = vtanh.f32 %v4331_v21 }
 0xce7   : > { %v8267_v22 = vpop.eup %8266 }
 0xce8   : > { %v8269_v23 = vpop.eup %8268  ;;  %v4336_v52 = vadd.f32 1.0, %v8267_v22 }
 0xce9   : > { %v8271_v24 = vpop.eup %8270  ;;  %v4337_v55 = vadd.f32 1.0, %v8269_v23 }
 0xcea   : > { %v8273_v25 = vpop.eup %8272  ;;  %v4338_v26 = vadd.f32 1.0, %v8271_v24  ;;  %v4340_v28 = vmul.f32 %v4336_v52, %v4328_v15 }
 0xceb   : > { %v4339_v27 = vadd.f32 1.0, %v8273_v25  ;;  %v4341_v30 = vmul.f32 %v4337_v55, %v4329_v18  ;;  %v7973_v55 = vld [vmem:[%s8744_s11 + $0x20] sm:$0xff]  }
 0xcec   : > { %v4342_v29 = vmul.f32 %v4338_v26, %v4330_v20  ;;  %v7972_v20 = vld [vmem:[%s9098_s1 + $0x40] ss:$8 sps:$4 sm:$0x7f]  }
 0xced   : > { %v4343_v31 = vmul.f32 %v4339_v27, %v4331_v21  ;;  %v5122_v24 = vsel %vm673_vm0, %v7972_v20, 0  ;;  %v7978_v25 = vld [vmem:[#allocation8 + $0x1d0] sm:$0xff]   ;;  %v7980_v27 = vld [vmem:[#allocation8 + $0x1d8] sm:$0xff]  }
 0xcee   : > { %v4344_v32 = vpack.c.bf16 %v4342_v29, %v4340_v28  ;;  %v7979_v26 = vld [vmem:[#allocation8 + $0x190] sm:$0xff]   ;;  %v7981_v28 = vld [vmem:[#allocation8 + $0x198] sm:$0xff]   ;;  %v7982_v29 = vld [vmem:[#allocation8 + $0x1e0] sm:$0xff]  }
 0xcef   : > { %v4345_v33 = vpack.c.bf16 %v4343_v31, %v4341_v30  ;;  %v7983_v30 = vld [vmem:[#allocation8 + $0x1a0] sm:$0xff]   ;;  %v7984_v31 = vld [vmem:[#allocation8 + $0x1e8] sm:$0xff]  }
 0xcf1   : > { %4584 = vmatprep.mubr.bf16.mxu1 %v4345_v33  ;;  %v7987_v33 = vld [vmem:[#allocation8 + $0x1b0] sm:$0xff]  }
 0xcf2   : > { %4585 = vmatmul.mubr.bf16.vlgmr.msra.gmra.mrb[24].mxu1 %v4344_v32  ;;  %v7985_v32 = vld [vmem:[#allocation8 + $0x1a8] sm:$0xff]  }
 0xcf3   : > { %7212 = vmatpush3.bf16.msra.mxu1 %v7975_v51 }
 0xcf4   : > { %7213 = vmatprep.subr.bf16.mxu1 %v7976_v53 }
 0xcf7   : > { %7214 = vmatpush3.bf16.msra.mxu1 %v7977_v54 }
 0xcf8   : > { %7215 = vmatprep.subr.bf16.mxu1 %v7978_v25 }
 0xcfb   : > { %7216 = vmatpush3.bf16.msra.mxu1 %v7979_v26  ;;  %v7995_v26 = vld [vmem:[#allocation3 + $0x414] ss:$8 sps:$4 sm:$0xff]  }
 0xcfc   : > { %7217 = vmatprep.subr.bf16.mxu1 %v7980_v27 }
 0xcff   : > { %7218 = vmatpush3.bf16.msra.mxu1 %v7981_v28 }
 0xd00   : > { %7219 = vmatprep.subr.bf16.mxu1 %v7982_v29 }
 0xd03   : > { %7220 = vmatpush3.bf16.msra.mxu1 %v7983_v30 }
 0xd04   : > { %7221 = vmatprep.subr.bf16.mxu1 %v7984_v31 }
 0xd07   : > { %7222 = vmatpush3.bf16.msra.mxu1 %v7985_v32 }
 0xdc5   : > { %v4586_v59 = vpop.f32.mrb[24].mxu1 }
 0xdc6   : > { %v4587_v60 = vadd.f32 %v4586_v59, %v4385_v57  ;;  %v4588_v61 = vpop.f32.mrb[25].mxu1  ;;  %v5102_v59 = vrot.slane %v7009_v48, %v8774_v2 }
 0xdc7   : > { %v4589_v62 = vadd.f32 %v4588_v61, %v4389_v58  ;;  %v4590_v63 = vpop.f32.mrb[26].mxu1 }
 0xdc8   : > { %v4595_v0 = vmul.f32 0.5, %v4587_v60  ;;  %v4591_v3 = vadd.f32 %v4590_v63, %v4385_v57  ;;  %v4592_v4 = vpop.f32.mrb[27].mxu1  ;;  %v5098_v57 = vrot.slane %v7009_v48, %v8772_v1  ;;  %v8007_v48 = vld [vmem:[#allocation3 + $0x454] ss:$8 sps:$4 sm:$0xff]  }
 0xdc9   : > { %v4596_v6 = vmul.f32 0.5, %v4589_v62  ;;  %v4593_v7 = vadd.f32 %v4592_v4, %v4389_v58 }
 0xdca   : > { %8274 = vtanh.f32 %v4595_v0  ;;  %v4597_v8 = vmul.f32 0.5, %v4591_v3 }
 0xdcb   : > { %8276 = vtanh.f32 %v4596_v6  ;;  %v4598_v9 = vmul.f32 0.5, %v4593_v7 }
 0xdcc   : > { %8278 = vtanh.f32 %v4597_v8 }
 0xdcd   : > { %8280 = vtanh.f32 %v4598_v9 }
 0xdd4   : > { %v8275_v10 = vpop.eup %8274 }
 0xdd5   : > { %v8277_v11 = vpop.eup %8276  ;;  %v4603_v12 = vadd.f32 1.0, %v8275_v10 }
 0xdd6   : > { %v8279_v13 = vpop.eup %8278  ;;  %v4604_v14 = vadd.f32 1.0, %v8277_v11 }
 0xdd7   : > { %v8281_v15 = vpop.eup %8280  ;;  %v4605_v16 = vadd.f32 1.0, %v8279_v13  ;;  %v4607_v18 = vmul.f32 %v4603_v12, %v4595_v0 }
 0xdd8   : > { %v4606_v17 = vadd.f32 1.0, %v8281_v15  ;;  %v4608_v21 = vmul.f32 %v4604_v14, %v4596_v6 }
 0xdd9   : > { %v4609_v19 = vmul.f32 %v4605_v16, %v4597_v8 }
 0xdda   : > { %v4610_v22 = vmul.f32 %v4606_v17, %v4598_v9 }
 0xddb   : > { %v4611_v23 = vpack.c.bf16 %v4609_v19, %v4607_v18 }
 0xddc   : > { %v4612_v52 = vpack.c.bf16 %v4610_v22, %v4608_v21 }
 0xdde   : > { %4851 = vmatprep.mubr.bf16.mxu0 %v4612_v52 }
 0xddf   : > { %4852 = vmatmul.mubr.bf16.vlgmr.msra.gmra.mrb[44].mxu0 %v4611_v23 }
 0xde0   : > { %5128 = vmatpush1.bf16.msra.mxu0 %v5122_v24  ;;  %5159 = vmatprep.mubr.bf16.mxu0 %v8490_v5  ;;  %v7986_v5 = vld [vmem:[#allocation8 + $0x1f0] sm:$0xff]  }
 0xde1   : > { %7223 = vmatprep.subr.bf16.mxu1 %v7986_v5  ;;  %v7993_v5 = vld [vmem:[#allocation3 + $0x410] ss:$8 sps:$4 sm:$0xff]  }
 0xde2   : > { %7224 = vmatpush3.bf16.msra.mxu1 %v7987_v33 }
 0xde3   : > { %7225 = vmatprep.subr.bf16.mxu1 %v7988_v34 }
 0xde6   : > { %7226 = vmatpush3.bf16.msra.mxu1 %v7989_v35  ;;  %v7998_v35 = vld [vmem:[#allocation3 + $0x424] ss:$8 sps:$4 sm:$0xff]  }
 0xde7   : > { %7014 = vmatmul.mubr.msk.bf16.vlgmr.msra.gmra.mrb[48].mxu0 %vm669_vm1, %v7973_v55  ;;  %5394 = vmatprep.subr.bf16.mxu1 %v7992_v36  ;;  %v7990_v55 = vld [vmem:[#allocation3 + $0x400] ss:$8 sps:$4 sm:$0xff]  }
 0xeb2   : > { %v4853_v43 = vpop.f32.mrb[44].mxu0 }
 0xeb3   : > { %v4854_v44 = vadd.f32 %v4853_v43, %v4652_v39  ;;  %v4855_v45 = vpop.f32.mrb[45].mxu0 }
 0xeb4   : > { %v4856_v46 = vadd.f32 %v4855_v45, %v4656_v41  ;;  %v4857_v47 = vpop.f32.mrb[46].mxu0  ;;  %v7999_v45 = vld [vmem:[#allocation3 + $0x430] ss:$8 sps:$4 sm:$0xff]  }
 0xeb5   : > { %v4862_v49 = vmul.f32 0.5, %v4854_v44  ;;  %v4858_v50 = vadd.f32 %v4857_v47, %v4652_v39  ;;  %v4859_v51 = vpop.f32.mrb[47].mxu0  ;;  %v8001_v44 = vld [vmem:[#allocation3 + $0x434] ss:$8 sps:$4 sm:$0xff]   ;;  %v8002_v47 = vld [vmem:[#allocation3 + $0x440] ss:$8 sps:$4 sm:$0xff]  }
 0xeb6   : > { %v4863_v53 = vmul.f32 0.5, %v4856_v46  ;;  %v4860_v54 = vadd.f32 %v4859_v51, %v4656_v41  ;;  %v7996_v41 = vld [vmem:[#allocation3 + $0x420] ss:$8 sps:$4 sm:$0xff]   ;;  %v8004_v46 = vld [vmem:[#allocation3 + $0x444] ss:$8 sps:$4 sm:$0xff]  }
 0xeb7   : > { %8282 = vtanh.f32 %v4862_v49  ;;  %v4864_v56 = vmul.f32 0.5, %v4858_v50  ;;  %v8010_v50 = vld [vmem:[#allocation3 + $0x464] ss:$8 sps:$4 sm:$0xff]   ;;  %v8008_v51 = vld [vmem:[#allocation3 + $0x460] ss:$8 sps:$4 sm:$0xff]  }
 0xeb8   : > { %8284 = vtanh.f32 %v4863_v53  ;;  %v4865_v58 = vmul.f32 0.5, %v4860_v54  ;;  %v8011_v54 = vld [vmem:[#allocation3 + $0x470] ss:$8 sps:$4 sm:$0xff]  }
 0xeb9   : > { %8286 = vtanh.f32 %v4864_v56 }
 0xeba   : > { %8288 = vtanh.f32 %v4865_v58  ;;  %v5161_v60 = vpop.f32.mrb[48].mxu0 }
 0xebb   : > { %v5162_v61 = vadd.f32 %v5161_v60, %v5098_v57  ;;  %v5163_v62 = vpop.f32.mrb[49].mxu0  ;;  %v8022_v60 = vld [vmem:[#allocation3 + $0x4a4] ss:$8 sps:$4 sm:$0xff]  }
 0xebc   : > { %v5164_v63 = vadd.f32 %v5163_v62, %v5102_v59  ;;  %v5165_v0 = vpop.f32.mrb[50].mxu0  ;;  %v8025_v62 = vld [vmem:[#allocation3 + $0x4b4] ss:$8 sps:$4 sm:$0xff]  }
 0xebd   : > { %v5170_v3 = vmul.f32 0.5, %v5162_v61  ;;  %v5166_v4 = vadd.f32 %v5165_v0, %v5098_v57  ;;  %v5167_v6 = vpop.f32.mrb[51].mxu0  ;;  %v8014_v57 = vld [vmem:[#allocation3 + $0x480] ss:$8 sps:$4 sm:$0xff]   ;;  %v8028_v0 = vld [vmem:[#allocation3 + $0x4c4] ss:$8 sps:$4 sm:$0xff]  }
 0xebe   : > { %v5171_v7 = vmul.f32 0.5, %v5164_v63  ;;  %v5168_v8 = vadd.f32 %v5167_v6, %v5102_v59  ;;  %v8017_v59 = vld [vmem:[#allocation3 + $0x490] ss:$8 sps:$4 sm:$0xff]   ;;  %v8020_v61 = vld [vmem:[#allocation3 + $0x4a0] ss:$8 sps:$4 sm:$0xff]  }
 0xebf   : > { %8290 = vtanh.f32 %v5170_v3  ;;  %v5172_v9 = vmul.f32 0.5, %v5166_v4  ;;  %v8023_v63 = vld [vmem:[#allocation3 + $0x4b0] ss:$8 sps:$4 sm:$0xff]   ;;  %v8031_v4 = vld [vmem:[#allocation3 + $0x4d4] ss:$8 sps:$4 sm:$0xff]  }
 0xec0   : > { %8292 = vtanh.f32 %v5171_v7  ;;  %v5173_v10 = vmul.f32 0.5, %v5168_v8  ;;  %v8029_v6 = vld [vmem:[#allocation3 + $0x4d0] ss:$8 sps:$4 sm:$0xff]   ;;  %v8032_v8 = vld [vmem:[#allocation3 + $0x4e0] ss:$8 sps:$4 sm:$0xff]  }
 0xec1   : > { %v8283_v11 = vpop.eup %8282  ;;  %8294 = vtanh.f32 %v5172_v9 }
 0xec2   : > { %v8285_v12 = vpop.eup %8284  ;;  %v4870_v13 = vadd.f32 1.0, %v8283_v11  ;;  %8296 = vtanh.f32 %v5173_v10  ;;  %v8038_v11 = vld [vmem:[#allocation5 + $0x400] ss:$8 sps:$4 sm:$0xff]  }
 0xec3   : > { %v8287_v14 = vpop.eup %8286  ;;  %v4871_v15 = vadd.f32 1.0, %v8285_v12  ;;  %v8040_v12 = vld [vmem:[#allocation5 + $0x404] ss:$8 sps:$4 sm:$0xff]  }
 0xec4   : > { %v8289_v16 = vpop.eup %8288  ;;  %v4872_v17 = vadd.f32 1.0, %v8287_v14  ;;  %v4874_v19 = vmul.f32 %v4870_v13, %v4862_v49  ;;  %v8005_v49 = vld [vmem:[#allocation3 + $0x450] ss:$8 sps:$4 sm:$0xff]   ;;  %5661 = vmatprep.subr.bf16.mxu0 %v8040_v12  ;;  %v8043_v14 = vld [vmem:[#allocation5 + $0x414] ss:$8 sps:$4 sm:$0xff]  }
 0xec5   : > { %v4873_v18 = vadd.f32 1.0, %v8289_v16  ;;  %v4875_v21 = vmul.f32 %v4871_v15, %v4863_v53  ;;  %v8013_v53 = vld [vmem:[#allocation3 + $0x474] ss:$8 sps:$4 sm:$0xff]   ;;  %5662 = vmatpush1.bf16.msra.mxu0 %v8038_v11  ;;  %v8041_v13 = vld [vmem:[#allocation5 + $0x410] ss:$8 sps:$4 sm:$0xff]  }
 0xec6   : > { %v4876_v20 = vmul.f32 %v4872_v17, %v4864_v56  ;;  %v8016_v56 = vld [vmem:[#allocation3 + $0x484] ss:$8 sps:$4 sm:$0xff]   ;;  %5663 = vmatprep.subr.bf16.mxu0 %v8043_v14  ;;  %v8044_v16 = vld [vmem:[#allocation5 + $0x420] ss:$8 sps:$4 sm:$0xff]   ;;  %v8049_v17 = vld [vmem:[#allocation5 + $0x434] ss:$8 sps:$4 sm:$0xff]  }
 0xec7   : > { %v4877_v22 = vmul.f32 %v4873_v18, %v4865_v58  ;;  %v8019_v58 = vld [vmem:[#allocation3 + $0x494] ss:$8 sps:$4 sm:$0xff]   ;;  %v8046_v15 = vld [vmem:[#allocation5 + $0x424] ss:$8 sps:$4 sm:$0xff]   ;;  %v8047_v18 = vld [vmem:[#allocation5 + $0x430] ss:$8 sps:$4 sm:$0xff]  }
 0xec8   : > { %v4878_v23 = vpack.c.bf16 %v4876_v20, %v4874_v19  ;;  %v8052_v19 = vld [vmem:[#allocation5 + $0x444] ss:$8 sps:$4 sm:$0xff]   ;;  %v8050_v20 = vld [vmem:[#allocation5 + $0x440] ss:$8 sps:$4 sm:$0xff]   ;;  %v8101_v14 = vld [vmem:[#allocation7 + $0x450] ss:$8 sps:$4 sm:$0xff]  }
 0xec9   : > { %v8291_v52 = vpop.eup %8290  ;;  %v4879_v24 = vpack.c.bf16 %v4877_v22, %v4875_v21  ;;  %5664 = vmatpush1.bf16.msra.mxu0 %v8041_v13  ;;  %v8055_v21 = vld [vmem:[#allocation5 + $0x454] ss:$8 sps:$4 sm:$0xff]   ;;  %v8053_v22 = vld [vmem:[#allocation5 + $0x450] ss:$8 sps:$4 sm:$0xff]   ;;  %v8100_v11 = vld [vmem:[#allocation7 + $0x444] ss:$8 sps:$4 sm:$0xff]  }
 0xeca   : > { %v8293_v25 = vpop.eup %8292  ;;  %v5178_v27 = vadd.f32 1.0, %v8291_v52  ;;  %5665 = vmatprep.subr.bf16.mxu0 %v8046_v15  ;;  %v8056_v52 = vld [vmem:[#allocation5 + $0x460] ss:$8 sps:$4 sm:$0xff]   ;;  %v8103_v13 = vld [vmem:[#allocation7 + $0x454] ss:$8 sps:$4 sm:$0xff]  }
 0xecb   : > { %v8295_v28 = vpop.eup %8294  ;;  %5049 = vmatprep.mubr.bf16.mxu1 %v4879_v24  ;;  %v5179_v29 = vadd.f32 1.0, %v8293_v25  ;;  %v8061_v24 = vld [vmem:[#allocation5 + $0x474] ss:$8 sps:$4 sm:$0xff]   ;;  %v8064_v25 = vld [vmem:[#allocation5 + $0x484] ss:$8 sps:$4 sm:$0xff]  }
 0xecc   : > { %v8297_v30 = vpop.eup %8296  ;;  %5050 = vmatmul.mubr.bf16.vlgmr.msra.gmra.mrb[28].mxu1 %v4878_v23  ;;  %v8997_v31 = vmul.f32 %v5178_v27, %v5170_v3  ;;  %v5180_v32 = vadd.f32 1.0, %v8295_v28  ;;  %v8026_v3 = vld [vmem:[#allocation3 + $0x4c0] ss:$8 sps:$4 sm:$0xff]   ;;  %v8058_v23 = vld [vmem:[#allocation5 + $0x464] ss:$8 sps:$4 sm:$0xff]  }
 0xecd   : > { %5395 = vmatpush1.bf16.msra.mxu1 %v7990_v55  ;;  %v5183_v33 = vmul.f32 %v5179_v29, %v5171_v7  ;;  %v5181_v34 = vadd.f32 1.0, %v8297_v30  ;;  %v8034_v7 = vld [vmem:[#allocation3 + $0x4e4] ss:$8 sps:$4 sm:$0xff]   ;;  %5666 = vmatpush1.bf16.msra.mxu0 %v8044_v16  ;;  %v8059_v55 = vld [vmem:[#allocation5 + $0x470] ss:$8 sps:$4 sm:$0xff]  }
 0xece   : > { %5396 = vmatprep.subr.bf16.mxu1 %v7995_v26  ;;  %v5184_v36 = vmul.f32 %v5180_v32, %v5172_v9  ;;  %v8037_v9 = vld [vmem:[#allocation3 + $0x4f4] ss:$8 sps:$4 sm:$0xff]   ;;  %5667 = vmatprep.subr.bf16.mxu0 %v8049_v17  ;;  %v8062_v26 = vld [vmem:[#allocation5 + $0x480] ss:$8 sps:$4 sm:$0xff]   ;;  %v8065_v28 = vld [vmem:[#allocation5 + $0x490] ss:$8 sps:$4 sm:$0xff]  }
 0xecf   : > { %v5185_v37 = vmul.f32 %v5181_v34, %v5173_v10  ;;  %v8035_v10 = vld [vmem:[#allocation3 + $0x4f0] ss:$8 sps:$4 sm:$0xff]   ;;  %v8067_v27 = vld [vmem:[#allocation5 + $0x494] ss:$8 sps:$4 sm:$0xff]   ;;  %v8070_v29 = vld [vmem:[#allocation5 + $0x4a4] ss:$8 sps:$4 sm:$0xff]  }
 0xed0   : > { %v5186_v39 = vpack.c.bf16 %v5184_v36, %v8997_v31  ;;  %v8068_v30 = vld [vmem:[#allocation5 + $0x4a0] ss:$8 sps:$4 sm:$0xff]   ;;  %v8073_v31 = vld [vmem:[#allocation5 + $0x4b4] ss:$8 sps:$4 sm:$0xff]   ;;  %v8071_v32 = vld [vmem:[#allocation5 + $0x4b0] ss:$8 sps:$4 sm:$0xff]  }
 0xed1   : > { %5397 = vmatpush1.bf16.msra.mxu1 %v7993_v5  ;;  %v5187_v43 = vpack.c.bf16 %v5185_v37, %v5183_v33  ;;  %5668 = vmatpush1.bf16.msra.mxu0 %v8047_v18  ;;  %v8076_v5 = vld [vmem:[#allocation5 + $0x4c4] ss:$8 sps:$4 sm:$0xff]   ;;  %v8074_v33 = vld [vmem:[#allocation5 + $0x4c0] ss:$8 sps:$4 sm:$0xff]   ;;  %v8079_v34 = vld [vmem:[#allocation5 + $0x4d4] ss:$8 sps:$4 sm:$0xff]  }
 0xed2   : > { %5398 = vmatprep.subr.bf16.mxu1 %v7998_v35  ;;  %5669 = vmatprep.subr.bf16.mxu0 %v8052_v19  ;;  %v8077_v35 = vld [vmem:[#allocation5 + $0x4d0] ss:$8 sps:$4 sm:$0xff]   ;;  %v8082_v36 = vld [vmem:[#allocation5 + $0x4e4] ss:$8 sps:$4 sm:$0xff]   ;;  %v8080_v37 = vld [vmem:[#allocation5 + $0x4e0] ss:$8 sps:$4 sm:$0xff]  }
 0xed3   : > { %5426 = vmatprep.mubr.bf16.mxu1 %v5187_v43  ;;  %v8098_v12 = vld [vmem:[#allocation7 + $0x440] ss:$8 sps:$4 sm:$0xff]   ;;  %v8106_v15 = vld [vmem:[#allocation7 + $0x464] ss:$8 sps:$4 sm:$0xff]   ;;  %v8109_v17 = vld [vmem:[#allocation7 + $0x474] ss:$8 sps:$4 sm:$0xff]  }
 0xed4   : > { %v8104_v16 = vld [vmem:[#allocation7 + $0x460] ss:$8 sps:$4 sm:$0xff]   ;;  %v8107_v18 = vld [vmem:[#allocation7 + $0x470] ss:$8 sps:$4 sm:$0xff]   ;;  %v8112_v19 = vld [vmem:[#allocation7 + $0x484] ss:$8 sps:$4 sm:$0xff]  }
 0xed5   : > { %5399 = vmatpush1.bf16.msra.mxu1 %v7996_v41  ;;  %5670 = vmatpush1.bf16.msra.mxu0 %v8050_v20  ;;  %v8083_v41 = vld [vmem:[#allocation5 + $0x4f0] ss:$8 sps:$4 sm:$0xff]   ;;  %v8110_v20 = vld [vmem:[#allocation7 + $0x480] ss:$8 sps:$4 sm:$0xff]  }
 0xed6   : > { %5400 = vmatprep.subr.bf16.mxu1 %v8001_v44  ;;  %5671 = vmatprep.subr.bf16.mxu0 %v8055_v21  ;;  %v6984_v44 = vld [vmem:[%s9147_s23 + $0x3] ss:$0 sm:$0xff]  ;;  %v8115_v21 = vld [vmem:[#allocation7 + $0x494] ss:$8 sps:$4 sm:$0xff]  }
 0xed9   : > { %5401 = vmatpush1.bf16.msra.mxu1 %v7999_v45  ;;  %5672 = vmatpush1.bf16.msra.mxu0 %v8053_v22  ;;  %v8113_v22 = vld [vmem:[#allocation7 + $0x490] ss:$8 sps:$4 sm:$0xff]  }
 0xeda   : > { %5402 = vmatprep.subr.bf16.mxu1 %v8004_v46  ;;  %5673 = vmatprep.subr.bf16.mxu0 %v8058_v23  ;;  %v7015_v23 = vld [vmem:[%s9101_s4 + $0x8] sm:$0x3] }
 0xedd   : > { %5403 = vmatpush1.bf16.msra.mxu1 %v8002_v47  ;;  %5674 = vmatpush1.bf16.msra.mxu0 %v8056_v52  ;;  %v5227_v52 = vrot.slane %v7015_v23, %v8772_v1 }
 0xede   : > { %5404 = vmatprep.subr.bf16.mxu1 %v8007_v48  ;;  %5675 = vmatprep.subr.bf16.mxu0 %v8061_v24  ;;  %v5231_v24 = vrot.slane %v7015_v23, %v8774_v2 }
 0xee1   : > { %5405 = vmatpush1.bf16.msra.mxu1 %v8005_v49  ;;  %5676 = vmatpush1.bf16.msra.mxu0 %v8059_v55 }
 0xee2   : > { %5406 = vmatprep.subr.bf16.mxu1 %v8010_v50  ;;  %5677 = vmatprep.subr.bf16.mxu0 %v8064_v25 }
 0xee5   : > { %5407 = vmatpush1.bf16.msra.mxu1 %v8008_v51  ;;  %5678 = vmatpush1.bf16.msra.mxu0 %v8062_v26 }
 0xee6   : > { %5408 = vmatprep.subr.bf16.mxu1 %v8013_v53  ;;  %5679 = vmatprep.subr.bf16.mxu0 %v8067_v27 }
 0xee9   : > { %5409 = vmatpush1.bf16.msra.mxu1 %v8011_v54  ;;  %5680 = vmatpush1.bf16.msra.mxu0 %v8065_v28 }
 0xeea   : > { %5410 = vmatprep.subr.bf16.mxu1 %v8016_v56  ;;  %5681 = vmatprep.subr.bf16.mxu0 %v8070_v29 }
 0xeed   : > { %5411 = vmatpush1.bf16.msra.mxu1 %v8014_v57  ;;  %5682 = vmatpush1.bf16.msra.mxu0 %v8068_v30 }
 0xeee   : > { %5412 = vmatprep.subr.bf16.mxu1 %v8019_v58  ;;  %5683 = vmatprep.subr.bf16.mxu0 %v8073_v31  ;;  %v8086_v58 = vld [vmem:[#allocation7 + $0x400] ss:$8 sps:$4 sm:$0xff]  }
 0xef1   : > { %5413 = vmatpush1.bf16.msra.mxu1 %v8017_v59  ;;  %5684 = vmatpush1.bf16.msra.mxu0 %v8071_v32  ;;  %v8088_v59 = vld [vmem:[#allocation7 + $0x404] ss:$8 sps:$4 sm:$0xff]  }
 0xef2   : > { %5414 = vmatprep.subr.bf16.mxu1 %v8022_v60  ;;  %5685 = vmatprep.subr.bf16.mxu0 %v8076_v5  ;;  %v8091_v60 = vld [vmem:[#allocation7 + $0x414] ss:$8 sps:$4 sm:$0xff]  }
 0xef5   : > { %5415 = vmatpush1.bf16.msra.mxu1 %v8020_v61  ;;  %5686 = vmatpush1.bf16.msra.mxu0 %v8074_v33 }
 0xef6   : > { %5416 = vmatprep.subr.bf16.mxu1 %v8025_v62  ;;  %5687 = vmatprep.subr.bf16.mxu0 %v8079_v34 }
 0xef9   : > { %5417 = vmatpush1.bf16.msra.mxu1 %v8023_v63  ;;  %5688 = vmatpush1.bf16.msra.mxu0 %v8077_v35  ;;  %v8089_v63 = vld [vmem:[#allocation7 + $0x410] ss:$8 sps:$4 sm:$0xff]  }
 0xefa   : > { %5418 = vmatprep.subr.bf16.mxu1 %v8028_v0  ;;  %5689 = vmatprep.subr.bf16.mxu0 %v8082_v36 }
 0xefd   : > { %5419 = vmatpush1.bf16.msra.mxu1 %v8026_v3  ;;  %5690 = vmatpush1.bf16.msra.mxu0 %v8080_v37  ;;  %v8094_v3 = vld [vmem:[#allocation7 + $0x424] ss:$8 sps:$4 sm:$0xff]  }
 0xefe   : > { %5420 = vmatprep.subr.bf16.mxu1 %v8031_v4 }
 0xf01   : > { %5421 = vmatpush1.bf16.msra.mxu1 %v8029_v6 }
 0xf02   : > { %5422 = vmatprep.subr.bf16.mxu1 %v8034_v7 }
 0xf05   : > { %5423 = vmatpush1.bf16.msra.mxu1 %v8032_v8  ;;  %v8092_v8 = vld [vmem:[#allocation7 + $0x420] ss:$8 sps:$4 sm:$0xff]  }
 0xf06   : > { %5424 = vmatprep.subr.bf16.mxu1 %v8037_v9  ;;  %v8097_v9 = vld [vmem:[#allocation7 + $0x434] ss:$8 sps:$4 sm:$0xff]  }
 0xf09   : > { %5425 = vmatpush1.bf16.msra.mxu1 %v8035_v10  ;;  %v8095_v10 = vld [vmem:[#allocation7 + $0x430] ss:$8 sps:$4 sm:$0xff]  }
 0xf0a   : > { %5928 = vmatprep.subr.bf16.mxu1 %v8088_v59 }
 0xf0c   : > { %5427 = vmatmul.mubr.bf16.vlgmr.msra.gmra.mrb[32].mxu1 %v5186_v39  ;;  %v8085_v39 = vld [vmem:[#allocation5 + $0x4f4] ss:$8 sps:$4 sm:$0xff]  }
 0xf0d   : > { %5691 = vmatprep.subr.bf16.mxu0 %v8085_v39  ;;  %5929 = vmatpush1.bf16.msra.mxu1 %v8086_v58 }
 0xf0e   : > { %5692 = vmatpush1.bf16.msra.mxu0 %v8083_v41  ;;  %5930 = vmatprep.subr.bf16.mxu1 %v8091_v60  ;;  %v8118_v60 = vld [vmem:[#allocation7 + $0x4a4] ss:$8 sps:$4 sm:$0xff]  }
 0xf11   : > { %5931 = vmatpush1.bf16.msra.mxu1 %v8089_v63  ;;  %v8119_v63 = vld [vmem:[#allocation7 + $0x4b0] ss:$8 sps:$4 sm:$0xff]  }
 0xf12   : > { %5932 = vmatprep.subr.bf16.mxu1 %v8094_v3  ;;  %v8122_v3 = vld [vmem:[#allocation7 + $0x4c0] ss:$8 sps:$4 sm:$0xff]  }
 0xf15   : > { %5933 = vmatpush1.bf16.msra.mxu1 %v8092_v8  ;;  %v8131_v8 = vld [vmem:[#allocation7 + $0x4f0] ss:$8 sps:$4 sm:$0xff]  }
 0xf16   : > { %5934 = vmatprep.subr.bf16.mxu1 %v8097_v9  ;;  %v8134_v9 = vld [vmem:[#allocation8 + $0x240] sm:$0xff]  }
 0xf17   : > { %7233 = vmatprep.subr.bf16.mxu0 %v8134_v9 }
 0xf19   : > { %5935 = vmatpush1.bf16.msra.mxu1 %v8095_v10  ;;  %v8135_v10 = vld [vmem:[#allocation8 + $0x200] sm:$0xff]  }
 0xf1a   : > { %5936 = vmatprep.subr.bf16.mxu1 %v8100_v11  ;;  %v8136_v11 = vld [vmem:[#allocation8 + $0x248] sm:$0xff]  }
 0xf1d   : > { %5937 = vmatpush1.bf16.msra.mxu1 %v8098_v12  ;;  %v8137_v12 = vld [vmem:[#allocation8 + $0x208] sm:$0xff]  }
 0xf1e   : > { %5938 = vmatprep.subr.bf16.mxu1 %v8103_v13  ;;  %v7048_v13 = vld [vmem:[%s9103_s6 + $0x8] sm:$0x3] }
 0xf21   : > { %5939 = vmatpush1.bf16.msra.mxu1 %v8101_v14  ;;  %v5494_v14 = vrot.slane %v7048_v13, %v8772_v1 }
 0xf22   : > { %5940 = vmatprep.subr.bf16.mxu1 %v8106_v15  ;;  %v5498_v15 = vrot.slane %v7048_v13, %v8774_v2 }
 0xf25   : > { %5941 = vmatpush1.bf16.msra.mxu1 %v8104_v16 }
 0xf26   : > { %5942 = vmatprep.subr.bf16.mxu1 %v8109_v17 }
 0xf29   : > { %5943 = vmatpush1.bf16.msra.mxu1 %v8107_v18 }
 0xf2a   : > { %5944 = vmatprep.subr.bf16.mxu1 %v8112_v19 }
 0xf2d   : > { %5945 = vmatpush1.bf16.msra.mxu1 %v8110_v20 }
 0xf2e   : > { %5946 = vmatprep.subr.bf16.mxu1 %v8115_v21 }
 0xf31   : > { %5947 = vmatpush1.bf16.msra.mxu1 %v8113_v22 }
 0xf32   : > { %5948 = vmatprep.subr.bf16.mxu1 %v8118_v60 }
 0xf9f   : > { %v7227_v43 = vpop.f32.mrb[28].mxu1 }
 0xfa0   : > { %v7228_v45 = vpop.f32.mrb[29].mxu1 }
 0xfa1   : > { %v7229_v46 = vadd.f32 %v7228_v45, %v7227_v43  ;;  %v7230_v47 = vpop.f32.mrb[30].mxu1 }
 0xfa2   : > { %v7231_v48 = vpop.f32.mrb[31].mxu1 }
 0xfa3   : > { %v5052_v49 = vadd.f32 %v7229_v46, %v6984_v44  ;;  %v7232_v50 = vadd.f32 %v7231_v48, %v7230_v47 }
 0xfa5   : > { %7001 = vst.msk [vmem:[%s8821_s18 + $0x30] sm:$0xff] %vm1712_vm2, %v5052_v49  ;;  %v5061_v51 = vsub.f32 %v5052_v49, %v8817_v40  ;;  %v5055_v53 = vadd.f32 %v7232_v50, %v6984_v44 }
 0xfa7   : > { %v5063_v54 = vmul.f32 0.5, %v5061_v51  ;;  %7002 = vst.msk [vmem:[%s8821_s18 + $0x38] sm:$0xff] %vm1712_vm2, %v5055_v53  ;;  %v5062_v56 = vsub.f32 %v5055_v53, %v8817_v40 }
 0xfa9   : > { %8298 = vtanh.f32 %v5063_v54  ;;  %v5064_v57 = vmul.f32 0.5, %v5062_v56 }
 0xfab   : > { %8300 = vtanh.f32 %v5064_v57 }
 0xfb3   : > { %v8299_v61 = vpop.eup %8298 }
 0xfb4   : > { %v5067_v62 = vadd.f32 1.0, %v8299_v61  ;;  %v8116_v61 = vld [vmem:[#allocation7 + $0x4a0] ss:$8 sps:$4 sm:$0xff]  }
 0xfb5   : > { %v8301_v0 = vpop.eup %8300  ;;  %5949 = vmatpush1.bf16.msra.mxu1 %v8116_v61 }
 0xfb6   : > { %v5069_v4 = vmul.f32 0.5, %v5067_v62  ;;  %v5068_v6 = vadd.f32 1.0, %v8301_v0  ;;  %v8121_v62 = vld [vmem:[#allocation7 + $0x4b4] ss:$8 sps:$4 sm:$0xff]   ;;  %v8124_v0 = vld [vmem:[#allocation7 + $0x4c4] ss:$8 sps:$4 sm:$0xff]  }
 0xfb7   : > { %5950 = vmatprep.subr.bf16.mxu1 %v8121_v62 }
 0xfb8   : > { %5073 = vrot.lane.b32.xlu1 %v5069_v4, %s8492_s20  ;;  %v5070_v7 = vmul.f32 0.5, %v5068_v6  ;;  %v8127_v4 = vld [vmem:[#allocation7 + $0x4d4] ss:$8 sps:$4 sm:$0xff]   ;;  %v8130_v6 = vld [vmem:[#allocation7 + $0x4e4] ss:$8 sps:$4 sm:$0xff]  }
 0xfb9   : > { %5951 = vmatpush1.bf16.msra.mxu1 %v8119_v63 }
 0xfba   : > { %5075 = vrot.lane.b32.xlu0 %v5070_v7, %s8492_s20  ;;  %5952 = vmatprep.subr.bf16.mxu1 %v8124_v0  ;;  %v8133_v7 = vld [vmem:[#allocation7 + $0x4f4] ss:$8 sps:$4 sm:$0xff]  }
 0xfbd   : > { %5953 = vmatpush1.bf16.msra.mxu1 %v8122_v3 }
 0xfbe   : > { %5954 = vmatprep.subr.bf16.mxu1 %v8127_v4 }
 0xfdf   : > { %v5428_v55 = vpop.f32.mrb[32].mxu1 }
 0xfe0   : > { %v5429_v25 = vadd.f32 %v5428_v55, %v5227_v52  ;;  %v5430_v26 = vpop.f32.mrb[33].mxu1 }
 0xfe1   : > { %v5431_v27 = vadd.f32 %v5430_v26, %v5231_v24  ;;  %v5432_v28 = vpop.f32.mrb[34].mxu1 }
 0xfe2   : > { %v5437_v29 = vmul.f32 0.5, %v5429_v25  ;;  %v5433_v30 = vadd.f32 %v5432_v28, %v5227_v52  ;;  %v5434_v31 = vpop.f32.mrb[35].mxu1 }
 0xfe3   : > { %v5438_v32 = vmul.f32 0.5, %v5431_v27  ;;  %v5435_v5 = vadd.f32 %v5434_v31, %v5231_v24 }
 0xfe4   : > { %8302 = vtanh.f32 %v5437_v29  ;;  %v5439_v33 = vmul.f32 0.5, %v5433_v30 }
 0xfe5   : > { %8304 = vtanh.f32 %v5438_v32  ;;  %v5440_v34 = vmul.f32 0.5, %v5435_v5 }
 0xfe6   : > { %8306 = vtanh.f32 %v5439_v33 }
 0xfe7   : > { %8308 = vtanh.f32 %v5440_v34 }
 0xfee   : > { %v8303_v35 = vpop.eup %8302 }
 0xfef   : > { %v8305_v36 = vpop.eup %8304  ;;  %v5445_v37 = vadd.f32 1.0, %v8303_v35 }
 0xff0   : > { %v8307_v39 = vpop.eup %8306  ;;  %v5446_v41 = vadd.f32 1.0, %v8305_v36 }
 0xff1   : > { %v8309_v43 = vpop.eup %8308  ;;  %v5447_v44 = vadd.f32 1.0, %v8307_v39  ;;  %v5449_v46 = vmul.f32 %v5445_v37, %v5437_v29 }
 0xff2   : > { %v5448_v45 = vadd.f32 1.0, %v8309_v43  ;;  %v5450_v48 = vmul.f32 %v5446_v41, %v5438_v32  ;;  %v8138_v41 = vld [vmem:[#allocation8 + $0x250] sm:$0xff]  }
 0xff3   : > { %v5451_v47 = vmul.f32 %v5447_v44, %v5439_v33  ;;  %v8139_v43 = vld [vmem:[#allocation8 + $0x210] sm:$0xff]   ;;  %v8140_v44 = vld [vmem:[#allocation8 + $0x258] sm:$0xff]  }
 0xff4   : > { %v5452_v49 = vmul.f32 %v5448_v45, %v5440_v34  ;;  %v8141_v45 = vld [vmem:[#allocation8 + $0x218] sm:$0xff]  }
 0xff5   : > { %v5453_v50 = vpack.c.bf16 %v5451_v47, %v5449_v46  ;;  %v8142_v46 = vld [vmem:[#allocation8 + $0x260] sm:$0xff]  }
 0xff6   : > { %v5454_v51 = vpack.c.bf16 %v5452_v49, %v5450_v48  ;;  %v8143_v47 = vld [vmem:[#allocation8 + $0x220] sm:$0xff]   ;;  %v8144_v48 = vld [vmem:[#allocation8 + $0x268] sm:$0xff]  }
 0xff7   : > { %v8145_v49 = vld [vmem:[#allocation8 + $0x228] sm:$0xff]  }
 0xff8   : > { %5693 = vmatprep.mubr.bf16.mxu0 %v5454_v51  ;;  %v8147_v51 = vld [vmem:[#allocation8 + $0x230] sm:$0xff]  }
 0xff9   : > { %5694 = vmatmul.mubr.bf16.vlgmr.msra.gmra.mrb[52].mxu0 %v5453_v50  ;;  %v8146_v50 = vld [vmem:[#allocation8 + $0x270] sm:$0xff]  }
 0xffa   : > { %7234 = vmatpush3.bf16.msra.mxu0 %v8135_v10 }
 0xffb   : > { %7235 = vmatprep.subr.bf16.mxu0 %v8136_v11 }
 0xffe   : > { %7236 = vmatpush3.bf16.msra.mxu0 %v8137_v12 }
 0xfff   : > { %7237 = vmatprep.subr.bf16.mxu0 %v8138_v41  ;;  %v8333_v41 = vld [vmem:[%s9149_s16] ss:$0 sm:$0xff] }
0x1002   : > { %7238 = vmatpush3.bf16.msra.mxu0 %v8139_v43 }
0x1003   : > { %7239 = vmatprep.subr.bf16.mxu0 %v8140_v44 }
0x1006   : > { %7240 = vmatpush3.bf16.msra.mxu0 %v8141_v45 }
0x1007   : > { %7241 = vmatprep.subr.bf16.mxu0 %v8142_v46  ;;  %v6254_v46 = vld [vmem:[%s8821_s18] sm:$0xff] (%p9151_p10) }
0x100a   : > { %7242 = vmatpush3.bf16.msra.mxu0 %v8143_v47  ;;  %v6256_v47 = vld [vmem:[%s8821_s18 + $0x8] sm:$0xff] (%p9151_p10) }
0x100b   : > { %7243 = vmatprep.subr.bf16.mxu0 %v8144_v48  ;;  %v6258_v48 = vld [vmem:[%s8821_s18 + $0x10] sm:$0xff] (%p9151_p10) }
0x100e   : > { %7244 = vmatpush3.bf16.msra.mxu0 %v8145_v49  ;;  %v6260_v49 = vld [vmem:[%s8821_s18 + $0x18] sm:$0xff] (%p9151_p10) }
0x100f   : > { %7245 = vmatprep.subr.bf16.mxu0 %v8146_v50  ;;  %v6262_v50 = vld [vmem:[%s8821_s18 + $0x20] sm:$0xff] (%p9151_p10) }
0x1012   : > { %7246 = vmatpush3.bf16.msra.mxu0 %v8147_v51  ;;  %v6264_v51 = vld [vmem:[%s8821_s18 + $0x28] sm:$0xff] (%p9151_p10) }
0x102a   : > { %v5074_v53 = vpop.permute.xlu1 %5073 }
0x102b   : > { %v5079_v54 = vmul.f32 %v8951_v38, %v5074_v53  ;;  %v8148_v53 = vld [vmem:[#allocation8 + $0x278] sm:$0xff]  }
0x102c   : > { %v5076_v56 = vpop.permute.xlu0 %5075  ;;  %7247 = vmatprep.subr.bf16.mxu0 %v8148_v53  ;;  %v6266_v53 = vld [vmem:[%s8821_s18 + $0x30] sm:$0xff] (%p9151_p10) }
0x102d   : > { %v5081_v57 = vadd.f32 %v8957_v42, %v5079_v54  ;;  %v5080_v58 = vmul.f32 %v8951_v38, %v5076_v56  ;;  %v8125_v38 = vld [vmem:[#allocation7 + $0x4d0] ss:$8 sps:$4 sm:$0xff]  }
0x102e   : > { %5955 = vmatpush1.bf16.msra.mxu1 %v8125_v38  ;;  %v8149_v54 = vld [vmem:[#allocation8 + $0x238] sm:$0xff]  }
0x102f   : > { %7003 = vst.msk [vmem:[%s8846_s26 + $0x30] sm:$0xff] %vm1712_vm2, %v5081_v57  ;;  %v5082_v59 = vadd.f32 %v8957_v42, %v5080_v58  ;;  %v8128_v42 = vld [vmem:[#allocation7 + $0x4e0] ss:$8 sps:$4 sm:$0xff]   ;;  %5956 = vmatprep.subr.bf16.mxu1 %v8130_v6  ;;  %7248 = vmatpush3.bf16.msra.mxu0 %v8149_v54  ;;  %v7081_v56 = vld [vmem:[%s9146_s24 + $0x8] sm:$0x3] }
0x1030   : > { %v5761_v57 = vrot.slane %v7081_v56, %v8772_v1  ;;  %v5765_v58 = vrot.slane %v7081_v56, %v8774_v2  ;;  %v6268_v54 = vld [vmem:[%s8821_s18 + $0x38] sm:$0xff] (%p9151_p10) }
0x1031   : > { %7004 = vst.msk [vmem:[%s8846_s26 + $0x38] sm:$0xff] %vm1712_vm2, %v5082_v59 }
0x1032   : > { %5957 = vmatpush1.bf16.msra.mxu1 %v8128_v42 }
0x1033   : > { %5958 = vmatprep.subr.bf16.mxu1 %v8133_v7 }
0x1036   : > { %5959 = vmatpush1.bf16.msra.mxu1 %v8131_v8 }
0x10cc   : > { %v5695_v16 = vpop.f32.mrb[52].mxu0 }
0x10cd   : > { %v5696_v17 = vadd.f32 %v5695_v16, %v5494_v14  ;;  %v5697_v18 = vpop.f32.mrb[53].mxu0 }
0x10ce   : > { %v5698_v19 = vadd.f32 %v5697_v18, %v5498_v15  ;;  %v5699_v20 = vpop.f32.mrb[54].mxu0 }
0x10cf   : > { %v5704_v21 = vmul.f32 0.5, %v5696_v17  ;;  %v5700_v22 = vadd.f32 %v5699_v20, %v5494_v14  ;;  %v5701_v23 = vpop.f32.mrb[55].mxu0 }
0x10d0   : > { %v5705_v52 = vmul.f32 0.5, %v5698_v19  ;;  %v5702_v24 = vadd.f32 %v5701_v23, %v5498_v15 }
0x10d1   : > { %8310 = vtanh.f32 %v5704_v21  ;;  %v5706_v55 = vmul.f32 0.5, %v5700_v22 }
0x10d2   : > { %8312 = vtanh.f32 %v5705_v52  ;;  %v5707_v25 = vmul.f32 0.5, %v5702_v24 }
0x10d3   : > { %8314 = vtanh.f32 %v5706_v55 }
0x10d4   : > { %8316 = vtanh.f32 %v5707_v25 }
0x10db   : > { %v8311_v26 = vpop.eup %8310 }
0x10dc   : > { %v8313_v27 = vpop.eup %8312  ;;  %v5712_v28 = vadd.f32 1.0, %v8311_v26 }
0x10dd   : > { %v8315_v29 = vpop.eup %8314  ;;  %v5713_v30 = vadd.f32 1.0, %v8313_v27 }
0x10de   : > { %v8317_v31 = vpop.eup %8316  ;;  %v5714_v32 = vadd.f32 1.0, %v8315_v29  ;;  %v5716_v33 = vmul.f32 %v5712_v28, %v5704_v21  ;;  %v7115_v21 = vld [vmem:[%s9147_s23 + $0x4] ss:$0 sm:$0xff] }
0x10df   : > { %v5715_v5 = vadd.f32 1.0, %v8317_v31  ;;  %v5717_v35 = vmul.f32 %v5713_v30, %v5705_v52 }
0x10e0   : > { %v5718_v34 = vmul.f32 %v5714_v32, %v5706_v55 }
0x10e1   : > { %v5719_v36 = vmul.f32 %v5715_v5, %v5707_v25 }
0x10e2   : > { %v5720_v37 = vpack.c.bf16 %v5718_v34, %v5716_v33 }
0x10e3   : > { %v5721_v39 = vpack.c.bf16 %v5719_v36, %v5717_v35 }
0x10e5   : > { %5960 = vmatprep.mubr.bf16.mxu1 %v5721_v39 }
0x10e6   : > { %5961 = vmatmul.mubr.bf16.vlgmr.msra.gmra.mrb[36].mxu1 %v5720_v37 }
0x11b9   : > { %v5962_v59 = vpop.f32.mrb[36].mxu1 }
0x11ba   : > { %v5963_v60 = vadd.f32 %v5962_v59, %v5761_v57  ;;  %v5964_v61 = vpop.f32.mrb[37].mxu1 }
0x11bb   : > { %v5965_v62 = vadd.f32 %v5964_v61, %v5765_v58  ;;  %v5966_v63 = vpop.f32.mrb[38].mxu1 }
0x11bc   : > { %v5971_v0 = vmul.f32 0.5, %v5963_v60  ;;  %v5967_v3 = vadd.f32 %v5966_v63, %v5761_v57  ;;  %v5968_v4 = vpop.f32.mrb[39].mxu1 }
0x11bd   : > { %v5972_v38 = vmul.f32 0.5, %v5965_v62  ;;  %v5969_v6 = vadd.f32 %v5968_v4, %v5765_v58 }
0x11be   : > { %8318 = vtanh.f32 %v5971_v0  ;;  %v5973_v42 = vmul.f32 0.5, %v5967_v3 }
0x11bf   : > { %8320 = vtanh.f32 %v5972_v38  ;;  %v5974_v7 = vmul.f32 0.5, %v5969_v6 }
0x11c0   : > { %8322 = vtanh.f32 %v5973_v42 }
0x11c1   : > { %8324 = vtanh.f32 %v5974_v7 }
0x11c8   : > { %v8319_v8 = vpop.eup %8318 }
0x11c9   : > { %v8321_v1 = vpop.eup %8320  ;;  %v5979_v9 = vadd.f32 1.0, %v8319_v8 }
0x11ca   : > { %v8323_v2 = vpop.eup %8322  ;;  %v5980_v10 = vadd.f32 1.0, %v8321_v1 }
0x11cb   : > { %v8325_v11 = vpop.eup %8324  ;;  %v5981_v12 = vadd.f32 1.0, %v8323_v2  ;;  %v5983_v14 = vmul.f32 %v5979_v9, %v5971_v0 }
0x11cc   : > { %v5982_v13 = vadd.f32 1.0, %v8325_v11  ;;  %v5984_v16 = vmul.f32 %v5980_v10, %v5972_v38 }
0x11cd   : > { %v5985_v15 = vmul.f32 %v5981_v12, %v5973_v42 }
0x11ce   : > { %v5986_v17 = vmul.f32 %v5982_v13, %v5974_v7 }
0x11cf   : > { %v5987_v18 = vpack.c.bf16 %v5985_v15, %v5983_v14 }
0x11d0   : > { %v5988_v19 = vpack.c.bf16 %v5986_v17, %v5984_v16 }
0x11d2   : > { %6158 = vmatprep.mubr.bf16.mxu0 %v5988_v19 }
0x11d3   : > { %6159 = vmatmul.mubr.bf16.vlgmr.msra.gmra.mrb[56].mxu0 %v5987_v18 }
0x12a6   : > { %v7249_v20 = vpop.f32.mrb[56].mxu0 }
0x12a7   : > { %v7250_v22 = vpop.f32.mrb[57].mxu0 }
0x12a8   : > { %v7251_v23 = vadd.f32 %v7250_v22, %v7249_v20  ;;  %v7252_v52 = vpop.f32.mrb[58].mxu0 }
0x12a9   : > { %v7253_v24 = vpop.f32.mrb[59].mxu0 }
0x12aa   : > { %v6161_v55 = vadd.f32 %v7251_v23, %v7115_v21  ;;  %v7254_v25 = vadd.f32 %v7253_v24, %v7252_v52 }
0x12ac   : > { %7132 = vst.msk [vmem:[%s8821_s18 + $0x40] sm:$0xff] %vm1712_vm2, %v6161_v55  ;;  %v6170_v26 = vsub.f32 %v6161_v55, %v8817_v40  ;;  %v6164_v27 = vadd.f32 %v7254_v25, %v7115_v21 }
0x12ae   : > { %v6172_v28 = vmul.f32 0.5, %v6170_v26  ;;  %7133 = vst.msk [vmem:[%s8821_s18 + $0x48] sm:$0xff] %vm1712_vm2, %v6164_v27  ;;  %v6171_v29 = vsub.f32 %v6164_v27, %v8817_v40  ;;  %v8332_v40 = vld [vmem:[%s9148_s27] ss:$0 sm:$0xff] }
0x12b0   : > { %8326 = vtanh.f32 %v6172_v28  ;;  %v6173_v30 = vmul.f32 0.5, %v6171_v29 }
0x12b2   : > { %8328 = vtanh.f32 %v6173_v30 }
0x12b3   : > { %v6270_v56 = vld [vmem:[%s8821_s18 + $0x40] sm:$0xff] (%p9151_p10) }
0x12b5   : > { %v6272_v57 = vld [vmem:[%s8821_s18 + $0x48] sm:$0xff] (%p9151_p10) }
0x12ba   : > { %v8327_v31 = vpop.eup %8326 }
0x12bb   : > { %v6176_v32 = vadd.f32 1.0, %v8327_v31 }
0x12bc   : > { %v8329_v5 = vpop.eup %8328 }
0x12bd   : > { %v6178_v33 = vmul.f32 0.5, %v6176_v32  ;;  %v6177_v34 = vadd.f32 1.0, %v8329_v5 }
0x12bf   : > { %6182 = vrot.lane.b32.xlu1 %v6178_v33, %s8492_s20  ;;  %v6179_v35 = vmul.f32 0.5, %v6177_v34 }
0x12c1   : > { %6184 = vrot.lane.b32.xlu0 %v6179_v35, %s8492_s20  ;;  %s7143_s20 = sshll.u32 (%p9151_p10), %s8589_s21, 4 }
0x12c2   : > { %s6208_s28 = scalar_lea.vmem (%p9151_p10), %s9152_s17, %s7143_s20 }
0x12c3   : > { %6255 = vst [vmem:[%s6208_s28] sm:$0xff] (%p9151_p10), %v6254_v46  ;;  %6257 = vst [vmem:[%s6208_s28 + $0x8] sm:$0xff] (%p9151_p10), %v6256_v47 }
0x12c4   : > { %6259 = vst [vmem:[%s6208_s28 + $0x20] sm:$0xff] (%p9151_p10), %v6258_v48  ;;  %6261 = vst [vmem:[%s6208_s28 + $0x28] sm:$0xff] (%p9151_p10), %v6260_v49 }
0x12c5   : > { %6263 = vst [vmem:[%s6208_s28 + $0x40] sm:$0xff] (%p9151_p10), %v6262_v50  ;;  %6265 = vst [vmem:[%s6208_s28 + $0x48] sm:$0xff] (%p9151_p10), %v6264_v51 }
0x12c6   : > { %6267 = vst [vmem:[%s6208_s28 + $0x60] sm:$0xff] (%p9151_p10), %v6266_v53  ;;  %6269 = vst [vmem:[%s6208_s28 + $0x68] sm:$0xff] (%p9151_p10), %v6268_v54 }
0x12c7   : > { %6271 = vst [vmem:[%s6208_s28 + $0x80] sm:$0xff] (%p9151_p10), %v6270_v56  ;;  %6273 = vst [vmem:[%s6208_s28 + $0x88] sm:$0xff] (%p9151_p10), %v6272_v57 }
0x1331   : > { %v6183_v36 = vpop.permute.xlu1 %6182 }
0x1332   : > { %v6188_v37 = vmul.f32 %v8332_v40, %v6183_v36  ;;  %6205 = sbr.rel (!%p9151_p10) target bundleno = 4921 (0x1339), region = 137 }
0x1333   : > { %v6185_v39 = vpop.permute.xlu0 %6184 }
0x1334   : > { %v6190_v43 = vadd.f32 %v8333_v41, %v6188_v37  ;;  %v6189_v44 = vmul.f32 %v8332_v40, %v6185_v39 }
0x1336   : > { %7134 = vst.msk [vmem:[%s8846_s26 + $0x40] sm:$0xff] %vm1712_vm2, %v6190_v43  ;;  %v6191_v45 = vadd.f32 %v8333_v41, %v6189_v44 }
0x1338   : > { %7135 = vst.msk [vmem:[%s8846_s26 + $0x48] sm:$0xff] %vm1712_vm2, %v6191_v45 }
0x1339 PF: > { %s9153_s15 = sld [smem:[#allocation17_spill]] }
0x133f   : > { %p9154_p12 = scmp.ne.s32.totalorder %s9153_s15, 0 }
0x1340   : > { %s7144_s30 = sshll.u32 (%p9154_p12), %s8589_s21, 4  ;;  %v6328_v58 = vld [vmem:[%s8846_s26] sm:$0xff] (%p9154_p12)  ;;  %v6330_v59 = vld [vmem:[%s8846_s26 + $0x8] sm:$0xff] (%p9154_p12)  ;;  %v6332_v60 = vld [vmem:[%s8846_s26 + $0x10] sm:$0xff] (%p9154_p12)  ;;  %s9155_s11 = sld [smem:[#allocation24_spill]] (%p9154_p12) }
0x1341   : > { %6279 = sbr.rel (!%p9154_p12) target bundleno = 4940 (0x134c), region = 175  ;;  %v6334_v61 = vld [vmem:[%s8846_s26 + $0x18] sm:$0xff] (%p9154_p12)  ;;  %v6336_v62 = vld [vmem:[%s8846_s26 + $0x20] sm:$0xff] (%p9154_p12)  ;;  %v6338_v63 = vld [vmem:[%s8846_s26 + $0x28] sm:$0xff] (%p9154_p12) }
0x1342   : > { %v6340_v0 = vld [vmem:[%s8846_s26 + $0x30] sm:$0xff] (%p9154_p12)  ;;  %v6342_v3 = vld [vmem:[%s8846_s26 + $0x38] sm:$0xff] (%p9154_p12)  ;;  %v6344_v4 = vld [vmem:[%s8846_s26 + $0x40] sm:$0xff] (%p9154_p12) }
0x1343   : > { %v6346_v38 = vld [vmem:[%s8846_s26 + $0x48] sm:$0xff] (%p9154_p12) }
0x1346   : > { %s6282_s22 = scalar_lea.vmem (%p9154_p12), %s9155_s11, %s7144_s30 }
0x1347   : > { %6329 = vst [vmem:[%s6282_s22] sm:$0xff] (%p9154_p12), %v6328_v58  ;;  %6331 = vst [vmem:[%s6282_s22 + $0x8] sm:$0xff] (%p9154_p12), %v6330_v59 }
0x1348   : > { %6333 = vst [vmem:[%s6282_s22 + $0x20] sm:$0xff] %v6332_v60  ;;  %6335 = vst [vmem:[%s6282_s22 + $0x28] sm:$0xff] %v6334_v61 }
0x1349   : > { %6337 = vst [vmem:[%s6282_s22 + $0x40] sm:$0xff] %v6336_v62  ;;  %6339 = vst [vmem:[%s6282_s22 + $0x48] sm:$0xff] %v6338_v63 }
0x134a   : > { %6341 = vst [vmem:[%s6282_s22 + $0x60] sm:$0xff] %v6340_v0  ;;  %6343 = vst [vmem:[%s6282_s22 + $0x68] sm:$0xff] %v6342_v3 }
0x134b   : > { %6345 = vst [vmem:[%s6282_s22 + $0x80] sm:$0xff] %v6344_v4  ;;  %6347 = vst [vmem:[%s6282_s22 + $0x88] sm:$0xff] %v6346_v38 }
0x134c PF: > { %s9156_s20 = sld [smem:[#allocation15_spill]]  ;;  %s9157_s21 = sld [smem:[#allocation16_spill]] }
0x134d   : > { %s9158_s18 = smov %s8476_s19 }
0x1352   : > { %p26_p0 = scmp.ge.s32.totalorder %s9156_s20, 4   ;;  %s9159_s19 = smov %s9157_s21 }
0x1354   :  { %28 = sbr.rel (!%p26_p0) target bundleno = 12 (0xc), region = 309 }
0x135b   :  { %6370 = vsyncpa [#allocation4], 1 }
0x135c   :  { %6372 = vsyncpa [#allocation4 + $0x1], 1 }
0x135d   :  { %6373 = vsyncpa [#allocation6], 1 }
0x135e   :  { %6374 = vsyncpa [#allocation9], 1 }

</bundles_post_ra>
